<compile_context>
chip_gen: v7x
topology: tpu7x:2x2x1
jax: 0.10.0
libtpu: 0.0.40
codegen_flags: <defaults>
</compile_context>

<pallas_src>
import functools

import jax
import jax.numpy as jnp
from jax import lax
from jax.experimental import pallas as pl
from jax.experimental.pallas import tpu as pltpu

GROUPS = 32
EPS = 1e-5  # nn.GroupNorm default


def _round_up(x, m):
    return (x + m - 1) // m * m


def _pick_channel_tile(cout, cg):
    """Group-aligned channel tile: whole groups per tile, lane-dense (%128) when Cout > 128."""
    if cout <= 128:
        return cout
    for tc in (128, 256):
        if cout % tc == 0 and tc % cg == 0:
            return tc
    return cout


def _vmem_limit_bytes(default=64 * 1024 * 1024):
    """Per-generation VMEM budget: ~3/4 of physical (96 MiB v5e/v6e, 48 MiB v7x)."""
    try:
        cap = getattr(pltpu.get_tpu_info(), "vmem_capacity_bytes", None)
    except Exception:  # unknown backend / interpret mode
        cap = None
    if not cap:
        return default
    return int(min(cap * 3 // 4, 112 * 1024 * 1024))


def _conv3x3_gn_relu_kernel(x_ref, w_ref, g_ref, b_ref, cg_ref, gc_ref, m_ref, o_ref,
                            *, H, W, Wq, Cg):
    # x_ref : (Hp*Wq, Cin)    zero-padded sample, rows flattened, Wq % 8 == 0, Hp = H + 2
    # w_ref : (3, 3, Cin, tC) w[kh, kw, c, o] = conv_weight[o_global, c, kh, kw]
    # g_ref / b_ref : (1, tC) GroupNorm affine (gamma / beta) for this channel tile
    # cg_ref: (tC, Gt) one-hot channel->group (tile-local), gc_ref: (Gt, tC) its transpose
    # m_ref : (H*Wq, 1) f32   1.0 for valid output columns (w < W), 0.0 for pad columns
    # o_ref : (H*Wq, tC)      padded output block (columns >= W are junk, cropped on host)
    M = H * Wq

    # ---- 3x3 conv: 9 aligned K=Cin matmuls; kw shift applied on the f32 result via roll ----
    acc = None
    for kw in range(3):
        zkw = None
        for kh in range(3):
            lhs = x_ref[kh * Wq: kh * Wq + M, :]                     # aligned row-slab view
            z = jnp.dot(lhs, w_ref[kh, kw], preferred_element_type=jnp.float32)
            zkw = z if zkw is None else zkw + z                      # (M, tC) f32
        if kw:
            # acc[m] += zkw[m + kw]; wrapped rows only pollute columns >= W (masked/cropped).
            zkw = pltpu.roll(zkw, shift=M - kw, axis=0)
        acc = zkw if acc is None else acc + zkw

    # ---- GroupNorm(32, C): two-pass stats in f32, pad columns masked out of the stats ----
    mask = m_ref[...]                                                # (M, 1) in {0, 1}
    inv_n = 1.0 / float(H * W * Cg)
    ch_sum = jnp.sum(acc * mask, axis=0, keepdims=True)              # (1, tC)
    mean_g = jnp.dot(ch_sum, cg_ref[...], preferred_element_type=jnp.float32) * inv_n
    mean_c = jnp.dot(mean_g, gc_ref[...], preferred_element_type=jnp.float32)   # (1, tC)

    dm = (acc - mean_c) * mask                                       # transient (sq-sum only)
    sq_sum = jnp.sum(dm * dm, axis=0, keepdims=True)                 # (1, tC)
    var_g = jnp.dot(sq_sum, cg_ref[...], preferred_element_type=jnp.float32) * inv_n
    inv_g = lax.rsqrt(jnp.maximum(var_g, 0.0) + EPS)                 # (1, Gt)

    # fold the affine: y = acc * scale + (beta - mean * scale)
    scale_c = jnp.dot(inv_g, gc_ref[...], preferred_element_type=jnp.float32) * g_ref[...]
    shift_c = b_ref[...] - mean_c * scale_c
    o_ref[...] = jnp.maximum(acc * scale_c + shift_c, 0.0).astype(o_ref.dtype)


def _bilinear_resize_align_corners(x_nchw, size):
    """F.interpolate(mode='bilinear', align_corners=True) equivalent (plain JAX glue)."""
    N, C, H, W = x_nchw.shape
    Ho, Wo = size

    def coords(n_in, n_out):
        if n_out == 1:
            return jnp.zeros((1,), jnp.float32)
        return jnp.arange(n_out, dtype=jnp.float32) * ((n_in - 1) / (n_out - 1))

    yc, xc = coords(H, Ho), coords(W, Wo)
    y0 = jnp.clip(jnp.floor(yc).astype(jnp.int32), 0, H - 1)
    y1 = jnp.clip(y0 + 1, 0, H - 1)
    x0 = jnp.clip(jnp.floor(xc).astype(jnp.int32), 0, W - 1)
    x1 = jnp.clip(x0 + 1, 0, W - 1)
    wy = yc - y0.astype(jnp.float32)
    wx = xc - x0.astype(jnp.float32)

    top = x_nchw[:, :, y0, :]
    bot = x_nchw[:, :, y1, :]
    rows = top + (bot - top) * wy[None, None, :, None]
    left = rows[:, :, :, x0]
    right = rows[:, :, :, x1]
    return left + (right - left) * wx[None, None, None, :]


def conv3x3_gn_relu(x_nchw, weight_oihw, gamma, beta, *, size, upsample=False,
                    compute_dtype=jnp.bfloat16):
    """Forward pass of Conv3x3GNReLU.  x_nchw: (N, Cin, H, W) -> (N, Cout, H', W')."""
    if upsample:
        x_nchw = _bilinear_resize_align_corners(x_nchw, size)

    N, Cin, H, W = x_nchw.shape
    Cout = weight_oihw.shape[0]
    assert Cout % GROUPS == 0, "GroupNorm(32, C) needs C % 32 == 0"
    Cg = Cout // GROUPS

    Hp = H + 2
    Wq = _round_up(W + 2, 8)   # padded width, multiple of 8 -> all kh row slabs stay aligned
    M = H * Wq

    tC = _pick_channel_tile(Cout, Cg)
    Gt = tC // Cg
    n_ct = Cout // tC

    # TODO(synk): keeping the surrounding model NHWC end-to-end (or DMA-ing unpadded rows into
    # a pre-zeroed VMEM scratch inside the kernel) would remove this padded HBM copy and both
    # boundary transposes; the module's NCHW interface forces them here.
    x_nhwc = jnp.transpose(x_nchw, (0, 2, 3, 1)).astype(compute_dtype)
    x_pad = jnp.pad(x_nhwc, ((0, 0), (1, 1), (1, Wq - W - 1), (0, 0)))
    x2 = x_pad.reshape(N, Hp * Wq, Cin)

    # OIHW -> (kh, kw, Cin, Cout): w[kh, kw, c, o] = weight[o, c, kh, kw]
    w = jnp.transpose(weight_oihw, (2, 3, 1, 0)).astype(compute_dtype)

    g = gamma.reshape(1, Cout).astype(jnp.float32)
    b = beta.reshape(1, Cout).astype(jnp.float32)

    # tile-local channel->group one-hots (identical for every channel tile) + column mask
    grp = jnp.arange(tC, dtype=jnp.int32) // Cg
    onehot_cg = (grp[:, None] == jnp.arange(Gt, dtype=jnp.int32)[None, :]).astype(jnp.float32)
    onehot_gc = onehot_cg.T
    colmask = jnp.tile((jnp.arange(Wq) < W).astype(jnp.float32), H).reshape(M, 1)

    kernel = functools.partial(_conv3x3_gn_relu_kernel, H=H, W=W, Wq=Wq, Cg=Cg)

    # TODO(synk): for very large H*W (e.g. 128x128x256 decoders) additionally tile spatially
    # (grid axis over H with 1-row halos and two-pass cross-tile GN stats) to fit v7x's VMEM.
    out_flat = pl.pallas_call(
        kernel,
        out_shape=jax.ShapeDtypeStruct((N, M, Cout), x_nchw.dtype),
        grid_spec=pltpu.PrefetchScalarGridSpec(
            num_scalar_prefetch=0,
            grid=(N, n_ct),   # both independent -> megacore-shardable on v7x
            in_specs=[
                pl.BlockSpec((None, Hp * Wq, Cin), lambda n, ct: (n, 0, 0)),
                pl.BlockSpec((3, 3, Cin, tC), lambda n, ct: (0, 0, 0, ct)),
                pl.BlockSpec((1, tC), lambda n, ct: (0, ct)),
                pl.BlockSpec((1, tC), lambda n, ct: (0, ct)),
                pl.BlockSpec((tC, Gt), lambda n, ct: (0, 0)),
                pl.BlockSpec((Gt, tC), lambda n, ct: (0, 0)),
                pl.BlockSpec((M, 1), lambda n, ct: (0, 0)),
            ],
            out_specs=pl.BlockSpec((None, M, tC), lambda n, ct: (n, 0, ct)),
        ),
        compiler_params=pltpu.CompilerParams(
            dimension_semantics=("parallel", "parallel"),
            vmem_limit_bytes=_vmem_limit_bytes(),
        ),
    )(x2, w, g, b, onehot_cg, onehot_gc, colmask)

    # crop the padded columns and return to NCHW; the slice fuses into the boundary transpose
    out = out_flat.reshape(N, H, Wq, Cout)[:, :, :W, :]
    return jnp.transpose(out, (0, 3, 1, 2))


def _reference(x_nchw, weight_oihw, gamma, beta, *, size, upsample=False):
    """Pure-JAX reference mirroring the PyTorch module, for verification."""
    if upsample:
        x_nchw = _bilinear_resize_align_corners(x_nchw, size)
    y = lax.conv_general_dilated(
        x_nchw.astype(jnp.float32), weight_oihw.astype(jnp.float32),
        window_strides=(1, 1), padding=((1, 1), (1, 1)),
        dimension_numbers=("NCHW", "OIHW", "NCHW"),
        precision=lax.Precision.HIGHEST)
    N, C, H, W = y.shape
    yg = y.reshape(N, GROUPS, C // GROUPS, H, W)
    mean = jnp.mean(yg, axis=(2, 3, 4), keepdims=True)
    var = jnp.mean((yg - mean) ** 2, axis=(2, 3, 4), keepdims=True)
    yn = ((yg - mean) / jnp.sqrt(var + EPS)).reshape(N, C, H, W)
    yn = yn * gamma[None, :, None, None] + beta[None, :, None, None]
    return jnp.maximum(yn, 0.0)


if __name__ == "__main__":
    key = jax.random.PRNGKey(0)
    k_x, k_w, k_g, k_b = jax.random.split(key, 4)

    N, Cin, Cout, H, W = 2, 16, 32, 16, 16  # Cout must be divisible by 32 for GroupNorm(32, C)
    x = jax.random.normal(k_x, (N, Cin, H, W), jnp.float32)
    weight = jax.random.normal(k_w, (Cout, Cin, 3, 3), jnp.float32) * 0.1  # OIHW, bias=False
    gamma = 1.0 + 0.1 * jax.random.normal(k_g, (Cout,), jnp.float32)       # GroupNorm affine
    beta = 0.1 * jax.random.normal(k_b, (Cout,), jnp.float32)

    ref = _reference(x, weight, gamma, beta, size=(H, W), upsample=False)

    # 1) f32 compute path: module-faithful numerics.
    out_f32 = jax.block_until_ready(conv3x3_gn_relu(
        x, weight, gamma, beta, size=(H, W), upsample=False, compute_dtype=jnp.float32))
    assert out_f32.shape == (N, Cout, H, W)
    err = float(jnp.max(jnp.abs(out_f32 - ref)))
    assert err < 3e-3, f"f32 path max abs err {err}"

    # 2) bf16 MXU operands (default fast path): f32 accumulation + f32 GroupNorm.
    #    Documented tolerance vs the f32 reference (bf16 operand rounding only).
    out_bf16 = jax.block_until_ready(conv3x3_gn_relu(
        x, weight, gamma, beta, size=(H, W), upsample=False))
    assert out_bf16.shape == (N, Cout, H, W)
    err = float(jnp.max(jnp.abs(out_bf16 - ref)))
    assert err < 5e-2, f"bf16 path max abs err {err}"

    # 3) upsample=True path (bilinear align_corners=True resize as JAX glue).
    ref_up = _reference(x, weight, gamma, beta, size=(24, 24), upsample=True)
    out_up = jax.block_until_ready(conv3x3_gn_relu(
        x, weight, gamma, beta, size=(24, 24), upsample=True))
    assert out_up.shape == (N, Cout, 24, 24)
    err = float(jnp.max(jnp.abs(out_up - ref_up)))
    assert err < 5e-2, f"upsample path max abs err {err}"

    print("KERNEL_OK")
</pallas_src>

<mosaic_0001>
module attributes {stable_mosaic.version = 11 : i64} {
  func.func @_conv3x3_gn_relu_kernel(%arg0: i32, %arg1: i32, %arg2: memref<1x432x16xf32, #tpu.memory_space<vmem>>, %arg3: memref<3x3x16x32xf32, #tpu.memory_space<vmem>>, %arg4: memref<1x32xf32, #tpu.memory_space<vmem>>, %arg5: memref<1x32xf32, #tpu.memory_space<vmem>>, %arg6: memref<32x32xf32, #tpu.memory_space<vmem>>, %arg7: memref<32x32xf32, #tpu.memory_space<vmem>>, %arg8: memref<384x1xf32, #tpu.memory_space<vmem>>, %arg9: memref<1x384x32xf32, #tpu.memory_space<vmem>>) attributes {dimension_semantics = [#tpu.dimension_semantics<parallel>, #tpu.dimension_semantics<parallel>], iteration_bounds = array<i64: 2, 1>, scalar_prefetch = 0 : i64, scratch_operands = 0 : i64, tpu.core_type = #tpu.core_type<tc>, window_params = [{transform_indices = @transform_0, window_bounds = array<i64: 1, 432, 16>}, {transform_indices = @transform_1, window_bounds = array<i64: 3, 3, 16, 32>}, {transform_indices = @transform_2, window_bounds = array<i64: 1, 32>}, {transform_indices = @transform_3, window_bounds = array<i64: 1, 32>}, {pipeline_mode = #tpu.pipeline_mode<synchronous>, transform_indices = @transform_4, window_bounds = array<i64: 32, 32>}, {pipeline_mode = #tpu.pipeline_mode<synchronous>, transform_indices = @transform_5, window_bounds = array<i64: 32, 32>}, {pipeline_mode = #tpu.pipeline_mode<synchronous>, transform_indices = @transform_6, window_bounds = array<i64: 384, 1>}, {transform_indices = @transform_7, window_bounds = array<i64: 1, 384, 32>}]} {
    %c0 = arith.constant 0 : index
    %c0_0 = arith.constant 0 : index
    %c0_1 = arith.constant 0 : index
    %0 = vector.load %arg2[%c0, %c0_0, %c0_1] : memref<1x432x16xf32, #tpu.memory_space<vmem>>, vector<1x384x16xf32>
    %1 = vector.shape_cast %0 : vector<1x384x16xf32> to vector<384x16xf32>
    %c0_2 = arith.constant 0 : index
    %c0_3 = arith.constant 0 : index
    %c0_4 = arith.constant 0 : index
    %c0_5 = arith.constant 0 : index
    %2 = vector.load %arg3[%c0_2, %c0_3, %c0_4, %c0_5] : memref<3x3x16x32xf32, #tpu.memory_space<vmem>>, vector<1x1x16x32xf32>
    %3 = vector.shape_cast %2 : vector<1x1x16x32xf32> to vector<16x32xf32>
    %cst = arith.constant dense<0.000000e+00> : vector<384x32xf32>
    %4 = tpu.matmul %1, %3, %cst {dimension_numbers = #tpu.dot_dimension_numbers<[1], [0], [0], [1], [0, 0, 1, 1], [], []>} : vector<384x16xf32>, vector<16x32xf32>, vector<384x32xf32> -> vector<384x32xf32>
    %c0_6 = arith.constant 0 : index
    %c24 = arith.constant 24 : index
    %c0_7 = arith.constant 0 : index
    %5 = vector.load %arg2[%c0_6, %c24, %c0_7] : memref<1x432x16xf32, #tpu.memory_space<vmem>>, vector<1x384x16xf32>
    %6 = vector.shape_cast %5 : vector<1x384x16xf32> to vector<384x16xf32>
    %c1 = arith.constant 1 : index
    %c0_8 = arith.constant 0 : index
    %c0_9 = arith.constant 0 : index
    %c0_10 = arith.constant 0 : index
    %7 = vector.load %arg3[%c1, %c0_8, %c0_9, %c0_10] : memref<3x3x16x32xf32, #tpu.memory_space<vmem>>, vector<1x1x16x32xf32>
    %8 = vector.shape_cast %7 : vector<1x1x16x32xf32> to vector<16x32xf32>
    %cst_11 = arith.constant dense<0.000000e+00> : vector<384x32xf32>
    %9 = tpu.matmul %6, %8, %cst_11 {dimension_numbers = #tpu.dot_dimension_numbers<[1], [0], [0], [1], [0, 0, 1, 1], [], []>} : vector<384x16xf32>, vector<16x32xf32>, vector<384x32xf32> -> vector<384x32xf32>
    %10 = arith.addf %4, %9 : vector<384x32xf32>
    %c0_12 = arith.constant 0 : index
    %c48 = arith.constant 48 : index
    %c0_13 = arith.constant 0 : index
    %11 = vector.load %arg2[%c0_12, %c48, %c0_13] : memref<1x432x16xf32, #tpu.memory_space<vmem>>, vector<1x384x16xf32>
    %12 = vector.shape_cast %11 : vector<1x384x16xf32> to vector<384x16xf32>
    %c2 = arith.constant 2 : index
    %c0_14 = arith.constant 0 : index
    %c0_15 = arith.constant 0 : index
    %c0_16 = arith.constant 0 : index
    %13 = vector.load %arg3[%c2, %c0_14, %c0_15, %c0_16] : memref<3x3x16x32xf32, #tpu.memory_space<vmem>>, vector<1x1x16x32xf32>
    %14 = vector.shape_cast %13 : vector<1x1x16x32xf32> to vector<16x32xf32>
    %cst_17 = arith.constant dense<0.000000e+00> : vector<384x32xf32>
    %15 = tpu.matmul %12, %14, %cst_17 {dimension_numbers = #tpu.dot_dimension_numbers<[1], [0], [0], [1], [0, 0, 1, 1], [], []>} : vector<384x16xf32>, vector<16x32xf32>, vector<384x32xf32> -> vector<384x32xf32>
    %16 = arith.addf %10, %15 : vector<384x32xf32>
    %c0_18 = arith.constant 0 : index
    %c0_19 = arith.constant 0 : index
    %c0_20 = arith.constant 0 : index
    %17 = vector.load %arg2[%c0_18, %c0_19, %c0_20] : memref<1x432x16xf32, #tpu.memory_space<vmem>>, vector<1x384x16xf32>
    %18 = vector.shape_cast %17 : vector<1x384x16xf32> to vector<384x16xf32>
    %c0_21 = arith.constant 0 : index
    %c1_22 = arith.constant 1 : index
    %c0_23 = arith.constant 0 : index
    %c0_24 = arith.constant 0 : index
    %19 = vector.load %arg3[%c0_21, %c1_22, %c0_23, %c0_24] : memref<3x3x16x32xf32, #tpu.memory_space<vmem>>, vector<1x1x16x32xf32>
    %20 = vector.shape_cast %19 : vector<1x1x16x32xf32> to vector<16x32xf32>
    %cst_25 = arith.constant dense<0.000000e+00> : vector<384x32xf32>
    %21 = tpu.matmul %18, %20, %cst_25 {dimension_numbers = #tpu.dot_dimension_numbers<[1], [0], [0], [1], [0, 0, 1, 1], [], []>} : vector<384x16xf32>, vector<16x32xf32>, vector<384x32xf32> -> vector<384x32xf32>
    %c0_26 = arith.constant 0 : index
    %c24_27 = arith.constant 24 : index
    %c0_28 = arith.constant 0 : index
    %22 = vector.load %arg2[%c0_26, %c24_27, %c0_28] : memref<1x432x16xf32, #tpu.memory_space<vmem>>, vector<1x384x16xf32>
    %23 = vector.shape_cast %22 : vector<1x384x16xf32> to vector<384x16xf32>
    %c1_29 = arith.constant 1 : index
    %c1_30 = arith.constant 1 : index
    %c0_31 = arith.constant 0 : index
    %c0_32 = arith.constant 0 : index
    %24 = vector.load %arg3[%c1_29, %c1_30, %c0_31, %c0_32] : memref<3x3x16x32xf32, #tpu.memory_space<vmem>>, vector<1x1x16x32xf32>
    %25 = vector.shape_cast %24 : vector<1x1x16x32xf32> to vector<16x32xf32>
    %cst_33 = arith.constant dense<0.000000e+00> : vector<384x32xf32>
    %26 = tpu.matmul %23, %25, %cst_33 {dimension_numbers = #tpu.dot_dimension_numbers<[1], [0], [0], [1], [0, 0, 1, 1], [], []>} : vector<384x16xf32>, vector<16x32xf32>, vector<384x32xf32> -> vector<384x32xf32>
    %27 = arith.addf %21, %26 : vector<384x32xf32>
    %c0_34 = arith.constant 0 : index
    %c48_35 = arith.constant 48 : index
    %c0_36 = arith.constant 0 : index
    %28 = vector.load %arg2[%c0_34, %c48_35, %c0_36] : memref<1x432x16xf32, #tpu.memory_space<vmem>>, vector<1x384x16xf32>
    %29 = vector.shape_cast %28 : vector<1x384x16xf32> to vector<384x16xf32>
    %c2_37 = arith.constant 2 : index
    %c1_38 = arith.constant 1 : index
    %c0_39 = arith.constant 0 : index
    %c0_40 = arith.constant 0 : index
    %30 = vector.load %arg3[%c2_37, %c1_38, %c0_39, %c0_40] : memref<3x3x16x32xf32, #tpu.memory_space<vmem>>, vector<1x1x16x32xf32>
    %31 = vector.shape_cast %30 : vector<1x1x16x32xf32> to vector<16x32xf32>
    %cst_41 = arith.constant dense<0.000000e+00> : vector<384x32xf32>
    %32 = tpu.matmul %29, %31, %cst_41 {dimension_numbers = #tpu.dot_dimension_numbers<[1], [0], [0], [1], [0, 0, 1, 1], [], []>} : vector<384x16xf32>, vector<16x32xf32>, vector<384x32xf32> -> vector<384x32xf32>
    %33 = arith.addf %27, %32 : vector<384x32xf32>
    %c383_i32 = arith.constant 383 : i32
    %34 = tpu.dynamic_rotate %33 by %c383_i32 dim 0 : vector<384x32xf32>, i32 -> vector<384x32xf32>
    %35 = arith.addf %16, %34 : vector<384x32xf32>
    %c0_42 = arith.constant 0 : index
    %c0_43 = arith.constant 0 : index
    %c0_44 = arith.constant 0 : index
    %36 = vector.load %arg2[%c0_42, %c0_43, %c0_44] : memref<1x432x16xf32, #tpu.memory_space<vmem>>, vector<1x384x16xf32>
    %37 = vector.shape_cast %36 : vector<1x384x16xf32> to vector<384x16xf32>
    %c0_45 = arith.constant 0 : index
    %c2_46 = arith.constant 2 : index
    %c0_47 = arith.constant 0 : index
    %c0_48 = arith.constant 0 : index
    %38 = vector.load %arg3[%c0_45, %c2_46, %c0_47, %c0_48] : memref<3x3x16x32xf32, #tpu.memory_space<vmem>>, vector<1x1x16x32xf32>
    %39 = vector.shape_cast %38 : vector<1x1x16x32xf32> to vector<16x32xf32>
    %cst_49 = arith.constant dense<0.000000e+00> : vector<384x32xf32>
    %40 = tpu.matmul %37, %39, %cst_49 {dimension_numbers = #tpu.dot_dimension_numbers<[1], [0], [0], [1], [0, 0, 1, 1], [], []>} : vector<384x16xf32>, vector<16x32xf32>, vector<384x32xf32> -> vector<384x32xf32>
    %c0_50 = arith.constant 0 : index
    %c24_51 = arith.constant 24 : index
    %c0_52 = arith.constant 0 : index
    %41 = vector.load %arg2[%c0_50, %c24_51, %c0_52] : memref<1x432x16xf32, #tpu.memory_space<vmem>>, vector<1x384x16xf32>
    %42 = vector.shape_cast %41 : vector<1x384x16xf32> to vector<384x16xf32>
    %c1_53 = arith.constant 1 : index
    %c2_54 = arith.constant 2 : index
    %c0_55 = arith.constant 0 : index
    %c0_56 = arith.constant 0 : index
    %43 = vector.load %arg3[%c1_53, %c2_54, %c0_55, %c0_56] : memref<3x3x16x32xf32, #tpu.memory_space<vmem>>, vector<1x1x16x32xf32>
    %44 = vector.shape_cast %43 : vector<1x1x16x32xf32> to vector<16x32xf32>
    %cst_57 = arith.constant dense<0.000000e+00> : vector<384x32xf32>
    %45 = tpu.matmul %42, %44, %cst_57 {dimension_numbers = #tpu.dot_dimension_numbers<[1], [0], [0], [1], [0, 0, 1, 1], [], []>} : vector<384x16xf32>, vector<16x32xf32>, vector<384x32xf32> -> vector<384x32xf32>
    %46 = arith.addf %40, %45 : vector<384x32xf32>
    %c0_58 = arith.constant 0 : index
    %c48_59 = arith.constant 48 : index
    %c0_60 = arith.constant 0 : index
    %47 = vector.load %arg2[%c0_58, %c48_59, %c0_60] : memref<1x432x16xf32, #tpu.memory_space<vmem>>, vector<1x384x16xf32>
    %48 = vector.shape_cast %47 : vector<1x384x16xf32> to vector<384x16xf32>
    %c2_61 = arith.constant 2 : index
    %c2_62 = arith.constant 2 : index
    %c0_63 = arith.constant 0 : index
    %c0_64 = arith.constant 0 : index
    %49 = vector.load %arg3[%c2_61, %c2_62, %c0_63, %c0_64] : memref<3x3x16x32xf32, #tpu.memory_space<vmem>>, vector<1x1x16x32xf32>
    %50 = vector.shape_cast %49 : vector<1x1x16x32xf32> to vector<16x32xf32>
    %cst_65 = arith.constant dense<0.000000e+00> : vector<384x32xf32>
    %51 = tpu.matmul %48, %50, %cst_65 {dimension_numbers = #tpu.dot_dimension_numbers<[1], [0], [0], [1], [0, 0, 1, 1], [], []>} : vector<384x16xf32>, vector<16x32xf32>, vector<384x32xf32> -> vector<384x32xf32>
    %52 = arith.addf %46, %51 : vector<384x32xf32>
    %c382_i32 = arith.constant 382 : i32
    %53 = tpu.dynamic_rotate %52 by %c382_i32 dim 0 : vector<384x32xf32>, i32 -> vector<384x32xf32>
    %54 = arith.addf %35, %53 : vector<384x32xf32>
    %c0_66 = arith.constant 0 : index
    %c0_67 = arith.constant 0 : index
    %55 = vector.load %arg8[%c0_66, %c0_67] : memref<384x1xf32, #tpu.memory_space<vmem>>, vector<384x1xf32>
    %56 = vector.broadcast %55 : vector<384x1xf32> to vector<384x32xf32>
    %57 = arith.mulf %54, %56 : vector<384x32xf32>
    %cst_68 = arith.constant dense<0.000000e+00> : vector<32xf32>
    %58 = vector.multi_reduction <add>, %57, %cst_68 [0] : vector<384x32xf32> to vector<32xf32>
    %59 = vector.shape_cast %58 : vector<32xf32> to vector<1x32xf32>
    %c0_69 = arith.constant 0 : index
    %c0_70 = arith.constant 0 : index
    %60 = vector.load %arg6[%c0_69, %c0_70] : memref<32x32xf32, #tpu.memory_space<vmem>>, vector<32x32xf32>
    %cst_71 = arith.constant dense<0.000000e+00> : vector<1x32xf32>
    %61 = tpu.matmul %59, %60, %cst_71 {dimension_numbers = #tpu.dot_dimension_numbers<[1], [0], [0], [1], [0, 0, 1, 1], [], []>} : vector<1x32xf32>, vector<32x32xf32>, vector<1x32xf32> -> vector<1x32xf32>
    %cst_72 = arith.constant 3.906250e-03 : f32
    %62 = vector.broadcast %cst_72 : f32 to vector<1x32xf32>
    %63 = arith.mulf %61, %62 : vector<1x32xf32>
    %c0_73 = arith.constant 0 : index
    %c0_74 = arith.constant 0 : index
    %64 = vector.load %arg7[%c0_73, %c0_74] : memref<32x32xf32, #tpu.memory_space<vmem>>, vector<32x32xf32>
    %cst_75 = arith.constant dense<0.000000e+00> : vector<1x32xf32>
    %65 = tpu.matmul %63, %64, %cst_75 {dimension_numbers = #tpu.dot_dimension_numbers<[1], [0], [0], [1], [0, 0, 1, 1], [], []>} : vector<1x32xf32>, vector<32x32xf32>, vector<1x32xf32> -> vector<1x32xf32>
    %66 = vector.broadcast %65 : vector<1x32xf32> to vector<384x32xf32>
    %67 = arith.subf %54, %66 : vector<384x32xf32>
    %68 = vector.broadcast %55 : vector<384x1xf32> to vector<384x32xf32>
    %69 = arith.mulf %67, %68 : vector<384x32xf32>
    %70 = arith.mulf %69, %69 : vector<384x32xf32>
    %cst_76 = arith.constant dense<0.000000e+00> : vector<32xf32>
    %71 = vector.multi_reduction <add>, %70, %cst_76 [0] : vector<384x32xf32> to vector<32xf32>
    %72 = vector.shape_cast %71 : vector<32xf32> to vector<1x32xf32>
    %c0_77 = arith.constant 0 : index
    %c0_78 = arith.constant 0 : index
    %73 = vector.load %arg6[%c0_77, %c0_78] : memref<32x32xf32, #tpu.memory_space<vmem>>, vector<32x32xf32>
    %cst_79 = arith.constant dense<0.000000e+00> : vector<1x32xf32>
    %74 = tpu.matmul %72, %73, %cst_79 {dimension_numbers = #tpu.dot_dimension_numbers<[1], [0], [0], [1], [0, 0, 1, 1], [], []>} : vector<1x32xf32>, vector<32x32xf32>, vector<1x32xf32> -> vector<1x32xf32>
    %cst_80 = arith.constant 3.906250e-03 : f32
    %75 = vector.broadcast %cst_80 : f32 to vector<1x32xf32>
    %76 = arith.mulf %74, %75 : vector<1x32xf32>
    %cst_81 = arith.constant 0.000000e+00 : f32
    %77 = vector.broadcast %cst_81 : f32 to vector<1x32xf32>
    %78 = arith.maximumf %76, %77 : vector<1x32xf32>
    %cst_82 = arith.constant 9.99999974E-6 : f32
    %79 = vector.broadcast %cst_82 : f32 to vector<1x32xf32>
    %80 = arith.addf %78, %79 : vector<1x32xf32>
    %81 = math.rsqrt %80 : vector<1x32xf32>
    %c0_83 = arith.constant 0 : index
    %c0_84 = arith.constant 0 : index
    %82 = vector.load %arg7[%c0_83, %c0_84] : memref<32x32xf32, #tpu.memory_space<vmem>>, vector<32x32xf32>
    %cst_85 = arith.constant dense<0.000000e+00> : vector<1x32xf32>
    %83 = tpu.matmul %81, %82, %cst_85 {dimension_numbers = #tpu.dot_dimension_numbers<[1], [0], [0], [1], [0, 0, 1, 1], [], []>} : vector<1x32xf32>, vector<32x32xf32>, vector<1x32xf32> -> vector<1x32xf32>
    %c0_86 = arith.constant 0 : index
    %c0_87 = arith.constant 0 : index
    %84 = vector.load %arg4[%c0_86, %c0_87] : memref<1x32xf32, #tpu.memory_space<vmem>>, vector<1x32xf32>
    %85 = arith.mulf %83, %84 : vector<1x32xf32>
    %c0_88 = arith.constant 0 : index
    %c0_89 = arith.constant 0 : index
    %86 = vector.load %arg5[%c0_88, %c0_89] : memref<1x32xf32, #tpu.memory_space<vmem>>, vector<1x32xf32>
    %87 = arith.mulf %65, %85 : vector<1x32xf32>
    %88 = arith.subf %86, %87 : vector<1x32xf32>
    %89 = vector.broadcast %85 : vector<1x32xf32> to vector<384x32xf32>
    %90 = arith.mulf %54, %89 : vector<384x32xf32>
    %91 = vector.broadcast %88 : vector<1x32xf32> to vector<384x32xf32>
    %92 = arith.addf %90, %91 : vector<384x32xf32>
    %cst_90 = arith.constant 0.000000e+00 : f32
    %93 = vector.broadcast %cst_90 : f32 to vector<384x32xf32>
    %94 = arith.maximumf %92, %93 : vector<384x32xf32>
    %c0_91 = arith.constant 0 : index
    %c0_92 = arith.constant 0 : index
    %c0_93 = arith.constant 0 : index
    %95 = vector.load %arg9[%c0_91, %c0_92, %c0_93] : memref<1x384x32xf32, #tpu.memory_space<vmem>>, vector<1x384x32xf32>
    %96 = vector.shape_cast %95 : vector<1x384x32xf32> to vector<384x32xf32>
    %97 = vector.shape_cast %94 : vector<384x32xf32> to vector<1x384x32xf32>
    tpu.vector_store %arg9[%c0_91, %c0_92, %c0_93], %97 {strides = array<i32>} : memref<1x384x32xf32, #tpu.memory_space<vmem>>, vector<1x384x32xf32>,
    return
  }
  func.func @transform_0(%arg0: i32, %arg1: i32) -> (i32, i32, i32) {
    %c0_i32 = arith.constant 0 : i32
    %c0_i32_0 = arith.constant 0 : i32
    %c0_i32_1 = arith.constant 0 : i32
    return %arg0, %c0_i32, %c0_i32_0 : i32, i32, i32
  }
  func.func @transform_1(%arg0: i32, %arg1: i32) -> (i32, i32, i32, i32) {
    %c0_i32 = arith.constant 0 : i32
    %c0_i32_0 = arith.constant 0 : i32
    %c0_i32_1 = arith.constant 0 : i32
    %c0_i32_2 = arith.constant 0 : i32
    return %c0_i32, %c0_i32_0, %c0_i32_1, %arg1 : i32, i32, i32, i32
  }
  func.func @transform_2(%arg0: i32, %arg1: i32) -> (i32, i32) {
    %c0_i32 = arith.constant 0 : i32
    %c0_i32_0 = arith.constant 0 : i32
    return %c0_i32, %arg1 : i32, i32
  }
  func.func @transform_3(%arg0: i32, %arg1: i32) -> (i32, i32) {
    %c0_i32 = arith.constant 0 : i32
    %c0_i32_0 = arith.constant 0 : i32
    return %c0_i32, %arg1 : i32, i32
  }
  func.func @transform_4(%arg0: i32, %arg1: i32) -> (i32, i32) {
    %c0_i32 = arith.constant 0 : i32
    %c0_i32_0 = arith.constant 0 : i32
    %c0_i32_1 = arith.constant 0 : i32
    return %c0_i32, %c0_i32_0 : i32, i32
  }
  func.func @transform_5(%arg0: i32, %arg1: i32) -> (i32, i32) {
    %c0_i32 = arith.constant 0 : i32
    %c0_i32_0 = arith.constant 0 : i32
    %c0_i32_1 = arith.constant 0 : i32
    return %c0_i32, %c0_i32_0 : i32, i32
  }
  func.func @transform_6(%arg0: i32, %arg1: i32) -> (i32, i32) {
    %c0_i32 = arith.constant 0 : i32
    %c0_i32_0 = arith.constant 0 : i32
    %c0_i32_1 = arith.constant 0 : i32
    return %c0_i32, %c0_i32_0 : i32, i32
  }
  func.func @transform_7(%arg0: i32, %arg1: i32) -> (i32, i32, i32) {
    %c0_i32 = arith.constant 0 : i32
    %c0_i32_0 = arith.constant 0 : i32
    return %arg0, %c0_i32, %arg1 : i32, i32, i32
  }
}

</mosaic_0001>

<bundles_post_ra>
// kernel: tpu_custom_call.1
= control target key start
LH: loop header
LB: loop body
LE: loop exit
PB: predicated region body
PF: predicated region fallthrough
CT: control target
= control target key end

     0   :  { %s10987_s0 = inlined_call_operand.hbm [shape: f32[2,432,16], index: 0, kind: input, shape index: {}]   ;;  %s10988_s1 = inlined_call_operand.hbm [shape: f32[3,3,16,32], index: 1, kind: input, shape index: {}]   ;;  %s10989_s2 = inlined_call_operand.hbm [shape: f32[1,32], index: 2, kind: input, shape index: {}]   ;;  %s10990_s3 = inlined_call_operand.hbm [shape: f32[1,32], index: 3, kind: input, shape index: {}]   ;;  %s10991_s4 = inlined_call_operand.hbm [shape: f32[32,32], index: 4, kind: input, shape index: {}]   ;;  %s10992_s5 = inlined_call_operand.hbm [shape: f32[32,32], index: 5, kind: input, shape index: {}]   ;;  %s10993_s6 = inlined_call_operand.hbm [shape: f32[384,1], index: 6, kind: input, shape index: {}]   ;;  %s10994_s7 = inlined_call_operand.hbm [shape: f32[2,384,32], index: 7, kind: output, shape index: {}]  }
   0x1   :  { %11127 = sst [smem:[#allocation85_spill]] %s10988_s1 }
   0x2   :  { %11128 = sst [smem:[#allocation86_spill]] %s10989_s2 }
   0x3   :  { %11129 = sst [smem:[#allocation87_spill]] %s10994_s7 }
   0x4   :  { %12 = vsyncpa [#allocation3], 0 }
   0x5   :  { %14 = vsyncpa [#allocation3 + $0x1], 0 }
   0x6   :  { %15 = vsyncpa [#allocation6], 0 }
   0x7   :  { %16 = vsyncpa [#allocation9], 0 }
   0x8   :  { %17 = vsyncpa [#allocation12], 0 }
   0x9   :  { %18 = vsyncpa [#allocation4], 0 }
   0xa   :  { %20 = vsyncpa [#allocation4 + $0x1], 0  ;;  %s7922_s24 = smov 0   ;;  %s7924_s25 = smov 0  }
   0xb   :  { %s7926_s26 = smov 0   ;;  %s7928_s27 = smov 0  }
   0xc   :  { %s7930_s28 = smov 0   ;;  %s7932_s29 = smov 0  }
   0xd LB: > { %s10995_s30 = sadd.s32 4294967295, %s7864_s29   ;;  %p5381_p0 = scmp.ge.s32.totalorder %s7864_s29, 1  ;;  %s7864_s29 = sphi %s7932_s29, %s26_s29   ;;  %s7860_s28 = sphi %s7930_s28, %s11382_s28   ;;  %s7856_s27 = sphi %s7928_s27, %s11381_s27   ;;  %s7852_s26 = sphi %s7926_s26, %s11380_s26   ;;  %s7848_s25 = sphi %s7924_s25, %s11379_s25   ;;  %s7844_s24 = sphi %s7922_s24, %s11378_s24  }
   0xe   : > { %p7956_p1 = scmp.eq.s32.totalorder %s10995_s30, 0  ;;  %p238_p2 = scmp.lt.s32.totalorder %s7864_s29, 3 }
   0xf   : > { %s7866_s10 = smov [#allocation5]   ;;  %s7867_s13 = smov [#allocation8]  }
  0x10   : > { %s11130_s8 = scalar_select %p7956_p1, 1, 0 }
  0x11   : > { %p7961_p3 = pnand %p5381_p0, %p238_p2  ;;  %s252_s11 = sshll.u32 %s7866_s10, 4  ;;  %s7965_s11 = int_to_ptr.vmem [resolvable:$true] %s252_s11 }
  0x12   : > { %s281_s14 = sshll.u32 %s7867_s13, 4  ;;  %s7868_s15 = smov [#allocation11]   ;;  %s7976_s14 = int_to_ptr.vmem [resolvable:$true] %s281_s14 }
  0x13   : > { %s11131_s9 = scalar_select %p7961_p3, 1, 0 }
  0x14   : > { %p7417_p4 = pneg %p7961_p3  ;;  %s7978_s16 = sshll.u32 %s7868_s15, 4  ;;  %s305_s16 = int_to_ptr.vmem [resolvable:$true] %s7978_s16 }
  0x15   : > { %s11133_s1 = sld [smem:[#allocation85_spill]] }
  0x16   : > { %p7972_p6 = pnand %p7417_p4, %p7956_p1 }
  0x18   : > { %p7988_p8 = pneg %p7972_p6 }
  0x1b   : > { %s7572_s19 = scalar_lea.hbm %s11133_s1, 2304 }
  0x1c   : > { %p7573_p7 = scmp.ne.s32.totalorder %s11133_s1, %s7572_s19  ;;  %p7579_p11 = scmp.lt.u32.totalorder %s7572_s19, %s11133_s1 }
  0x1e   : > { %p7575_p9 = pnand %p7988_p8, %p7573_p7 }
  0x20   : > { %p7576_p10 = pneg %p7575_p9 }
  0x22   : > { %p7581_p12 = pnand %p7579_p11, %p7576_p10 }
  0x24   : > { %7584 = shalt.err (!%p7581_p12)
}
  0x25   : > { %s7585_s13 = scalar_lea.vmem %s7965_s11, 2304  ;;  %p7593_p4 = scmp.lt.s32.totalorder %s7965_s11, %s7965_s11 }
  0x26   : > { %p7586_p13 = scmp.ne.s32.totalorder %s7965_s11, %s7585_s13  ;;  %p7594_p5 = scmp.lt.s32.totalorder %s7585_s13, %s7585_s13 }
  0x28   : > { %p7588_p0 = pnand %p7586_p13, %p7988_p8  ;;  %p7595_p7 = por %p7594_p5, %p7593_p4 }
  0x2a   : > { %p7589_p2 = pneg %p7588_p0 }
  0x2c   : > { %p7596_p9 = pnand %p7595_p7, %p7589_p2 }
  0x2e   : > { %7599 = shalt.err (!%p7596_p9)
}
  0x2f   : > { %s11000_s15 = smov 128   ;;  %s11001_s17 = smov 8  }
  0x30   : > { %7420 = dma.hbm_to_vmem [thread:$0]  (!%p7972_p6), %s11133_s1, 2304, %s7965_s11, [#allocation6], %s11000_s15, %s11000_s15, %s11001_s17  }
  0x31   : > { %s7600_s23 = scalar_lea.hbm %s10990_s3, 16 }
  0x32   : > { %p7601_p5 = scmp.ne.s32.totalorder %s10990_s3, %s7600_s23  ;;  %p7607_p12 = scmp.lt.u32.totalorder %s7600_s23, %s10990_s3 }
  0x34   : > { %p7603_p10 = pnand %p7601_p5, %p7988_p8 }
  0x36   : > { %p7604_p11 = pneg %p7603_p10 }
  0x38   : > { %p7609_p13 = pnand %p7607_p12, %p7604_p11 }
  0x3a   : > { %7612 = shalt.err (!%p7609_p13)
}
  0x3b   : > { %s7613_s11 = scalar_lea.vmem %s7976_s14, 16  ;;  %s7620_s18 = scalar_lea.vmem %s7976_s14, 32 }
  0x3c   : > { %p7614_p0 = scmp.ne.s32.totalorder %s7976_s14, %s7613_s11  ;;  %p7621_p7 = scmp.lt.s32.totalorder %s7976_s14, %s7976_s14 }
  0x3d   : > { %p7622_p9 = scmp.lt.s32.totalorder %s7620_s18, %s7613_s11 }
  0x3e   : > { %p7616_p2 = pnand %p7614_p0, %p7988_p8 }
  0x3f   : > { %p7623_p5 = por %p7622_p9, %p7621_p7 }
  0x40   : > { %p7617_p4 = pneg %p7616_p2 }
  0x42   : > { %p7624_p10 = pnand %p7623_p5, %p7617_p4 }
  0x44   : > { %7627 = shalt.err (!%p7624_p10)
}
  0x45   : > { %7426 = dma.hbm_to_vmem [thread:$0]  (!%p7972_p6), %s10990_s3, 16, %s7976_s14, [#allocation9]  }
  0x46   : > { %s7628_s21 = scalar_lea.hbm %s10992_s5, 512 }
  0x47   : > { %p7629_p11 = scmp.ne.s32.totalorder %s10992_s5, %s7628_s21  ;;  %p7635_p0 = scmp.lt.u32.totalorder %s7628_s21, %s10992_s5 }
  0x49   : > { %p7631_p12 = pnand %p7629_p11, %p7988_p8 }
  0x4b   : > { %p7632_p13 = pneg %p7631_p12 }
  0x4d   : > { %p7637_p2 = pnand %p7635_p0, %p7632_p13 }
  0x4f   : > { %7640 = shalt.err (!%p7637_p2)
}
  0x50   : > { %s7641_s18 = scalar_lea.vmem %s305_s16, 512  ;;  %p7649_p5 = scmp.lt.s32.totalorder %s305_s16, %s305_s16 }
  0x51   : > { %p7642_p4 = scmp.ne.s32.totalorder %s305_s16, %s7641_s18  ;;  %p7650_p10 = scmp.lt.s32.totalorder %s7641_s18, %s7641_s18 }
  0x53   : > { %p7644_p7 = pnand %p7642_p4, %p7988_p8  ;;  %p7651_p3 = por %p7650_p10, %p7649_p5 }
  0x55   : > { %p7645_p9 = pneg %p7644_p7 }
  0x57   : > { %p7652_p1 = pnand %p7651_p3, %p7645_p9 }
  0x59   : > { %7655 = shalt.err (!%p7652_p1)
}
  0x5a   : > { %7432 = dma.hbm_to_vmem [thread:$0]  (!%p7972_p6), %s10992_s5, 512, %s305_s16, [#allocation12], %s11000_s15, %s11000_s15, %s11001_s17  }
  0x5b   : > { %s7871_s30 = smov [#allocation7]   ;;  %s7872_s20 = smov [#allocation10]  }
  0x5c   : > { %s268_s19 = sshll.u32 %s7871_s30, 4  ;;  %s291_s21 = sshll.u32 %s7872_s20, 4  ;;  %s269_s19 = int_to_ptr.vmem [resolvable:$true] %s268_s19  ;;  %s292_s21 = int_to_ptr.vmem [resolvable:$true] %s291_s21 }
  0x5d   : > { %s11135_s2 = sld [smem:[#allocation86_spill]] }
  0x63   : > { %s7656_s13 = scalar_lea.hbm %s11135_s2, 16 }
  0x64   : > { %p7657_p1 = scmp.ne.s32.totalorder %s11135_s2, %s7656_s13  ;;  %p7663_p12 = scmp.lt.u32.totalorder %s7656_s13, %s11135_s2 }
  0x66   : > { %p7659_p3 = pnand %p7657_p1, %p7988_p8 }
  0x68   : > { %p7660_p11 = pneg %p7659_p3 }
  0x6a   : > { %p7665_p13 = pnand %p7663_p12, %p7660_p11 }
  0x6c   : > { %7668 = shalt.err (!%p7665_p13)
}
  0x6d   : > { %s7669_s16 = scalar_lea.vmem %s269_s19, 16  ;;  %s7676_s7 = scalar_lea.vmem %s269_s19, 32 }
  0x6e   : > { %p7670_p0 = scmp.ne.s32.totalorder %s269_s19, %s7669_s16  ;;  %p7677_p7 = scmp.lt.s32.totalorder %s269_s19, %s269_s19 }
  0x6f   : > { %p7678_p9 = scmp.lt.s32.totalorder %s7676_s7, %s7669_s16 }
  0x70   : > { %p7672_p2 = pnand %p7670_p0, %p7988_p8 }
  0x71   : > { %p7679_p5 = por %p7678_p9, %p7677_p7 }
  0x72   : > { %p7673_p4 = pneg %p7672_p2 }
  0x74   : > { %p7680_p10 = pnand %p7679_p5, %p7673_p4 }
  0x76   : > { %7683 = shalt.err (!%p7680_p10)
}
  0x77   : > { %7423 = dma.hbm_to_vmem [thread:$0]  (!%p7972_p6), %s11135_s2, 16, %s269_s19, [#allocation6]  }
  0x78   : > { %s7684_s10 = scalar_lea.hbm %s10991_s4, 512 }
  0x79   : > { %p7685_p1 = scmp.ne.s32.totalorder %s10991_s4, %s7684_s10  ;;  %p7691_p12 = scmp.lt.u32.totalorder %s7684_s10, %s10991_s4 }
  0x7b   : > { %p7687_p3 = pnand %p7685_p1, %p7988_p8 }
  0x7d   : > { %p7688_p11 = pneg %p7687_p3 }
  0x7f   : > { %p7693_p13 = pnand %p7691_p12, %p7688_p11 }
  0x81   : > { %7696 = shalt.err (!%p7693_p13)
}
  0x82   : > { %s7697_s16 = scalar_lea.vmem %s292_s21, 512  ;;  %p7705_p7 = scmp.lt.s32.totalorder %s292_s21, %s292_s21 }
  0x83   : > { %p7698_p0 = scmp.ne.s32.totalorder %s292_s21, %s7697_s16  ;;  %p7706_p9 = scmp.lt.s32.totalorder %s7697_s16, %s7697_s16 }
  0x85   : > { %p7700_p2 = pnand %p7698_p0, %p7988_p8  ;;  %p7707_p5 = por %p7706_p9, %p7705_p7 }
  0x87   : > { %p7701_p4 = pneg %p7700_p2 }
  0x89   : > { %p7708_p10 = pnand %p7707_p5, %p7701_p4 }
  0x8b   : > { %7711 = shalt.err (!%p7708_p10)
}
  0x8c   : > { %7429 = dma.hbm_to_vmem [thread:$0]  (!%p7972_p6), %s10991_s4, 512, %s292_s21, [#allocation9], %s11000_s15, %s11000_s15, %s11001_s17  }
  0x8d   : > { %s7873_s30 = smov [#allocation13]   ;;  %s7712_s10 = scalar_lea.hbm %s10993_s6, 6144 }
  0x8e   : > { %s317_s20 = sshll.u32 %s7873_s30, 4  ;;  %p7713_p1 = scmp.ne.s32.totalorder %s10993_s6, %s7712_s10  ;;  %s318_s20 = int_to_ptr.vmem [resolvable:$true] %s317_s20 }
  0x8f   : > { %p7719_p12 = scmp.lt.u32.totalorder %s7712_s10, %s10993_s6 }
  0x90   : > { %p7715_p3 = pnand %p7713_p1, %p7988_p8 }
  0x92   : > { %p7716_p11 = pneg %p7715_p3 }
  0x94   : > { %p7721_p13 = pnand %p7719_p12, %p7716_p11 }
  0x96   : > { %7724 = shalt.err (!%p7721_p13)
}
  0x97   : > { %s7725_s21 = scalar_lea.vmem %s318_s20, 6144  ;;  %p7733_p7 = scmp.lt.s32.totalorder %s318_s20, %s318_s20 }
  0x98   : > { %p7726_p0 = scmp.ne.s32.totalorder %s318_s20, %s7725_s21  ;;  %p7734_p9 = scmp.lt.s32.totalorder %s7725_s21, %s7725_s21 }
  0x9a   : > { %p7728_p2 = pnand %p7726_p0, %p7988_p8  ;;  %p7735_p5 = por %p7734_p9, %p7733_p7 }
  0x9c   : > { %p7729_p4 = pneg %p7728_p2 }
  0x9e   : > { %p7736_p10 = pnand %p7735_p5, %p7729_p4 }
  0xa0   : > { %7739 = shalt.err (!%p7736_p10)
}
  0xa1   : > { %7435 = dma.hbm_to_vmem [thread:$0]  (!%p7972_p6), %s10993_s6, 6144, %s318_s20, [#allocation12], %s11000_s15, %s11000_s15, %s11001_s17  }
  0xa2   : > { %s5380_s12 = sadd.s32 4294967294, %s7864_s29   ;;  %s38_s22 = sadd.s32 1, %s7860_s28 }
  0xa3   : > { %p40_p8 = scmp.ge.s32.totalorder %s38_s22, 2  ;;  %s45_s7 = sadd.s32 1, %s7852_s26 }
  0xa4   : > { %p52_p1 = scmp.ne.s32.totalorder %s7852_s26, %s7848_s25  ;;  %p53_p3 = scmp.eq.s32.totalorder %s7864_s29, 0 }
  0xa5   : > { %s11384_s22 = smov (%p40_p8, %s38_s22), 0  ;;  %p58_p12 = scmp.ne.s32.totalorder %s7848_s25, %s7844_s24 }
  0xa6   : > { %p8126_p11 = por %p53_p3, %p52_p1  ;;  %s42_s20 = ssub.s32 %s7860_s28, %s11384_s22 }
  0xa7   : > { %s11137_s1 = sadd.s32 4294967295, %s7864_s29   ;;  %p43_p13 = scmp.eq.s32.totalorder %s42_s20, 0 }
  0xa8   : > { %p225_p6 = scmp.eq.s32.totalorder %s11137_s1, 1  ;;  %p11138_p0 = scmp.ne.s32.totalorder %s11130_s8, 0 }
  0xa9   : > { %p231_p7 = scmp.eq.s32.totalorder %s5380_s12, 1  ;;  %p7450_p5 = scmp.lt.s32.totalorder %s7864_s29, 2 }
  0xaa   : > { %p8138_p2 = por %p11138_p0, %p58_p12  ;;  %p8142_p4 = por %p225_p6, %p52_p1 }
  0xab   : > { %s8147_s13 = scalar_select %p43_p13, %s7852_s26, %s45_s7  }
  0xac   : > { %s11140_s10 = scalar_select %p8142_p4, 1, 0 }
  0xad   : > { %p8149_p9 = por %p231_p7, %p58_p12  ;;  %s331_s18 = sand.u32 1, %s7852_s26  }
  0xae   : > { %s7385_s14 = smul.u32 6912, %s7860_s28  ;;  %p8158_p10 = pnand %p7450_p5, %p8126_p11 }
  0xaf   : > { %s11141_s11 = scalar_select %p8149_p9, 1, 0 }
  0xb0   : > { %s7384_s21 = smul.u32 432, %s331_s18  ;;  %s8165_s12 = scalar_lea.hbm %s10987_s0, %s7385_s14 }
  0xb1   : > { %s8169_s30 = scalar_lea.sflag [#allocation3], %s331_s18  ;;  %s7740_s15 = scalar_lea.hbm %s8165_s12, 6912 }
  0xb2   : > { %s335_s7 = scalar_lea.vmem [#allocation2], %s7384_s21  ;;  %p7741_p8 = scmp.ne.s32.totalorder %s8165_s12, %s7740_s15 }
  0xb3   : > { %s342_s1 = sshll.u32 %s335_s7, 4  ;;  %p7742_p1 = pneg %p8158_p10  ;;  %s8167_s1 = int_to_ptr.vmem [resolvable:$true] %s342_s1 }
  0xb4   : > { %s7745_s20 = scalar_lea.hbm %s10987_s0, 13824  ;;  %p7746_p12 = scmp.lt.u32.totalorder %s8165_s12, %s10987_s0 }
  0xb5   : > { %p7743_p3 = pnand %p7742_p1, %p7741_p8  ;;  %p7747_p6 = scmp.lt.u32.totalorder %s7745_s20, %s7740_s15 }
  0xb6   : > { %p7749_p0 = scmp.lt.u32.totalorder %s7740_s15, %s8165_s12 }
  0xb7   : > { %p7744_p11 = pneg %p7743_p3  ;;  %p7748_p13 = por %p7747_p6, %p7746_p12 }
  0xb9   : > { %p7750_p7 = por %p7749_p0, %p7748_p13 }
  0xbb   : > { %p7751_p5 = pnand %p7750_p7, %p7744_p11 }
  0xbd   : > { %7754 = shalt.err (!%p7751_p5)
}
  0xbe   : > { %s7755_s18 = scalar_lea.vmem %s8167_s1, 6912  ;;  %s7874_s21 = smov [#allocation2]  }
  0xbf   : > { %p7756_p8 = scmp.ne.s32.totalorder %s8167_s1, %s7755_s18  ;;  %s7760_s7 = sshll.u32 %s7874_s21, 4  ;;  %s7761_s7 = int_to_ptr.vmem [resolvable:$false] %s7760_s7 }
  0xc0   : > { %s7762_s2 = scalar_lea.vmem %s7761_s7, 13824  ;;  %p7763_p4 = scmp.lt.s32.totalorder %s8167_s1, %s7761_s7 }
  0xc1   : > { %p7758_p3 = pnand %p7756_p8, %p7742_p1  ;;  %p7764_p12 = scmp.lt.s32.totalorder %s7762_s2, %s7755_s18 }
  0xc3   : > { %p7759_p9 = pneg %p7758_p3  ;;  %p7765_p6 = por %p7764_p12, %p7763_p4 }
  0xc5   : > { %p7766_p13 = pnand %p7765_p6, %p7759_p9 }
  0xc7   : > { %7769 = shalt.err (!%p7766_p13)
}
  0xc8   : > { %s11143_s15 = smov 8   ;;  %s11144_s17 = smov 128  }
  0xc9   : > { %7439 = dma.hbm_to_vmem [thread:$0]  (!%p8158_p10), %s8165_s12, 6912, %s8167_s1, %s8169_s30, %s11144_s17, %s11144_s17, %s11143_s15  }
  0xca   : > { %p11145_p1 = scmp.ne.s32.totalorder %s11131_s9, 0 }
  0xcc   : > { %354 = sbr.rel (%p11145_p1) target bundleno = 1975 (0x7b7), region = 48 }
  0xd3   : > { %s8203_s14 = sand.u32 1, %s7848_s25  }
  0xd4   : > { %s7386_s19 = smul.u32 432, %s8203_s14  ;;  %s357_s20 = scalar_lea.sflag [#allocation3], %s8203_s14 }
  0xd6   : > { %s8207_s18 = scalar_lea.vmem [#allocation2], %s7386_s19 }
  0xd7   : > { %7823 = dma.done.wait (%p8138_p2), %s357_s20, 6912  }
  0xd8   : > { %7825 = vsyncadd (%p8138_p2), %s357_s20, 4294960384  ;;  %p11146_p4 = scmp.ne.s32.totalorder %s11130_s8, 0 }
  0xda   : > { %7827 = dma.done.wait (%p11146_p4), [#allocation6], 2320  }
  0xdb   : > { %7829 = vsyncadd (%p11146_p4), [#allocation6], 4294964976 }
  0xdc   : > { %7831 = dma.done.wait (%p11146_p4), [#allocation9], 528  }
  0xdd   : > { %7833 = vsyncadd (%p11146_p4), [#allocation9], 4294966768 }
  0xde   : > { %7835 = dma.done.wait (%p11146_p4), [#allocation12], 6656  }
  0xdf   : > { %7837 = vsyncadd (%p11146_p4), [#allocation12], 4294960640  ;;  %vm471_vm0 = vcmask 130048   ;;  %v469_v0 = vld [vmem:[#allocation5 + $0x30] sm:$0xff]  ;;  %v470_v1 = vld [vmem:[#allocation5 + $0x38] sm:$0xff]  ;;  %vm7877_vm2 = vmmov 0  }
  0xe0   : > { %v463_v2 = vld [vmem:[#allocation5] sm:$0xff]  ;;  %v7034_v3 = vpack.c.bf16 %v470_v1, %v469_v0  ;;  %v464_v4 = vld [vmem:[#allocation5 + $0x8] sm:$0xff]  ;;  %v2906_v19 = vld [vmem:[#allocation5 + $0x50] sm:$0xff]  ;;  %vm4355_vm4 = vcmask 261120   ;;  %s7387_s8 = smul.u32 384, %s8203_s14  ;;  %s11374_s30 = sld [smem:[#allocation87_spill]] }
  0xe1   : > { %v8226_v5 = vld [vmem:[%s8207_s18 + $0x18] sm:$0xff]  ;;  %v8229_v6 = vld [vmem:[%s8207_s18] sm:$0xff]  ;;  %v7038_v7 = vpack.c.bf16 %v464_v4, %v463_v2  ;;  %v8239_v12 = vld [vmem:[%s8207_s18 + $0x8] sm:$0xff]  ;;  %s7388_s23 = smul.u32 6144, %s7856_s27  ;;  %s5219_s27 = scalar_lea.sflag [#allocation4], %s8203_s14 }
  0xe2   : > { %6310 = vmatprep.mubr.msk.f32.mxu1 %vm471_vm0, %v8226_v5  ;;  %6386 = vmatprep.mubr.msk.f32.mxu0 %vm471_vm0, %v8229_v6  ;;  %v1284_v8 = vld [vmem:[#allocation5 + $0x60] sm:$0xff]  ;;  %v1285_v9 = vld [vmem:[#allocation5 + $0x68] sm:$0xff]  ;;  %v2907_v20 = vld [vmem:[#allocation5 + $0x58] sm:$0xff]  ;;  %s10793_s9 = scalar_lea.vmem [#allocation14], %s7387_s8  ;;  %p11375_p9 = scmp.ne.s32.totalorder %s11140_s10, 0 }
  0xe3   : > { %7035 = vmatprep.subr.bf16.mxu1 %v7034_v3  ;;  %7039 = vmatprep.subr.bf16.mxu0 %v7038_v7  ;;  %v8236_v10 = vld [vmem:[%s8207_s18 + $0x20] sm:$0xff]  ;;  %v7042_v11 = vpack.c.bf16 %v1285_v9, %v1284_v8  ;;  %v8242_v13 = vld [vmem:[%s8207_s18 + $0x28] sm:$0xff]  ;;  %v8245_v14 = vld [vmem:[%s8207_s18 + $0x10] sm:$0xff]  ;;  %v8277_v21 = vpack.c.bf16 %v2907_v20, %v2906_v19  ;;  %s5233_s16 = sshll.u32 %s10793_s9, 4  ;;  %s7879_s2 = smov [#allocation14]   ;;  %s10916_s16 = int_to_ptr.vmem [resolvable:$true] %s5233_s16 }
  0xe4   : > { %7037 = vmatpush3.bf16.msra.mxu1 %v7034_v3  ;;  %7041 = vmatpush3.bf16.msra.mxu0 %v7038_v7  ;;  %v8254_v15 = vld [vmem:[%s8207_s18 + $0x30] sm:$0xff]  ;;  %v8259_v16 = vld [vmem:[%s8207_s18 + $0x38] sm:$0xff]  ;;  %v8268_v17 = vld [vmem:[%s8207_s18 + $0x40] sm:$0xff]  ;;  %s7770_s7 = scalar_lea.vmem %s10916_s16, 6144  ;;  %s7774_s15 = sshll.u32 %s7879_s2, 4  ;;  %s7775_s15 = int_to_ptr.vmem [resolvable:$false] %s7774_s15 }
  0xe5   : > { %7094 = vmatprep.subr.bf16.mxu1 %v7038_v7  ;;  %7043 = vmatprep.subr.bf16.mxu0 %v7042_v11  ;;  %v8273_v18 = vld [vmem:[%s8207_s18 + $0x48] sm:$0xff]  ;;  %v8284_v22 = vld [vmem:[%s8207_s18 + $0x50] sm:$0xff]  ;;  %v8289_v23 = vld [vmem:[%s8207_s18 + $0x58] sm:$0xff]  ;;  %p7771_p2 = scmp.ne.s32.totalorder %s10916_s16, %s7770_s7  ;;  %s7776_s17 = scalar_lea.vmem %s7775_s15, 12288 }
  0xe6   : > { %v1787_v24 = vld [vmem:[#allocation5 + $0x40] sm:$0xff]  ;;  %v1788_v26 = vld [vmem:[#allocation5 + $0x48] sm:$0xff]  ;;  %v1785_v8 = vld [vmem:[#allocation5 + $0x18] sm:$0xff]  ;;  %s10914_s21 = scalar_lea.hbm %s11374_s30, %s7388_s23  ;;  %p7777_p0 = scmp.lt.s32.totalorder %s10916_s16, %s7775_s15 }
  0xe7   : > { %6311 = vmatmul.mubr.msk.f32.vlgmr.msra.gmra.mrb[0].mxu1 %vm471_vm0, %v8236_v10  ;;  %6387 = vmatmul.mubr.msk.f32.vlgmr.msra.gmra.mrb[0].mxu0 %vm471_vm0, %v8239_v12  ;;  %v8299_v25 = vld [vmem:[%s8207_s18 + $0x60] sm:$0xff]  ;;  %v8304_v27 = vld [vmem:[%s8207_s18 + $0x68] sm:$0xff]  ;;  %v8306_v28 = vpack.c.bf16 %v1788_v26, %v1787_v24  ;;  %v8316_v29 = vld [vmem:[%s8207_s18 + $0x70] sm:$0xff]  ;;  %p7772_p10 = pnand %p7771_p2, %p11375_p9  ;;  %p7778_p7 = scmp.lt.s32.totalorder %s7776_s17, %s7770_s7 }
  0xe8   : > { %6313 = vmatprep.mubr.msk.f32.mxu1 %vm471_vm0, %v8242_v13  ;;  %7045 = vmatpush3.bf16.msra.mxu0 %v7042_v11  ;;  %v8321_v30 = vld [vmem:[%s8207_s18 + $0x78] sm:$0xff]  ;;  %v8330_v31 = vld [vmem:[%s8207_s18 + $0x80] sm:$0xff]  ;;  %v8335_v32 = vld [vmem:[%s8207_s18 + $0x88] sm:$0xff] }
  0xe9   : > { %6389 = vmatprep.mubr.msk.f32.mxu0 %vm471_vm0, %v8245_v14  ;;  %7095 = vmatpush3.bf16.msra.mxu1 %v7038_v7  ;;  %v8344_v33 = vld [vmem:[%s8207_s18 + $0x90] sm:$0xff]  ;;  %v8349_v34 = vld [vmem:[%s8207_s18 + $0x98] sm:$0xff]  ;;  %v8358_v35 = vld [vmem:[%s8207_s18 + $0xa0] sm:$0xff]  ;;  %p7773_p11 = pneg %p7772_p10  ;;  %p7779_p5 = por %p7778_p7, %p7777_p0 }
  0xea   : > { %7059 = vmatprep.subr.bf16.mxu0 %v8277_v21  ;;  %7047 = vmatprep.subr.bf16.mxu1 %v8306_v28  ;;  %v8363_v36 = vld [vmem:[%s8207_s18 + $0xa8] sm:$0xff]  ;;  %v8372_v37 = vld [vmem:[%s8207_s18 + $0xb0] sm:$0xff]  ;;  %v8377_v38 = vld [vmem:[%s8207_s18 + $0xb8] sm:$0xff] }
  0xeb   : > { %6314 = vmatmul.mubr.msk.f32.gmra.mrb[2].mxu1 %vm471_vm0, %v8254_v15  ;;  %6390 = vmatmul.mubr.msk.f32.gmra.mrb[2].mxu0 %vm471_vm0, %v8226_v5  ;;  %v8386_v39 = vld [vmem:[%s8207_s18 + $0xc0] sm:$0xff]  ;;  %v8391_v40 = vld [vmem:[%s8207_s18 + $0xc8] sm:$0xff]  ;;  %v8400_v41 = vld [vmem:[%s8207_s18 + $0xd0] sm:$0xff]  ;;  %p7780_p8 = pnand %p7779_p5, %p7773_p11 }
  0xec   : > { %6316 = vmatprep.mubr.msk.f32.mxu1 %vm471_vm0, %v8259_v16  ;;  %6392 = vmatprep.mubr.msk.f32.mxu0 %vm471_vm0, %v8236_v10  ;;  %v8405_v42 = vld [vmem:[%s8207_s18 + $0xd8] sm:$0xff]  ;;  %v8414_v43 = vld [vmem:[%s8207_s18 + $0xe0] sm:$0xff]  ;;  %v8419_v44 = vld [vmem:[%s8207_s18 + $0xe8] sm:$0xff] }
  0xed   : > { %v8428_v45 = vld [vmem:[%s8207_s18 + $0xf0] sm:$0xff]  ;;  %v8433_v46 = vld [vmem:[%s8207_s18 + $0xf8] sm:$0xff]  ;;  %v8442_v47 = vld [vmem:[%s8207_s18 + $0x100] sm:$0xff] }
  0xee   : > { %v8447_v48 = vld [vmem:[%s8207_s18 + $0x108] sm:$0xff]  ;;  %v8456_v49 = vld [vmem:[%s8207_s18 + $0x110] sm:$0xff]  ;;  %v8461_v50 = vld [vmem:[%s8207_s18 + $0x118] sm:$0xff] }
  0xef   : > { %6317 = vmatmul.mubr.msk.f32.gmra.mrb[4].mxu1 %vm471_vm0, %v8268_v17  ;;  %6393 = vmatmul.mubr.msk.f32.gmra.mrb[4].mxu0 %vm471_vm0, %v8242_v13  ;;  %11147 = vst [vmem:[#allocation20_spill] sm:$0xff] %v8461_v50  ;;  %v2903_v51 = vld [vmem:[#allocation5 + $0x20] sm:$0xff]  ;;  %v2904_v52 = vld [vmem:[#allocation5 + $0x28] sm:$0xff]  ;;  %v1784_v7 = vld [vmem:[#allocation5 + $0x10] sm:$0xff] }
  0xf0   : > { %6319 = vmatprep.mubr.msk.f32.mxu1 %vm471_vm0, %v8273_v18  ;;  %6395 = vmatprep.mubr.msk.f32.mxu0 %vm471_vm0, %v8254_v15  ;;  %v8470_v53 = vld [vmem:[%s8207_s18 + $0x120] sm:$0xff]  ;;  %v8475_v54 = vld [vmem:[%s8207_s18 + $0x128] sm:$0xff]  ;;  %v8477_v55 = vpack.c.bf16 %v2904_v52, %v2903_v51  ;;  %v8486_v56 = vld [vmem:[%s8207_s18 + $0x130] sm:$0xff]  ;;  %v7050_v9 = vpack.c.bf16 %v1785_v8, %v1784_v7 }
  0xf1   : > { %11148 = vst [vmem:[#allocation21_spill] sm:$0xff] %v8470_v53  ;;  %11149 = vst [vmem:[#allocation22_spill] sm:$0xff] %v8475_v54  ;;  %v8492_v57 = vld [vmem:[%s8207_s18 + $0x138] sm:$0xff]  ;;  %v8502_v58 = vld [vmem:[%s8207_s18 + $0x140] sm:$0xff] }
  0xf2   : > { %11150 = vst [vmem:[#allocation23_spill] sm:$0xff] %v8486_v56  ;;  %11151 = vst [vmem:[#allocation24_spill] sm:$0xff] %v8492_v57  ;;  %v8507_v59 = vld [vmem:[%s8207_s18 + $0x148] sm:$0xff]  ;;  %v8516_v60 = vld [vmem:[%s8207_s18 + $0x150] sm:$0xff] }
  0xf3   : > { %6320 = vmatmul.mubr.msk.f32.gmra.mrb[6].mxu1 %vm471_vm0, %v8284_v22  ;;  %6396 = vmatmul.mubr.msk.f32.gmra.mrb[6].mxu0 %vm471_vm0, %v8259_v16  ;;  %11152 = vst [vmem:[#allocation25_spill] sm:$0xff] %v8502_v58  ;;  %11153 = vst [vmem:[#allocation26_spill] sm:$0xff] %v8507_v59  ;;  %v8521_v61 = vld [vmem:[%s8207_s18 + $0x158] sm:$0xff]  ;;  %v8530_v62 = vld [vmem:[%s8207_s18 + $0x160] sm:$0xff] }
  0xf4   : > { %6322 = vmatprep.mubr.msk.f32.mxu1 %vm471_vm0, %v8289_v23  ;;  %6398 = vmatprep.mubr.msk.f32.mxu0 %vm471_vm0, %v8268_v17  ;;  %11154 = vst [vmem:[#allocation27_spill] sm:$0xff] %v8516_v60  ;;  %11155 = vst [vmem:[#allocation28_spill] sm:$0xff] %v8521_v61  ;;  %v8535_v63 = vld [vmem:[%s8207_s18 + $0x168] sm:$0xff]  ;;  %v8544_v0 = vld [vmem:[%s8207_s18 + $0x170] sm:$0xff] }
  0xf5   : > { %11156 = vst [vmem:[#allocation29_spill] sm:$0xff] %v8530_v62  ;;  %11157 = vst [vmem:[#allocation30_spill] sm:$0xff] %v8535_v63  ;;  %v8549_v1 = vld [vmem:[%s8207_s18 + $0x178] sm:$0xff]  ;;  %v8558_v2 = vld [vmem:[%s8207_s18 + $0x180] sm:$0xff] }
  0xf6   : > { %11158 = vst [vmem:[#allocation31_spill] sm:$0xff] %v8544_v0  ;;  %11159 = vst [vmem:[#allocation32_spill] sm:$0xff] %v8549_v1  ;;  %v8563_v3 = vld [vmem:[%s8207_s18 + $0x188] sm:$0xff]  ;;  %v8572_v4 = vld [vmem:[%s8207_s18 + $0x190] sm:$0xff] }
  0xf7   : > { %6323 = vmatmul.mubr.msk.f32.gmra.mrb[8].mxu1 %vm471_vm0, %v8299_v25  ;;  %6399 = vmatmul.mubr.msk.f32.gmra.mrb[8].mxu0 %vm471_vm0, %v8273_v18  ;;  %v2400_v11 = vld [vmem:[#allocation5 + $0x70] sm:$0xff]  ;;  %v2401_v19 = vld [vmem:[#allocation5 + $0x78] sm:$0xff]  ;;  %v3520_v51 = vld [vmem:[#allocation5 + $0x88] sm:$0xff] }
  0xf8   : > { %6325 = vmatprep.mubr.msk.f32.mxu1 %vm471_vm0, %v8304_v27  ;;  %6401 = vmatprep.mubr.msk.f32.mxu0 %vm471_vm0, %v8284_v22  ;;  %v8649_v20 = vpack.c.bf16 %v2401_v19, %v2400_v11  ;;  %v8704_v24 = vld [vmem:[%s8207_s18 + $0x1a0] sm:$0xff]  ;;  %v8715_v26 = vld [vmem:[%s8207_s18 + $0x1a8] sm:$0xff] }
  0xf9   : > { %11161 = vst [vmem:[#allocation34_spill] sm:$0xff] %v8704_v24  ;;  %11162 = vst [vmem:[#allocation35_spill] sm:$0xff] %v8715_v26 }
  0xfb   : > { %6326 = vmatmul.mubr.msk.f32.gmra.mrb[10].mxu1 %vm471_vm0, %v8316_v29  ;;  %6402 = vmatmul.mubr.msk.f32.gmra.mrb[10].mxu0 %vm471_vm0, %v8289_v23 }
  0xfc   : > { %6328 = vmatprep.mubr.msk.f32.mxu1 %vm471_vm0, %v8321_v30  ;;  %6404 = vmatprep.mubr.msk.f32.mxu0 %vm471_vm0, %v8299_v25 }
  0xff   : > { %6329 = vmatmul.mubr.msk.f32.gmra.mrb[12].mxu1 %vm471_vm0, %v8330_v31  ;;  %6405 = vmatmul.mubr.msk.f32.gmra.mrb[12].mxu0 %vm471_vm0, %v8304_v27 }
 0x100   : > { %6331 = vmatprep.mubr.msk.f32.mxu1 %vm471_vm0, %v8335_v32  ;;  %6407 = vmatprep.mubr.msk.f32.mxu0 %vm471_vm0, %v8316_v29 }
 0x103   : > { %6332 = vmatmul.mubr.msk.f32.gmra.mrb[14].mxu1 %vm471_vm0, %v8344_v33  ;;  %6408 = vmatmul.mubr.msk.f32.gmra.mrb[14].mxu0 %vm471_vm0, %v8321_v30 }
 0x104   : > { %6334 = vmatprep.mubr.msk.f32.mxu1 %vm471_vm0, %v8349_v34  ;;  %6410 = vmatprep.mubr.msk.f32.mxu0 %vm471_vm0, %v8330_v31 }
 0x107   : > { %6335 = vmatmul.mubr.msk.f32.gmra.mrb[16].mxu1 %vm471_vm0, %v8358_v35  ;;  %6411 = vmatmul.mubr.msk.f32.gmra.mrb[16].mxu0 %vm471_vm0, %v8335_v32 }
 0x108   : > { %6337 = vmatprep.mubr.msk.f32.mxu1 %vm471_vm0, %v8363_v36  ;;  %6413 = vmatprep.mubr.msk.f32.mxu0 %vm471_vm0, %v8344_v33 }
 0x10b   : > { %6338 = vmatmul.mubr.msk.f32.gmra.mrb[18].mxu1 %vm471_vm0, %v8372_v37  ;;  %6414 = vmatmul.mubr.msk.f32.gmra.mrb[18].mxu0 %vm471_vm0, %v8349_v34 }
 0x10c   : > { %6340 = vmatprep.mubr.msk.f32.mxu1 %vm471_vm0, %v8377_v38  ;;  %6416 = vmatprep.mubr.msk.f32.mxu0 %vm471_vm0, %v8358_v35 }
 0x10f   : > { %6341 = vmatmul.mubr.msk.f32.gmra.mrb[20].mxu1 %vm471_vm0, %v8386_v39  ;;  %6417 = vmatmul.mubr.msk.f32.gmra.mrb[20].mxu0 %vm471_vm0, %v8363_v36 }
 0x110   : > { %6343 = vmatprep.mubr.msk.f32.mxu1 %vm471_vm0, %v8391_v40  ;;  %6419 = vmatprep.mubr.msk.f32.mxu0 %vm471_vm0, %v8372_v37 }
 0x113   : > { %6344 = vmatmul.mubr.msk.f32.gmra.mrb[22].mxu1 %vm471_vm0, %v8400_v41  ;;  %6420 = vmatmul.mubr.msk.f32.gmra.mrb[22].mxu0 %vm471_vm0, %v8377_v38 }
 0x114   : > { %6346 = vmatprep.mubr.msk.f32.mxu1 %vm471_vm0, %v8405_v42  ;;  %6422 = vmatprep.mubr.msk.f32.mxu0 %vm471_vm0, %v8386_v39 }
 0x117   : > { %6347 = vmatmul.mubr.msk.f32.gmra.mrb[24].mxu1 %vm471_vm0, %v8414_v43  ;;  %6423 = vmatmul.mubr.msk.f32.gmra.mrb[24].mxu0 %vm471_vm0, %v8391_v40 }
 0x118   : > { %6349 = vmatprep.mubr.msk.f32.mxu1 %vm471_vm0, %v8419_v44  ;;  %6425 = vmatprep.mubr.msk.f32.mxu0 %vm471_vm0, %v8400_v41 }
 0x11b   : > { %6350 = vmatmul.mubr.msk.f32.gmra.mrb[26].mxu1 %vm471_vm0, %v8428_v45  ;;  %6426 = vmatmul.mubr.msk.f32.gmra.mrb[26].mxu0 %vm471_vm0, %v8405_v42 }
 0x11c   : > { %6352 = vmatprep.mubr.msk.f32.mxu1 %vm471_vm0, %v8433_v46  ;;  %6428 = vmatprep.mubr.msk.f32.mxu0 %vm471_vm0, %v8414_v43 }
 0x11f   : > { %6353 = vmatmul.mubr.msk.f32.gmra.mrb[28].mxu1 %vm471_vm0, %v8442_v47  ;;  %6429 = vmatmul.mubr.msk.f32.gmra.mrb[28].mxu0 %vm471_vm0, %v8419_v44 }
 0x120   : > { %6355 = vmatprep.mubr.msk.f32.mxu1 %vm471_vm0, %v8447_v48  ;;  %6431 = vmatprep.mubr.msk.f32.mxu0 %vm471_vm0, %v8428_v45 }
 0x123   : > { %6356 = vmatmul.mubr.msk.f32.gmra.mrb[30].mxu1 %vm471_vm0, %v8456_v49  ;;  %6432 = vmatmul.mubr.msk.f32.gmra.mrb[30].mxu0 %vm471_vm0, %v8433_v46 }
 0x124   : > { %6358 = vmatprep.mubr.msk.f32.mxu1 %vm471_vm0, %v8461_v50  ;;  %6462 = vmatprep.mubr.msk.f32.mxu0 %vm471_vm0, %v8254_v15 }
 0x127   : > { %6359 = vmatmul.mubr.msk.f32.gmra.mrb[32].mxu1 %vm471_vm0, %v8470_v53  ;;  %6463 = vmatmul.mubr.msk.f32.vlgmr.msra.gmra.mrb[0].mxu0 %vm471_vm0, %v8259_v16 }
 0x128   : > { %6361 = vmatprep.mubr.msk.f32.mxu1 %vm471_vm0, %v8475_v54  ;;  %7061 = vmatpush3.bf16.msra.mxu0 %v8277_v21  ;;  %v8701_v21 = vld [vmem:[%s8207_s18 + $0x198] sm:$0xff] }
 0x129   : > { %6465 = vmatprep.mubr.msk.f32.mxu0 %vm471_vm0, %v8268_v17  ;;  %7063 = vmatprep.subr.bf16.mxu0 %v8477_v55  ;;  %11160 = vst [vmem:[#allocation33_spill] sm:$0xff] %v8701_v21 }
 0x12b   : > { %6362 = vmatmul.mubr.msk.f32.gmra.mrb[34].mxu1 %vm471_vm0, %v8486_v56  ;;  %6466 = vmatmul.mubr.msk.f32.gmra.mrb[2].mxu0 %vm471_vm0, %v8273_v18 }
 0x12c   : > { %6364 = vmatprep.mubr.msk.f32.mxu1 %vm471_vm0, %v8492_v57  ;;  %6468 = vmatprep.mubr.msk.f32.mxu0 %vm471_vm0, %v8284_v22 }
 0x12f   : > { %6365 = vmatmul.mubr.msk.f32.gmra.mrb[36].mxu1 %vm471_vm0, %v8502_v58  ;;  %6469 = vmatmul.mubr.msk.f32.gmra.mrb[4].mxu0 %vm471_vm0, %v8289_v23 }
 0x130   : > { %6367 = vmatprep.mubr.msk.f32.mxu1 %vm471_vm0, %v8507_v59  ;;  %6471 = vmatprep.mubr.msk.f32.mxu0 %vm471_vm0, %v8299_v25 }
 0x133   : > { %6368 = vmatmul.mubr.msk.f32.gmra.mrb[38].mxu1 %vm471_vm0, %v8516_v60  ;;  %6472 = vmatmul.mubr.msk.f32.gmra.mrb[6].mxu0 %vm471_vm0, %v8304_v27 }
 0x134   : > { %6370 = vmatprep.mubr.msk.f32.mxu1 %vm471_vm0, %v8521_v61  ;;  %6474 = vmatprep.mubr.msk.f32.mxu0 %vm471_vm0, %v8316_v29 }
 0x137   : > { %6371 = vmatmul.mubr.msk.f32.gmra.mrb[40].mxu1 %vm471_vm0, %v8530_v62  ;;  %6475 = vmatmul.mubr.msk.f32.gmra.mrb[8].mxu0 %vm471_vm0, %v8321_v30 }
 0x138   : > { %6373 = vmatprep.mubr.msk.f32.mxu1 %vm471_vm0, %v8535_v63  ;;  %6477 = vmatprep.mubr.msk.f32.mxu0 %vm471_vm0, %v8330_v31 }
 0x13b   : > { %6374 = vmatmul.mubr.msk.f32.gmra.mrb[42].mxu1 %vm471_vm0, %v8544_v0  ;;  %6478 = vmatmul.mubr.msk.f32.gmra.mrb[10].mxu0 %vm471_vm0, %v8335_v32 }
 0x13c   : > { %6376 = vmatprep.mubr.msk.f32.mxu1 %vm471_vm0, %v8549_v1  ;;  %6480 = vmatprep.mubr.msk.f32.mxu0 %vm471_vm0, %v8344_v33 }
 0x13f   : > { %6377 = vmatmul.mubr.msk.f32.gmra.mrb[44].mxu1 %vm471_vm0, %v8558_v2  ;;  %6481 = vmatmul.mubr.msk.f32.gmra.mrb[12].mxu0 %vm471_vm0, %v8349_v34 }
 0x140   : > { %6379 = vmatprep.mubr.msk.f32.mxu1 %vm471_vm0, %v8563_v3  ;;  %6483 = vmatprep.mubr.msk.f32.mxu0 %vm471_vm0, %v8358_v35 }
 0x143   : > { %6380 = vmatmul.mubr.msk.f32.gmra.mrb[46].mxu1 %vm471_vm0, %v8572_v4  ;;  %6484 = vmatmul.mubr.msk.f32.gmra.mrb[14].mxu0 %vm471_vm0, %v8363_v36 }
 0x144   : > { %6434 = vmatprep.mubr.msk.f32.mxu1 %vm471_vm0, %v8442_v47  ;;  %6486 = vmatprep.mubr.msk.f32.mxu0 %vm471_vm0, %v8372_v37 }
 0x147   : > { %6435 = vmatmul.mubr.msk.f32.vlgmr.msra.gmra.mrb[32].mxu1 %vm471_vm0, %v8447_v48  ;;  %6487 = vmatmul.mubr.msk.f32.gmra.mrb[16].mxu0 %vm471_vm0, %v8377_v38 }
 0x148   : > { %6437 = vmatprep.mubr.msk.f32.mxu1 %vm471_vm0, %v8456_v49  ;;  %6489 = vmatprep.mubr.msk.f32.mxu0 %vm471_vm0, %v8386_v39 }
 0x149   : > { %7049 = vmatpush3.bf16.msra.mxu1 %v8306_v28  ;;  %v3519_v28 = vld [vmem:[#allocation5 + $0x80] sm:$0xff] }
 0x14a   : > { %7051 = vmatprep.subr.bf16.mxu1 %v7050_v9  ;;  %v8725_v52 = vpack.c.bf16 %v3520_v51, %v3519_v28  ;;  %v7875_v28 = vmov 0   ;;  %v4019_v51 = vld [vmem:[#allocation13] sm:$0xff] }
 0x14b   : > { %6438 = vmatmul.mubr.msk.f32.gmra.mrb[34].mxu1 %vm471_vm0, %v8461_v50  ;;  %6490 = vmatmul.mubr.msk.f32.gmra.mrb[18].mxu0 %vm471_vm0, %v8391_v40 }
 0x14c   : > { %6440 = vmatprep.mubr.msk.f32.mxu1 %vm471_vm0, %v8470_v53  ;;  %6492 = vmatprep.mubr.msk.f32.mxu0 %vm471_vm0, %v8400_v41 }
 0x14d   : > { %7520 = vset.pattern.permute.xlu0 %v7875_v28  ;;  %7521 = vset.pattern.permute.xlu1 %v7875_v28 }
 0x14e   : > { %4069 = vperm.xlu0 %7520, %v4019_v51  }
 0x14f   : > { %6441 = vmatmul.mubr.msk.f32.gmra.mrb[36].mxu1 %vm471_vm0, %v8475_v54  ;;  %6493 = vmatmul.mubr.msk.f32.gmra.mrb[20].mxu0 %vm471_vm0, %v8405_v42 }
 0x150   : > { %6443 = vmatprep.mubr.msk.f32.mxu1 %vm471_vm0, %v8486_v56  ;;  %6495 = vmatprep.mubr.msk.f32.mxu0 %vm471_vm0, %v8414_v43 }
 0x153   : > { %6444 = vmatmul.mubr.msk.f32.gmra.mrb[38].mxu1 %vm471_vm0, %v8492_v57  ;;  %6496 = vmatmul.mubr.msk.f32.gmra.mrb[22].mxu0 %vm471_vm0, %v8419_v44 }
 0x154   : > { %6446 = vmatprep.mubr.msk.f32.mxu1 %vm471_vm0, %v8502_v58  ;;  %6498 = vmatprep.mubr.msk.f32.mxu0 %vm471_vm0, %v8428_v45 }
 0x157   : > { %6447 = vmatmul.mubr.msk.f32.gmra.mrb[40].mxu1 %vm471_vm0, %v8507_v59  ;;  %6499 = vmatmul.mubr.msk.f32.gmra.mrb[24].mxu0 %vm471_vm0, %v8433_v46 }
 0x158   : > { %6449 = vmatprep.mubr.msk.f32.mxu1 %vm471_vm0, %v8516_v60  ;;  %6501 = vmatprep.mubr.msk.f32.mxu0 %vm471_vm0, %v8442_v47 }
 0x15b   : > { %6450 = vmatmul.mubr.msk.f32.gmra.mrb[42].mxu1 %vm471_vm0, %v8521_v61  ;;  %6502 = vmatmul.mubr.msk.f32.gmra.mrb[26].mxu0 %vm471_vm0, %v8447_v48 }
 0x15c   : > { %6452 = vmatprep.mubr.msk.f32.mxu1 %vm471_vm0, %v8530_v62  ;;  %6504 = vmatprep.mubr.msk.f32.mxu0 %vm471_vm0, %v8456_v49 }
 0x15f   : > { %6453 = vmatmul.mubr.msk.f32.gmra.mrb[44].mxu1 %vm471_vm0, %v8535_v63  ;;  %6505 = vmatmul.mubr.msk.f32.gmra.mrb[28].mxu0 %vm471_vm0, %v8461_v50 }
 0x160   : > { %6455 = vmatprep.mubr.msk.f32.mxu1 %vm471_vm0, %v8544_v0  ;;  %6507 = vmatprep.mubr.msk.f32.mxu0 %vm471_vm0, %v8470_v53 }
 0x163   : > { %6456 = vmatmul.mubr.msk.f32.gmra.mrb[46].mxu1 %vm471_vm0, %v8549_v1  ;;  %6508 = vmatmul.mubr.msk.f32.gmra.mrb[30].mxu0 %vm471_vm0, %v8475_v54 }
 0x164   : > { %6538 = vmatprep.mubr.msk.f32.mxu1 %vm471_vm0, %v8226_v5  ;;  %6510 = vmatprep.mubr.msk.f32.mxu0 %vm471_vm0, %v8486_v56 }
 0x167   : > { %6539 = vmatmul.mubr.msk.f32.vlgmr.msra.gmra.mrb[48].mxu1 %vm471_vm0, %v8236_v10  ;;  %6511 = vmatmul.mubr.msk.f32.gmra.mrb[32].mxu0 %vm471_vm0, %v8492_v57 }
 0x168   : > { %6541 = vmatprep.mubr.msk.f32.mxu1 %vm471_vm0, %v8242_v13  ;;  %6513 = vmatprep.mubr.msk.f32.mxu0 %vm471_vm0, %v8502_v58 }
 0x169   : > { %7053 = vmatpush3.bf16.msra.mxu1 %v7050_v9 }
 0x16a   : > { %7055 = vmatprep.subr.bf16.mxu1 %v8649_v20 }
 0x16b   : > { %6542 = vmatmul.mubr.msk.f32.gmra.mrb[50].mxu1 %vm471_vm0, %v8254_v15  ;;  %6514 = vmatmul.mubr.msk.f32.gmra.mrb[34].mxu0 %vm471_vm0, %v8507_v59 }
 0x16c   : > { %6544 = vmatprep.mubr.msk.f32.mxu1 %vm471_vm0, %v8259_v16  ;;  %6516 = vmatprep.mubr.msk.f32.mxu0 %vm471_vm0, %v8516_v60 }
 0x16f   : > { %6545 = vmatmul.mubr.msk.f32.gmra.mrb[52].mxu1 %vm471_vm0, %v8268_v17  ;;  %6517 = vmatmul.mubr.msk.f32.gmra.mrb[36].mxu0 %vm471_vm0, %v8521_v61 }
 0x170   : > { %6547 = vmatprep.mubr.msk.f32.mxu1 %vm471_vm0, %v8273_v18  ;;  %6519 = vmatprep.mubr.msk.f32.mxu0 %vm471_vm0, %v8530_v62 }
 0x173   : > { %6548 = vmatmul.mubr.msk.f32.gmra.mrb[54].mxu1 %vm471_vm0, %v8284_v22  ;;  %6520 = vmatmul.mubr.msk.f32.gmra.mrb[38].mxu0 %vm471_vm0, %v8535_v63 }
 0x174   : > { %6550 = vmatprep.mubr.msk.f32.mxu1 %vm471_vm0, %v8289_v23  ;;  %6522 = vmatprep.mubr.msk.f32.mxu0 %vm471_vm0, %v8544_v0 }
 0x177   : > { %6551 = vmatmul.mubr.msk.f32.gmra.mrb[56].mxu1 %vm471_vm0, %v8299_v25  ;;  %6523 = vmatmul.mubr.msk.f32.gmra.mrb[40].mxu0 %vm471_vm0, %v8549_v1 }
 0x178   : > { %6553 = vmatprep.mubr.msk.f32.mxu1 %vm471_vm0, %v8304_v27  ;;  %6525 = vmatprep.mubr.msk.f32.mxu0 %vm471_vm0, %v8558_v2 }
 0x17b   : > { %6554 = vmatmul.mubr.msk.f32.gmra.mrb[58].mxu1 %vm471_vm0, %v8316_v29  ;;  %6526 = vmatmul.mubr.msk.f32.gmra.mrb[42].mxu0 %vm471_vm0, %v8563_v3 }
 0x17c   : > { %6556 = vmatprep.mubr.msk.f32.mxu1 %vm471_vm0, %v8321_v30  ;;  %6528 = vmatprep.mubr.msk.f32.mxu0 %vm471_vm0, %v8572_v4 }
 0x17f   : > { %6557 = vmatmul.mubr.msk.f32.gmra.mrb[60].mxu1 %vm471_vm0, %v8330_v31  ;;  %6529 = vmatmul.mubr.msk.f32.gmra.mrb[44].mxu0 %vm471_vm0, %v8701_v21  ;;  %v4021_v21 = vld [vmem:[#allocation13 + $0x10] sm:$0xff] }
 0x180   : > { %6559 = vmatprep.mubr.msk.f32.mxu1 %vm471_vm0, %v8335_v32  ;;  %6531 = vmatprep.mubr.msk.f32.mxu0 %vm471_vm0, %v8704_v24 }
 0x181   : > { %4079 = vperm.xlu1 %7521, %v4021_v21   ;;  %v4024_v21 = vld [vmem:[#allocation13 + $0x28] sm:$0xff] }
 0x183   : > { %6560 = vmatmul.mubr.msk.f32.gmra.mrb[62].mxu1 %vm471_vm0, %v8344_v33  ;;  %6532 = vmatmul.mubr.msk.f32.gmra.mrb[46].mxu0 %vm471_vm0, %v8715_v26 }
 0x184   : > { %6562 = vmatprep.mubr.msk.f32.mxu1 %vm471_vm0, %v8349_v34  ;;  %6766 = vmatprep.mubr.msk.f32.mxu0 %vm471_vm0, %v8226_v5 }
 0x187   : > { %6563 = vmatmul.mubr.msk.f32.gmra.mrb[64].mxu1 %vm471_vm0, %v8358_v35  ;;  %6767 = vmatmul.mubr.msk.f32.vlgmr.msra.gmra.mrb[48].mxu0 %vm471_vm0, %v8236_v10 }
 0x188   : > { %6565 = vmatprep.mubr.msk.f32.mxu1 %vm471_vm0, %v8363_v36  ;;  %7065 = vmatpush3.bf16.msra.mxu0 %v8477_v55 }
 0x189   : > { %6769 = vmatprep.mubr.msk.f32.mxu0 %vm471_vm0, %v8242_v13  ;;  %7067 = vmatprep.subr.bf16.mxu0 %v8725_v52 }
 0x18b   : > { %6566 = vmatmul.mubr.msk.f32.gmra.mrb[66].mxu1 %vm471_vm0, %v8372_v37  ;;  %6770 = vmatmul.mubr.msk.f32.gmra.mrb[50].mxu0 %vm471_vm0, %v8254_v15 }
 0x18c   : > { %6568 = vmatprep.mubr.msk.f32.mxu1 %vm471_vm0, %v8377_v38  ;;  %6772 = vmatprep.mubr.msk.f32.mxu0 %vm471_vm0, %v8259_v16 }
 0x18f   : > { %6569 = vmatmul.mubr.msk.f32.gmra.mrb[68].mxu1 %vm471_vm0, %v8386_v39  ;;  %6773 = vmatmul.mubr.msk.f32.gmra.mrb[52].mxu0 %vm471_vm0, %v8268_v17 }
 0x190   : > { %6571 = vmatprep.mubr.msk.f32.mxu1 %vm471_vm0, %v8391_v40  ;;  %6775 = vmatprep.mubr.msk.f32.mxu0 %vm471_vm0, %v8273_v18 }
 0x193   : > { %6572 = vmatmul.mubr.msk.f32.gmra.mrb[70].mxu1 %vm471_vm0, %v8400_v41  ;;  %6776 = vmatmul.mubr.msk.f32.gmra.mrb[54].mxu0 %vm471_vm0, %v8284_v22 }
 0x194   : > { %6574 = vmatprep.mubr.msk.f32.mxu1 %vm471_vm0, %v8405_v42  ;;  %6778 = vmatprep.mubr.msk.f32.mxu0 %vm471_vm0, %v8289_v23 }
 0x197   : > { %6575 = vmatmul.mubr.msk.f32.gmra.mrb[72].mxu1 %vm471_vm0, %v8414_v43  ;;  %6779 = vmatmul.mubr.msk.f32.gmra.mrb[56].mxu0 %vm471_vm0, %v8299_v25 }
 0x198   : > { %6577 = vmatprep.mubr.msk.f32.mxu1 %vm471_vm0, %v8419_v44  ;;  %6781 = vmatprep.mubr.msk.f32.mxu0 %vm471_vm0, %v8304_v27 }
 0x19b   : > { %6578 = vmatmul.mubr.msk.f32.gmra.mrb[74].mxu1 %vm471_vm0, %v8428_v45  ;;  %6782 = vmatmul.mubr.msk.f32.gmra.mrb[58].mxu0 %vm471_vm0, %v8316_v29 }
 0x19c   : > { %6580 = vmatprep.mubr.msk.f32.mxu1 %vm471_vm0, %v8433_v46  ;;  %6784 = vmatprep.mubr.msk.f32.mxu0 %vm471_vm0, %v8321_v30 }
 0x19f   : > { %6581 = vmatmul.mubr.msk.f32.gmra.mrb[76].mxu1 %vm471_vm0, %v8442_v47  ;;  %6785 = vmatmul.mubr.msk.f32.gmra.mrb[60].mxu0 %vm471_vm0, %v8330_v31 }
 0x1a0   : > { %6583 = vmatprep.mubr.msk.f32.mxu1 %vm471_vm0, %v8447_v48  ;;  %6787 = vmatprep.mubr.msk.f32.mxu0 %vm471_vm0, %v8335_v32 }
 0x1a3   : > { %6584 = vmatmul.mubr.msk.f32.gmra.mrb[78].mxu1 %vm471_vm0, %v8456_v49  ;;  %6788 = vmatmul.mubr.msk.f32.gmra.mrb[62].mxu0 %vm471_vm0, %v8344_v33 }
 0x1a4   : > { %6586 = vmatprep.mubr.msk.f32.mxu1 %vm471_vm0, %v8461_v50  ;;  %6790 = vmatprep.mubr.msk.f32.mxu0 %vm471_vm0, %v8349_v34 }
 0x1a7   : > { %6587 = vmatmul.mubr.msk.f32.gmra.mrb[80].mxu1 %vm471_vm0, %v8470_v53  ;;  %6791 = vmatmul.mubr.msk.f32.gmra.mrb[64].mxu0 %vm471_vm0, %v8358_v35 }
 0x1a8   : > { %6589 = vmatprep.mubr.msk.f32.mxu1 %vm471_vm0, %v8475_v54  ;;  %6793 = vmatprep.mubr.msk.f32.mxu0 %vm471_vm0, %v8363_v36 }
 0x1ab   : > { %6590 = vmatmul.mubr.msk.f32.gmra.mrb[82].mxu1 %vm471_vm0, %v8486_v56  ;;  %6794 = vmatmul.mubr.msk.f32.gmra.mrb[66].mxu0 %vm471_vm0, %v8372_v37 }
 0x1ac   : > { %6592 = vmatprep.mubr.msk.f32.mxu1 %vm471_vm0, %v8492_v57  ;;  %6796 = vmatprep.mubr.msk.f32.mxu0 %vm471_vm0, %v8377_v38 }
 0x1af   : > { %6593 = vmatmul.mubr.msk.f32.gmra.mrb[84].mxu1 %vm471_vm0, %v8502_v58  ;;  %6797 = vmatmul.mubr.msk.f32.gmra.mrb[68].mxu0 %vm471_vm0, %v8386_v39 }
 0x1b0   : > { %6595 = vmatprep.mubr.msk.f32.mxu1 %vm471_vm0, %v8507_v59  ;;  %6799 = vmatprep.mubr.msk.f32.mxu0 %vm471_vm0, %v8391_v40 }
 0x1b3   : > { %6596 = vmatmul.mubr.msk.f32.gmra.mrb[86].mxu1 %vm471_vm0, %v8516_v60  ;;  %6800 = vmatmul.mubr.msk.f32.gmra.mrb[70].mxu0 %vm471_vm0, %v8400_v41 }
 0x1b4   : > { %6598 = vmatprep.mubr.msk.f32.mxu1 %vm471_vm0, %v8521_v61  ;;  %6802 = vmatprep.mubr.msk.f32.mxu0 %vm471_vm0, %v8405_v42 }
 0x1b7   : > { %6599 = vmatmul.mubr.msk.f32.gmra.mrb[88].mxu1 %vm471_vm0, %v8530_v62  ;;  %6803 = vmatmul.mubr.msk.f32.gmra.mrb[72].mxu0 %vm471_vm0, %v8414_v43 }
 0x1b8   : > { %6601 = vmatprep.mubr.msk.f32.mxu1 %vm471_vm0, %v8535_v63  ;;  %6805 = vmatprep.mubr.msk.f32.mxu0 %vm471_vm0, %v8419_v44 }
 0x1ba   : > { %v8833_v55 = vpop.f32.mrb[0].mxu1 }
 0x1bb   : > { %6602 = vmatmul.mubr.msk.f32.gmra.mrb[90].mxu1 %vm471_vm0, %v8544_v0  ;;  %v8837_v7 = vpop.f32.mrb[1].mxu1  ;;  %6806 = vmatmul.mubr.msk.f32.gmra.mrb[74].mxu0 %vm471_vm0, %v8428_v45 }
 0x1bc   : > { %6604 = vmatprep.mubr.msk.f32.mxu1 %vm471_vm0, %v8549_v1  ;;  %6808 = vmatprep.mubr.msk.f32.mxu0 %vm471_vm0, %v8433_v46 }
 0x1be   : > { %v8845_v8 = vpop.f32.mrb[2].mxu1 }
 0x1bf   : > { %6605 = vmatmul.mubr.msk.f32.gmra.mrb[92].mxu1 %vm471_vm0, %v8558_v2  ;;  %v8849_v9 = vpop.f32.mrb[3].mxu1  ;;  %6809 = vmatmul.mubr.msk.f32.gmra.mrb[76].mxu0 %vm471_vm0, %v8442_v47 }
 0x1c0   : > { %6607 = vmatprep.mubr.msk.f32.mxu1 %vm471_vm0, %v8563_v3  ;;  %6811 = vmatprep.mubr.msk.f32.mxu0 %vm471_vm0, %v8447_v48 }
 0x1c2   : > { %v8857_v11 = vpop.f32.mrb[4].mxu1 }
 0x1c3   : > { %6608 = vmatmul.mubr.msk.f32.gmra.mrb[94].mxu1 %vm471_vm0, %v8572_v4  ;;  %v8861_v19 = vpop.f32.mrb[5].mxu1  ;;  %6812 = vmatmul.mubr.msk.f32.gmra.mrb[78].mxu0 %vm471_vm0, %v8456_v49 }
 0x1c4   : > { %6614 = vmatprep.mubr.msk.f32.mxu1 %vm471_vm0, %v8229_v6  ;;  %6814 = vmatprep.mubr.msk.f32.mxu0 %vm471_vm0, %v8461_v50  ;;  %v4020_v50 = vld [vmem:[#allocation13 + $0x8] sm:$0xff] }
 0x1c5   : > { %4074 = vperm.xlu0 %7520, %v4020_v50  }
 0x1c6   : > { %v8869_v26 = vpop.f32.mrb[6].mxu1 }
 0x1c7   : > { %6615 = vmatmul.mubr.msk.f32.vlgmr.msra.gmra.mrb[48].mxu1 %vm471_vm0, %v8239_v12  ;;  %v8873_v24 = vpop.f32.mrb[7].mxu1  ;;  %6815 = vmatmul.mubr.msk.f32.gmra.mrb[80].mxu0 %vm471_vm0, %v8470_v53 }
 0x1c8   : > { %6617 = vmatprep.mubr.msk.f32.mxu1 %vm471_vm0, %v8245_v14  ;;  %6817 = vmatprep.mubr.msk.f32.mxu0 %vm471_vm0, %v8475_v54  ;;  %v4023_v54 = vld [vmem:[#allocation13 + $0x20] sm:$0xff] }
 0x1c9   : > { %7057 = vmatpush3.bf16.msra.mxu1 %v8649_v20  ;;  %v4022_v20 = vld [vmem:[#allocation13 + $0x18] sm:$0xff]  ;;  %4089 = vperm.xlu0 %7520, %v4023_v54  }
 0x1ca   : > { %v8882_v51 = vpop.f32.mrb[8].mxu1  ;;  %4084 = vperm.xlu1 %7521, %v4022_v20   ;;  %v4026_v20 = vld [vmem:[#allocation13 + $0x38] sm:$0xff] }
 0x1cb   : > { %6618 = vmatmul.mubr.msk.f32.gmra.mrb[50].mxu1 %vm471_vm0, %v8226_v5  ;;  %v8886_v28 = vpop.f32.mrb[9].mxu1  ;;  %6818 = vmatmul.mubr.msk.f32.gmra.mrb[82].mxu0 %vm471_vm0, %v8486_v56 }
 0x1cc   : > { %6620 = vmatprep.mubr.msk.f32.mxu1 %vm471_vm0, %v8236_v10  ;;  %6820 = vmatprep.mubr.msk.f32.mxu0 %vm471_vm0, %v8492_v57  ;;  %v4025_v57 = vld [vmem:[#allocation13 + $0x30] sm:$0xff] }
 0x1cd   : > { %4099 = vperm.xlu0 %7520, %v4025_v57  }
 0x1ce   : > { %v8894_v53 = vpop.f32.mrb[10].mxu1  ;;  %4094 = vperm.xlu1 %7521, %v4024_v21   ;;  %v4028_v21 = vld [vmem:[#allocation13 + $0x48] sm:$0xff] }
 0x1cf   : > { %6621 = vmatmul.mubr.msk.f32.gmra.mrb[52].mxu1 %vm471_vm0, %v8242_v13  ;;  %v8898_v50 = vpop.f32.mrb[11].mxu1  ;;  %6821 = vmatmul.mubr.msk.f32.gmra.mrb[84].mxu0 %vm471_vm0, %v8502_v58 }
 0x1d0   : > { %6623 = vmatprep.mubr.msk.f32.mxu1 %vm471_vm0, %v8254_v15  ;;  %6823 = vmatprep.mubr.msk.f32.mxu0 %vm471_vm0, %v8507_v59  ;;  %v4027_v59 = vld [vmem:[#allocation13 + $0x40] sm:$0xff] }
 0x1d1   : > { %4109 = vperm.xlu0 %7520, %v4027_v59  }
 0x1d2   : > { %v8906_v56 = vpop.f32.mrb[12].mxu1  ;;  %4104 = vperm.xlu1 %7521, %v4026_v20   ;;  %v4030_v20 = vld [vmem:[#allocation13 + $0x58] sm:$0xff] }
 0x1d3   : > { %6624 = vmatmul.mubr.msk.f32.gmra.mrb[54].mxu1 %vm471_vm0, %v8259_v16  ;;  %v8910_v54 = vpop.f32.mrb[13].mxu1  ;;  %6824 = vmatmul.mubr.msk.f32.gmra.mrb[86].mxu0 %vm471_vm0, %v8516_v60 }
 0x1d4   : > { %6626 = vmatprep.mubr.msk.f32.mxu1 %vm471_vm0, %v8268_v17  ;;  %6826 = vmatprep.mubr.msk.f32.mxu0 %vm471_vm0, %v8521_v61  ;;  %v4029_v61 = vld [vmem:[#allocation13 + $0x50] sm:$0xff] }
 0x1d5   : > { %4119 = vperm.xlu0 %7520, %v4029_v61  }
 0x1d6   : > { %v8918_v58 = vpop.f32.mrb[14].mxu1  ;;  %4114 = vperm.xlu1 %7521, %v4028_v21   ;;  %v4032_v21 = vld [vmem:[#allocation13 + $0x68] sm:$0xff] }
 0x1d7   : > { %6627 = vmatmul.mubr.msk.f32.gmra.mrb[56].mxu1 %vm471_vm0, %v8273_v18  ;;  %v8922_v57 = vpop.f32.mrb[15].mxu1  ;;  %6827 = vmatmul.mubr.msk.f32.gmra.mrb[88].mxu0 %vm471_vm0, %v8530_v62  ;;  %v4031_v62 = vld [vmem:[#allocation13 + $0x60] sm:$0xff] }
 0x1d8   : > { %6629 = vmatprep.mubr.msk.f32.mxu1 %vm471_vm0, %v8284_v22  ;;  %6829 = vmatprep.mubr.msk.f32.mxu0 %vm471_vm0, %v8535_v63 }
 0x1d9   : > { %4129 = vperm.xlu0 %7520, %v4031_v62  }
 0x1da   : > { %v8930_v60 = vpop.f32.mrb[16].mxu1  ;;  %4124 = vperm.xlu1 %7521, %v4030_v20   ;;  %v4035_v20 = vld [vmem:[#allocation13 + $0x80] sm:$0xff] }
 0x1db   : > { %6630 = vmatmul.mubr.msk.f32.gmra.mrb[58].mxu1 %vm471_vm0, %v8289_v23  ;;  %v8934_v59 = vpop.f32.mrb[17].mxu1  ;;  %6830 = vmatmul.mubr.msk.f32.gmra.mrb[90].mxu0 %vm471_vm0, %v8544_v0  ;;  %v4033_v0 = vld [vmem:[#allocation13 + $0x70] sm:$0xff] }
 0x1dc   : > { %6632 = vmatprep.mubr.msk.f32.mxu1 %vm471_vm0, %v8299_v25  ;;  %6832 = vmatprep.mubr.msk.f32.mxu0 %vm471_vm0, %v8549_v1 }
 0x1dd   : > { %4139 = vperm.xlu0 %7520, %v4033_v0  }
 0x1de   : > { %v8942_v63 = vpop.f32.mrb[18].mxu1  ;;  %4134 = vperm.xlu1 %7521, %v4032_v21   ;;  %v4037_v21 = vld [vmem:[#allocation13 + $0x90] sm:$0xff] }
 0x1df   : > { %6633 = vmatmul.mubr.msk.f32.gmra.mrb[60].mxu1 %vm471_vm0, %v8304_v27  ;;  %v8946_v61 = vpop.f32.mrb[19].mxu1  ;;  %6833 = vmatmul.mubr.msk.f32.gmra.mrb[92].mxu0 %vm471_vm0, %v8558_v2  ;;  %v4034_v2 = vld [vmem:[#allocation13 + $0x78] sm:$0xff] }
 0x1e0   : > { %6635 = vmatprep.mubr.msk.f32.mxu1 %vm471_vm0, %v8316_v29  ;;  %6835 = vmatprep.mubr.msk.f32.mxu0 %vm471_vm0, %v8563_v3 }
 0x1e1   : > { %4149 = vperm.xlu0 %7520, %v4035_v20  }
 0x1e2   : > { %v8954_v1 = vpop.f32.mrb[20].mxu1  ;;  %4144 = vperm.xlu1 %7521, %v4034_v2  }
 0x1e3   : > { %6636 = vmatmul.mubr.msk.f32.gmra.mrb[62].mxu1 %vm471_vm0, %v8321_v30  ;;  %v8958_v62 = vpop.f32.mrb[21].mxu1  ;;  %6836 = vmatmul.mubr.msk.f32.gmra.mrb[94].mxu0 %vm471_vm0, %v8572_v4  ;;  %v4036_v4 = vld [vmem:[#allocation13 + $0x88] sm:$0xff] }
 0x1e4   : > { %6638 = vmatprep.mubr.msk.f32.mxu1 %vm471_vm0, %v8330_v31  ;;  %6842 = vmatprep.mubr.msk.f32.mxu0 %vm471_vm0, %v8229_v6 }
 0x1e5   : > { %4159 = vperm.xlu0 %7520, %v4037_v21  }
 0x1e6   : > { %v8966_v3 = vpop.f32.mrb[22].mxu1  ;;  %4154 = vperm.xlu1 %7521, %v4036_v4   ;;  %v4041_v4 = vld [vmem:[#allocation13 + $0xb0] sm:$0xff] }
 0x1e7   : > { %6639 = vmatmul.mubr.msk.f32.gmra.mrb[64].mxu1 %vm471_vm0, %v8335_v32  ;;  %v8970_v0 = vpop.f32.mrb[23].mxu1  ;;  %6843 = vmatmul.mubr.msk.f32.vlgmr.msra.gmra.mrb[48].mxu0 %vm471_vm0, %v8239_v12  ;;  %v4038_v12 = vld [vmem:[#allocation13 + $0x98] sm:$0xff] }
 0x1e8   : > { %6641 = vmatprep.mubr.msk.f32.mxu1 %vm471_vm0, %v8344_v33  ;;  %7069 = vmatpush3.bf16.msra.mxu0 %v8725_v52  ;;  %v4039_v52 = vld [vmem:[#allocation13 + $0xa0] sm:$0xff] }
 0x1e9   : > { %6845 = vmatprep.mubr.msk.f32.mxu0 %vm471_vm0, %v8245_v14  ;;  %4169 = vperm.xlu0 %7520, %v4039_v52  }
 0x1ea   : > { %v8979_v6 = vpop.f32.mrb[24].mxu1  ;;  %4164 = vperm.xlu1 %7521, %v4038_v12   ;;  %v4043_v12 = vld [vmem:[#allocation13 + $0xc0] sm:$0xff] }
 0x1eb   : > { %6642 = vmatmul.mubr.msk.f32.gmra.mrb[66].mxu1 %vm471_vm0, %v8349_v34  ;;  %v8983_v2 = vpop.f32.mrb[25].mxu1  ;;  %6846 = vmatmul.mubr.msk.f32.gmra.mrb[50].mxu0 %vm471_vm0, %v8226_v5  ;;  %v4040_v5 = vld [vmem:[#allocation13 + $0xa8] sm:$0xff] }
 0x1ec   : > { %6644 = vmatprep.mubr.msk.f32.mxu1 %vm471_vm0, %v8358_v35  ;;  %6848 = vmatprep.mubr.msk.f32.mxu0 %vm471_vm0, %v8236_v10 }
 0x1ed   : > { %4179 = vperm.xlu0 %7520, %v4041_v4  }
 0x1ee   : > { %v8991_v14 = vpop.f32.mrb[26].mxu1  ;;  %4174 = vperm.xlu1 %7521, %v4040_v5   ;;  %v4045_v5 = vld [vmem:[#allocation13 + $0xd0] sm:$0xff] }
 0x1ef   : > { %6645 = vmatmul.mubr.msk.f32.gmra.mrb[68].mxu1 %vm471_vm0, %v8363_v36  ;;  %v8995_v20 = vpop.f32.mrb[27].mxu1  ;;  %6849 = vmatmul.mubr.msk.f32.gmra.mrb[52].mxu0 %vm471_vm0, %v8242_v13  ;;  %v4042_v13 = vld [vmem:[#allocation13 + $0xb8] sm:$0xff] }
 0x1f0   : > { %6647 = vmatprep.mubr.msk.f32.mxu1 %vm471_vm0, %v8372_v37  ;;  %6851 = vmatprep.mubr.msk.f32.mxu0 %vm471_vm0, %v8254_v15 }
 0x1f1   : > { %4189 = vperm.xlu0 %7520, %v4043_v12   ;;  %v4047_v12 = vld [vmem:[#allocation13 + $0xe0] sm:$0xff] }
 0x1f2   : > { %v9003_v10 = vpop.f32.mrb[28].mxu1  ;;  %4184 = vperm.xlu1 %7521, %v4042_v13  }
 0x1f3   : > { %6648 = vmatmul.mubr.msk.f32.gmra.mrb[70].mxu1 %vm471_vm0, %v8377_v38  ;;  %v9007_v21 = vpop.f32.mrb[29].mxu1  ;;  %6852 = vmatmul.mubr.msk.f32.gmra.mrb[54].mxu0 %vm471_vm0, %v8259_v16  ;;  %v4044_v16 = vld [vmem:[#allocation13 + $0xc8] sm:$0xff] }
 0x1f4   : > { %6650 = vmatprep.mubr.msk.f32.mxu1 %vm471_vm0, %v8386_v39  ;;  %6854 = vmatprep.mubr.msk.f32.mxu0 %vm471_vm0, %v8268_v17 }
 0x1f5   : > { %4199 = vperm.xlu0 %7520, %v4045_v5   ;;  %v4049_v5 = vld [vmem:[#allocation13 + $0xf0] sm:$0xff] }
 0x1f6   : > { %v9015_v15 = vpop.f32.mrb[30].mxu1  ;;  %4194 = vperm.xlu1 %7521, %v4044_v16  }
 0x1f7   : > { %6651 = vmatmul.mubr.msk.f32.gmra.mrb[72].mxu1 %vm471_vm0, %v8391_v40  ;;  %v9019_v52 = vpop.f32.mrb[31].mxu1  ;;  %6855 = vmatmul.mubr.msk.f32.gmra.mrb[56].mxu0 %vm471_vm0, %v8273_v18  ;;  %v4046_v18 = vld [vmem:[#allocation13 + $0xd8] sm:$0xff] }
 0x1f8   : > { %6653 = vmatprep.mubr.msk.f32.mxu1 %vm471_vm0, %v8400_v41  ;;  %6857 = vmatprep.mubr.msk.f32.mxu0 %vm471_vm0, %v8284_v22 }
 0x1f9   : > { %4209 = vperm.xlu0 %7520, %v4047_v12   ;;  %v4053_v12 = vld [vmem:[#allocation13 + $0x110] sm:$0xff] }
 0x1fa   : > { %v6464_v17 = vpop.f32.mrb[0].mxu0  ;;  %4204 = vperm.xlu1 %7521, %v4046_v18  }
 0x1fb   : > { %6654 = vmatmul.mubr.msk.f32.gmra.mrb[74].mxu1 %vm471_vm0, %v8405_v42  ;;  %v9030_v4 = vadd.f32 %v6464_v17, %v8833_v55  ;;  %v1496_v13 = vpop.f32.mrb[1].mxu0  ;;  %6858 = vmatmul.mubr.msk.f32.gmra.mrb[58].mxu0 %vm471_vm0, %v8289_v23 }
 0x1fc   : > { %6656 = vmatprep.mubr.msk.f32.mxu1 %vm471_vm0, %v8414_v43  ;;  %v9037_v22 = vadd.f32 %v1496_v13, %v8837_v7  ;;  %6860 = vmatprep.mubr.msk.f32.mxu0 %vm471_vm0, %v8299_v25  ;;  %v4048_v7 = vld [vmem:[#allocation13 + $0xe8] sm:$0xff]  ;;  %v4051_v13 = vld [vmem:[#allocation13 + $0x100] sm:$0xff] }
 0x1fd   : > { %4219 = vperm.xlu0 %7520, %v4049_v5   ;;  %v4055_v5 = vld [vmem:[#allocation13 + $0x120] sm:$0xff] }
 0x1fe   : > { %v6467_v16 = vpop.f32.mrb[2].mxu0  ;;  %4214 = vperm.xlu1 %7521, %v4048_v7   ;;  %v11164_v7 = vld [vmem:[#allocation21_spill] sm:$0xff] }
 0x1ff   : > { %6657 = vmatmul.mubr.msk.f32.gmra.mrb[76].mxu1 %vm471_vm0, %v8419_v44  ;;  %v9044_v55 = vadd.f32 %v6467_v16, %v8845_v8  ;;  %v1506_v23 = vpop.f32.mrb[3].mxu0  ;;  %6861 = vmatmul.mubr.msk.f32.gmra.mrb[60].mxu0 %vm471_vm0, %v8304_v27 }
 0x200   : > { %6659 = vmatprep.mubr.msk.f32.mxu1 %vm471_vm0, %v8428_v45  ;;  %v9051_v25 = vadd.f32 %v1506_v23, %v8849_v9  ;;  %6863 = vmatprep.mubr.msk.f32.mxu0 %vm471_vm0, %v8316_v29  ;;  %v4050_v9 = vld [vmem:[#allocation13 + $0xf8] sm:$0xff] }
 0x201   : > { %4229 = vperm.xlu0 %7520, %v4051_v13   ;;  %v4057_v13 = vld [vmem:[#allocation13 + $0x130] sm:$0xff] }
 0x202   : > { %v6470_v17 = vpop.f32.mrb[4].mxu0  ;;  %4224 = vperm.xlu1 %7521, %v4050_v9   ;;  %v11166_v9 = vld [vmem:[#allocation23_spill] sm:$0xff] }
 0x203   : > { %6660 = vmatmul.mubr.msk.f32.gmra.mrb[78].mxu1 %vm471_vm0, %v8433_v46  ;;  %v9058_v8 = vadd.f32 %v6470_v17, %v8857_v11  ;;  %v1516_v27 = vpop.f32.mrb[5].mxu0  ;;  %6864 = vmatmul.mubr.msk.f32.gmra.mrb[62].mxu0 %vm471_vm0, %v8321_v30 }
 0x204   : > { %6662 = vmatprep.mubr.msk.f32.mxu1 %vm471_vm0, %v8442_v47  ;;  %v9065_v29 = vadd.f32 %v1516_v27, %v8861_v19  ;;  %6866 = vmatprep.mubr.msk.f32.mxu0 %vm471_vm0, %v8330_v31  ;;  %v4052_v19 = vld [vmem:[#allocation13 + $0x108] sm:$0xff] }
 0x205   : > { %4239 = vperm.xlu0 %7520, %v4053_v12   ;;  %v4059_v12 = vld [vmem:[#allocation13 + $0x140] sm:$0xff] }
 0x206   : > { %v6473_v18 = vpop.f32.mrb[6].mxu0  ;;  %4234 = vperm.xlu1 %7521, %v4052_v19   ;;  %v11168_v19 = vld [vmem:[#allocation25_spill] sm:$0xff] }
 0x207   : > { %6663 = vmatmul.mubr.msk.f32.gmra.mrb[80].mxu1 %vm471_vm0, %v8447_v48  ;;  %v9072_v11 = vadd.f32 %v6473_v18, %v8869_v26  ;;  %v1526_v30 = vpop.f32.mrb[7].mxu0  ;;  %6867 = vmatmul.mubr.msk.f32.gmra.mrb[64].mxu0 %vm471_vm0, %v8335_v32  ;;  %v11163_v26 = vld [vmem:[#allocation20_spill] sm:$0xff] }
 0x208   : > { %6665 = vmatprep.mubr.msk.f32.mxu1 %vm471_vm0, %v8456_v49  ;;  %v9079_v31 = vadd.f32 %v1526_v30, %v8873_v24  ;;  %6869 = vmatprep.mubr.msk.f32.mxu0 %vm471_vm0, %v8344_v33  ;;  %v4054_v24 = vld [vmem:[#allocation13 + $0x118] sm:$0xff] }
 0x209   : > { %4249 = vperm.xlu0 %7520, %v4055_v5   ;;  %v4061_v5 = vld [vmem:[#allocation13 + $0x150] sm:$0xff] }
 0x20a   : > { %v6476_v16 = vpop.f32.mrb[8].mxu0  ;;  %4244 = vperm.xlu1 %7521, %v4054_v24   ;;  %v11170_v24 = vld [vmem:[#allocation27_spill] sm:$0xff] }
 0x20b   : > { %6666 = vmatmul.mubr.msk.f32.gmra.mrb[82].mxu1 %vm471_vm0, %v11163_v26  ;;  %v9086_v23 = vadd.f32 %v6476_v16, %v8882_v51  ;;  %v1536_v32 = vpop.f32.mrb[9].mxu0  ;;  %6870 = vmatmul.mubr.msk.f32.gmra.mrb[66].mxu0 %vm471_vm0, %v8349_v34  ;;  %v11165_v51 = vld [vmem:[#allocation22_spill] sm:$0xff] }
 0x20c   : > { %6668 = vmatprep.mubr.msk.f32.mxu1 %vm471_vm0, %v11164_v7  ;;  %v9093_v33 = vadd.f32 %v1536_v32, %v8886_v28  ;;  %6872 = vmatprep.mubr.msk.f32.mxu0 %vm471_vm0, %v8358_v35  ;;  %v4056_v28 = vld [vmem:[#allocation13 + $0x128] sm:$0xff] }
 0x20d   : > { %4259 = vperm.xlu0 %7520, %v4057_v13  }
 0x20e   : > { %v6479_v17 = vpop.f32.mrb[10].mxu0  ;;  %4254 = vperm.xlu1 %7521, %v4056_v28   ;;  %v11171_v28 = vld [vmem:[#allocation28_spill] sm:$0xff] }
 0x20f   : > { %6669 = vmatmul.mubr.msk.f32.gmra.mrb[84].mxu1 %vm471_vm0, %v11165_v51  ;;  %v9100_v27 = vadd.f32 %v6479_v17, %v8894_v53  ;;  %v1546_v34 = vpop.f32.mrb[11].mxu0  ;;  %6873 = vmatmul.mubr.msk.f32.gmra.mrb[68].mxu0 %vm471_vm0, %v8363_v36  ;;  %v11167_v53 = vld [vmem:[#allocation24_spill] sm:$0xff] }
 0x210   : > { %6671 = vmatprep.mubr.msk.f32.mxu1 %vm471_vm0, %v11166_v9  ;;  %v9107_v35 = vadd.f32 %v1546_v34, %v8898_v50  ;;  %6875 = vmatprep.mubr.msk.f32.mxu0 %vm471_vm0, %v8372_v37  ;;  %v4058_v50 = vld [vmem:[#allocation13 + $0x138] sm:$0xff] }
 0x211   : > { %4269 = vperm.xlu0 %7520, %v4059_v12  }
 0x212   : > { %v6482_v18 = vpop.f32.mrb[12].mxu0  ;;  %4264 = vperm.xlu1 %7521, %v4058_v50  }
 0x213   : > { %6672 = vmatmul.mubr.msk.f32.gmra.mrb[86].mxu1 %vm471_vm0, %v11167_v53  ;;  %v9114_v30 = vadd.f32 %v6482_v18, %v8906_v56  ;;  %v1556_v36 = vpop.f32.mrb[13].mxu0  ;;  %6876 = vmatmul.mubr.msk.f32.gmra.mrb[70].mxu0 %vm471_vm0, %v8377_v38  ;;  %v11169_v56 = vld [vmem:[#allocation26_spill] sm:$0xff]  ;;  %v4063_v18 = vld [vmem:[#allocation13 + $0x160] sm:$0xff] }
 0x214   : > { %6674 = vmatprep.mubr.msk.f32.mxu1 %vm471_vm0, %v11168_v19  ;;  %v9121_v37 = vadd.f32 %v1556_v36, %v8910_v54  ;;  %6878 = vmatprep.mubr.msk.f32.mxu0 %vm471_vm0, %v8386_v39  ;;  %v4060_v54 = vld [vmem:[#allocation13 + $0x148] sm:$0xff] }
 0x215   : > { %4279 = vperm.xlu0 %7520, %v4061_v5  }
 0x216   : > { %v6485_v16 = vpop.f32.mrb[14].mxu0  ;;  %4274 = vperm.xlu1 %7521, %v4060_v54   ;;  %v4065_v54 = vld [vmem:[#allocation13 + $0x170] sm:$0xff] }
 0x217   : > { %6675 = vmatmul.mubr.msk.f32.gmra.mrb[88].mxu1 %vm471_vm0, %v11169_v56  ;;  %v9128_v32 = vadd.f32 %v6485_v16, %v8918_v58  ;;  %v1566_v38 = vpop.f32.mrb[15].mxu0  ;;  %6879 = vmatmul.mubr.msk.f32.gmra.mrb[72].mxu0 %vm471_vm0, %v8391_v40  ;;  %v11173_v16 = vld [vmem:[#allocation30_spill] sm:$0xff] }
 0x218   : > { %6677 = vmatprep.mubr.msk.f32.mxu1 %vm471_vm0, %v11170_v24  ;;  %v9135_v39 = vadd.f32 %v1566_v38, %v8922_v57  ;;  %6881 = vmatprep.mubr.msk.f32.mxu0 %vm471_vm0, %v8400_v41  ;;  %v11172_v57 = vld [vmem:[#allocation29_spill] sm:$0xff]  ;;  %v4062_v41 = vld [vmem:[#allocation13 + $0x158] sm:$0xff] }
 0x219   : > { %4289 = vperm.xlu0 %7520, %v4063_v18  }
 0x21a   : > { %v9139_v17 = vpop.f32.mrb[32].mxu1  ;;  %v6488_v58 = vpop.f32.mrb[16].mxu0  ;;  %4284 = vperm.xlu1 %7521, %v4062_v41  }
 0x21b   : > { %v9141_v34 = vpop.f32.mrb[33].mxu1  ;;  %6678 = vmatmul.mubr.msk.f32.gmra.mrb[90].mxu1 %vm471_vm0, %v11171_v28  ;;  %v9146_v40 = vadd.f32 %v6488_v58, %v8930_v60  ;;  %v1576_v13 = vpop.f32.mrb[17].mxu0  ;;  %6882 = vmatmul.mubr.msk.f32.gmra.mrb[74].mxu0 %vm471_vm0, %v8405_v42 }
 0x21c   : > { %6680 = vmatprep.mubr.msk.f32.mxu1 %vm471_vm0, %v11172_v57  ;;  %v9153_v36 = vadd.f32 %v1576_v13, %v8934_v59  ;;  %6884 = vmatprep.mubr.msk.f32.mxu0 %vm471_vm0, %v8414_v43  ;;  %v11174_v59 = vld [vmem:[#allocation31_spill] sm:$0xff]  ;;  %v4064_v43 = vld [vmem:[#allocation13 + $0x168] sm:$0xff] }
 0x21d   : > { %4299 = vperm.xlu0 %7520, %v4065_v54  }
 0x21e   : > { %v9157_v50 = vpop.f32.mrb[34].mxu1  ;;  %v6491_v60 = vpop.f32.mrb[18].mxu0  ;;  %4294 = vperm.xlu1 %7521, %v4064_v43  }
 0x21f   : > { %v9159_v12 = vpop.f32.mrb[35].mxu1  ;;  %6681 = vmatmul.mubr.msk.f32.gmra.mrb[92].mxu1 %vm471_vm0, %v11173_v16  ;;  %v9164_v42 = vadd.f32 %v6491_v60, %v8942_v63  ;;  %v1586_v38 = vpop.f32.mrb[19].mxu0  ;;  %6885 = vmatmul.mubr.msk.f32.gmra.mrb[76].mxu0 %vm471_vm0, %v8419_v44  ;;  %v11175_v44 = vld [vmem:[#allocation32_spill] sm:$0xff] }
 0x220   : > { %6683 = vmatprep.mubr.msk.f32.mxu1 %vm471_vm0, %v11174_v59  ;;  %v9171_v5 = vadd.f32 %v1586_v38, %v8946_v61  ;;  %6887 = vmatprep.mubr.msk.f32.mxu0 %vm471_vm0, %v8428_v45  ;;  %v9187_v45 = vld [vmem:[%s8207_s18 + $0x30] sm:$0xff] }
 0x221   : > { %v4066_v61 = vld [vmem:[#allocation13 + $0x178] sm:$0xff] }
 0x222   : > { %v9175_v58 = vpop.f32.mrb[36].mxu1  ;;  %v6494_v63 = vpop.f32.mrb[20].mxu0  ;;  %4304 = vperm.xlu1 %7521, %v4066_v61  }
 0x223   : > { %v9177_v13 = vpop.f32.mrb[37].mxu1  ;;  %6684 = vmatmul.mubr.msk.f32.gmra.mrb[94].mxu1 %vm471_vm0, %v11175_v44  ;;  %v9182_v41 = vadd.f32 %v6494_v63, %v8954_v1  ;;  %v1596_v18 = vpop.f32.mrb[21].mxu0  ;;  %6888 = vmatmul.mubr.msk.f32.gmra.mrb[78].mxu0 %vm471_vm0, %v8433_v46  ;;  %v9201_v46 = vld [vmem:[%s8207_s18 + $0x38] sm:$0xff] }
 0x224   : > { %6690 = vmatprep.mubr.msk.f32.mxu1 %vm471_vm0, %v9187_v45  ;;  %v9192_v60 = vadd.f32 %v1596_v18, %v8958_v62  ;;  %6890 = vmatprep.mubr.msk.f32.mxu0 %vm471_vm0, %v8442_v47  ;;  %v9211_v47 = vld [vmem:[%s8207_s18 + $0x40] sm:$0xff] }
 0x226   : > { %v9196_v38 = vpop.f32.mrb[38].mxu1  ;;  %v6497_v1 = vpop.f32.mrb[22].mxu0 }
 0x227   : > { %v9198_v43 = vpop.f32.mrb[39].mxu1  ;;  %6691 = vmatmul.mubr.msk.f32.vlgmr.msra.gmra.mrb[48].mxu1 %vm471_vm0, %v9201_v46  ;;  %v9206_v54 = vadd.f32 %v6497_v1, %v8966_v3  ;;  %v1606_v62 = vpop.f32.mrb[23].mxu0  ;;  %6891 = vmatmul.mubr.msk.f32.gmra.mrb[80].mxu0 %vm471_vm0, %v8447_v48  ;;  %v9225_v1 = vld [vmem:[%s8207_s18 + $0x48] sm:$0xff] }
 0x228   : > { %6693 = vmatprep.mubr.msk.f32.mxu1 %vm471_vm0, %v9211_v47  ;;  %v9216_v63 = vadd.f32 %v1606_v62, %v8970_v0  ;;  %6893 = vmatprep.mubr.msk.f32.mxu0 %vm471_vm0, %v8456_v49  ;;  %v9235_v49 = vld [vmem:[%s8207_s18 + $0x50] sm:$0xff] }
 0x229   : > { %11176 = vst [vmem:[#allocation20_spill] sm:$0xff] %v9206_v54 }
 0x22a   : > { %11177 = vst [vmem:[#allocation21_spill] sm:$0xff] %v9216_v63  ;;  %v9220_v18 = vpop.f32.mrb[40].mxu1  ;;  %v6500_v3 = vpop.f32.mrb[24].mxu0 }
 0x22b   : > { %v9222_v61 = vpop.f32.mrb[41].mxu1  ;;  %6694 = vmatmul.mubr.msk.f32.gmra.mrb[50].mxu1 %vm471_vm0, %v9225_v1  ;;  %v9230_v48 = vadd.f32 %v6500_v3, %v8979_v6  ;;  %v1616_v0 = vpop.f32.mrb[25].mxu0  ;;  %6894 = vmatmul.mubr.msk.f32.gmra.mrb[82].mxu0 %vm471_vm0, %v11163_v26 }
 0x22c   : > { %6696 = vmatprep.mubr.msk.f32.mxu1 %vm471_vm0, %v9235_v49  ;;  %v9240_v62 = vadd.f32 %v1616_v0, %v8983_v2  ;;  %6896 = vmatprep.mubr.msk.f32.mxu0 %vm471_vm0, %v11164_v7  ;;  %v9259_v7 = vld [vmem:[%s8207_s18 + $0x60] sm:$0xff] }
 0x22d   : > { %11178 = vst [vmem:[#allocation22_spill] sm:$0xff] %v9230_v48  ;;  %v9249_v48 = vld [vmem:[%s8207_s18 + $0x58] sm:$0xff] }
 0x22e   : > { %11179 = vst [vmem:[#allocation23_spill] sm:$0xff] %v9240_v62  ;;  %v9244_v54 = vpop.f32.mrb[42].mxu1  ;;  %v6503_v6 = vpop.f32.mrb[26].mxu0 }
 0x22f   : > { %v9246_v3 = vpop.f32.mrb[43].mxu1  ;;  %6697 = vmatmul.mubr.msk.f32.gmra.mrb[52].mxu1 %vm471_vm0, %v9249_v48  ;;  %v9254_v26 = vadd.f32 %v6503_v6, %v8991_v14  ;;  %v1626_v2 = vpop.f32.mrb[27].mxu0  ;;  %6897 = vmatmul.mubr.msk.f32.gmra.mrb[84].mxu0 %vm471_vm0, %v11165_v51 }
 0x230   : > { %6699 = vmatprep.mubr.msk.f32.mxu1 %vm471_vm0, %v9259_v7  ;;  %v9264_v0 = vadd.f32 %v1626_v2, %v8995_v20  ;;  %6899 = vmatprep.mubr.msk.f32.mxu0 %vm471_vm0, %v11166_v9  ;;  %v9283_v9 = vld [vmem:[%s8207_s18 + $0x70] sm:$0xff] }
 0x231   : > { %11180 = vst [vmem:[#allocation24_spill] sm:$0xff] %v9254_v26  ;;  %v9273_v26 = vld [vmem:[%s8207_s18 + $0x68] sm:$0xff] }
 0x232   : > { %11181 = vst [vmem:[#allocation25_spill] sm:$0xff] %v9264_v0  ;;  %v9268_v62 = vpop.f32.mrb[44].mxu1  ;;  %v6506_v14 = vpop.f32.mrb[28].mxu0 }
 0x233   : > { %v9270_v6 = vpop.f32.mrb[45].mxu1  ;;  %6700 = vmatmul.mubr.msk.f32.gmra.mrb[54].mxu1 %vm471_vm0, %v9273_v26  ;;  %v9278_v51 = vadd.f32 %v6506_v14, %v9003_v10  ;;  %v1636_v20 = vpop.f32.mrb[29].mxu0  ;;  %6900 = vmatmul.mubr.msk.f32.gmra.mrb[86].mxu0 %vm471_vm0, %v11167_v53 }
 0x234   : > { %6702 = vmatprep.mubr.msk.f32.mxu1 %vm471_vm0, %v9283_v9  ;;  %v9288_v2 = vadd.f32 %v1636_v20, %v9007_v21  ;;  %6902 = vmatprep.mubr.msk.f32.mxu0 %vm471_vm0, %v11168_v19  ;;  %v9307_v21 = vld [vmem:[%s8207_s18 + $0x80] sm:$0xff] }
 0x235   : > { %11182 = vst [vmem:[#allocation26_spill] sm:$0xff] %v9278_v51  ;;  %v9297_v51 = vld [vmem:[%s8207_s18 + $0x78] sm:$0xff] }
 0x236   : > { %v9292_v0 = vpop.f32.mrb[46].mxu1  ;;  %v6509_v10 = vpop.f32.mrb[30].mxu0 }
 0x237   : > { %v9294_v14 = vpop.f32.mrb[47].mxu1  ;;  %6703 = vmatmul.mubr.msk.f32.gmra.mrb[56].mxu1 %vm471_vm0, %v9297_v51  ;;  %v9302_v53 = vadd.f32 %v6509_v10, %v9015_v15  ;;  %v1646_v63 = vpop.f32.mrb[31].mxu0  ;;  %6903 = vmatmul.mubr.msk.f32.gmra.mrb[88].mxu0 %vm471_vm0, %v11169_v56  ;;  %v9317_v15 = vld [vmem:[%s8207_s18 + $0x88] sm:$0xff] }
 0x238   : > { %6705 = vmatprep.mubr.msk.f32.mxu1 %vm471_vm0, %v9307_v21  ;;  %v9312_v19 = vadd.f32 %v1646_v63, %v9019_v52  ;;  %6905 = vmatprep.mubr.msk.f32.mxu0 %vm471_vm0, %v11170_v24  ;;  %v9327_v52 = vld [vmem:[%s8207_s18 + $0x90] sm:$0xff] }
 0x23a   : > { %v6512_v20 = vpop.f32.mrb[32].mxu0 }
 0x23b   : > { %6706 = vmatmul.mubr.msk.f32.gmra.mrb[58].mxu1 %vm471_vm0, %v9317_v15  ;;  %v9322_v56 = vadd.f32 %v6512_v20, %v9139_v17  ;;  %v1656_v10 = vpop.f32.mrb[33].mxu0  ;;  %6906 = vmatmul.mubr.msk.f32.gmra.mrb[90].mxu0 %vm471_vm0, %v11171_v28  ;;  %v9337_v17 = vld [vmem:[%s8207_s18 + $0x98] sm:$0xff] }
 0x23c   : > { %6708 = vmatprep.mubr.msk.f32.mxu1 %vm471_vm0, %v9327_v52  ;;  %v9332_v24 = vadd.f32 %v1656_v10, %v9141_v34  ;;  %6908 = vmatprep.mubr.msk.f32.mxu0 %vm471_vm0, %v11172_v57  ;;  %v9347_v34 = vld [vmem:[%s8207_s18 + $0xa0] sm:$0xff] }
 0x23e   : > { %v6515_v63 = vpop.f32.mrb[34].mxu0 }
 0x23f   : > { %6709 = vmatmul.mubr.msk.f32.gmra.mrb[60].mxu1 %vm471_vm0, %v9337_v17  ;;  %v9342_v28 = vadd.f32 %v6515_v63, %v9157_v50  ;;  %v1666_v20 = vpop.f32.mrb[35].mxu0  ;;  %6909 = vmatmul.mubr.msk.f32.gmra.mrb[92].mxu0 %vm471_vm0, %v11173_v16  ;;  %v9357_v50 = vld [vmem:[%s8207_s18 + $0xa8] sm:$0xff] }
 0x240   : > { %6711 = vmatprep.mubr.msk.f32.mxu1 %vm471_vm0, %v9347_v34  ;;  %v9352_v57 = vadd.f32 %v1666_v20, %v9159_v12  ;;  %6911 = vmatprep.mubr.msk.f32.mxu0 %vm471_vm0, %v11174_v59  ;;  %v9367_v12 = vld [vmem:[%s8207_s18 + $0xb0] sm:$0xff] }
 0x241   : > { %11183 = vst [vmem:[#allocation27_spill] sm:$0xff] %v9342_v28 }
 0x242   : > { %v6518_v10 = vpop.f32.mrb[36].mxu0 }
 0x243   : > { %6712 = vmatmul.mubr.msk.f32.gmra.mrb[62].mxu1 %vm471_vm0, %v9357_v50  ;;  %v9362_v16 = vadd.f32 %v6518_v10, %v9175_v58  ;;  %v1676_v63 = vpop.f32.mrb[37].mxu0  ;;  %6912 = vmatmul.mubr.msk.f32.gmra.mrb[94].mxu0 %vm471_vm0, %v11175_v44  ;;  %v9377_v58 = vld [vmem:[%s8207_s18 + $0xb8] sm:$0xff] }
 0x244   : > { %6714 = vmatprep.mubr.msk.f32.mxu1 %vm471_vm0, %v9367_v12  ;;  %v9372_v59 = vadd.f32 %v1676_v63, %v9177_v13  ;;  %6918 = vmatprep.mubr.msk.f32.mxu0 %vm471_vm0, %v9187_v45  ;;  %v9387_v13 = vld [vmem:[%s8207_s18 + $0xc0] sm:$0xff] }
 0x245   : > { %11184 = vst [vmem:[#allocation28_spill] sm:$0xff] %v9362_v16 }
 0x246   : > { %v6521_v20 = vpop.f32.mrb[38].mxu0 }
 0x247   : > { %6715 = vmatmul.mubr.msk.f32.gmra.mrb[64].mxu1 %vm471_vm0, %v9377_v58  ;;  %v9382_v44 = vadd.f32 %v6521_v20, %v9196_v38  ;;  %v1686_v10 = vpop.f32.mrb[39].mxu0  ;;  %6919 = vmatmul.mubr.msk.f32.vlgmr.msra.gmra.mrb[48].mxu0 %vm471_vm0, %v9201_v46  ;;  %v9397_v38 = vld [vmem:[%s8207_s18 + $0xc8] sm:$0xff] }
 0x248   : > { %6717 = vmatprep.mubr.msk.f32.mxu1 %vm471_vm0, %v9387_v13  ;;  %v9392_v45 = vadd.f32 %v1686_v10, %v9198_v43  ;;  %6921 = vmatprep.mubr.msk.f32.mxu0 %vm471_vm0, %v9211_v47  ;;  %v9407_v43 = vld [vmem:[%s8207_s18 + $0xd0] sm:$0xff] }
 0x249   : > { %11185 = vst [vmem:[#allocation29_spill] sm:$0xff] %v9382_v44 }
 0x24a   : > { %11186 = vst [vmem:[#allocation30_spill] sm:$0xff] %v9392_v45  ;;  %v6524_v63 = vpop.f32.mrb[40].mxu0 }
 0x24b   : > { %6718 = vmatmul.mubr.msk.f32.gmra.mrb[66].mxu1 %vm471_vm0, %v9397_v38  ;;  %v9402_v46 = vadd.f32 %v6524_v63, %v9220_v18  ;;  %v1696_v20 = vpop.f32.mrb[41].mxu0  ;;  %6922 = vmatmul.mubr.msk.f32.gmra.mrb[50].mxu0 %vm471_vm0, %v9225_v1  ;;  %v7545_v18 = vld [vmem:[%s8207_s18 + $0xd8] sm:$0xff] }
 0x24c   : > { %6720 = vmatprep.mubr.msk.f32.mxu1 %vm471_vm0, %v9407_v43  ;;  %v9412_v47 = vadd.f32 %v1696_v20, %v9222_v61  ;;  %6924 = vmatprep.mubr.msk.f32.mxu0 %vm471_vm0, %v9235_v49  ;;  %v7547_v20 = vld [vmem:[%s8207_s18 + $0xe8] sm:$0xff] }
 0x24d   : > { %11187 = vst [vmem:[#allocation31_spill] sm:$0xff] %v9402_v46  ;;  %v7546_v46 = vld [vmem:[%s8207_s18 + $0xe0] sm:$0xff] }
 0x24e   : > { %11188 = vst [vmem:[#allocation32_spill] sm:$0xff] %v9412_v47  ;;  %v6527_v10 = vpop.f32.mrb[42].mxu0 }
 0x24f   : > { %6721 = vmatmul.mubr.msk.f32.gmra.mrb[68].mxu1 %vm471_vm0, %v7545_v18  ;;  %v9419_v63 = vadd.f32 %v6527_v10, %v9244_v54  ;;  %v1706_v1 = vpop.f32.mrb[43].mxu0  ;;  %6925 = vmatmul.mubr.msk.f32.gmra.mrb[52].mxu0 %vm471_vm0, %v9249_v48  ;;  %v7548_v48 = vld [vmem:[%s8207_s18 + $0xf0] sm:$0xff] }
 0x250   : > { %6723 = vmatprep.mubr.msk.f32.mxu1 %vm471_vm0, %v7546_v46  ;;  %v9426_v61 = vadd.f32 %v1706_v1, %v9246_v3  ;;  %6927 = vmatprep.mubr.msk.f32.mxu0 %vm471_vm0, %v9259_v7  ;;  %v7549_v1 = vld [vmem:[%s8207_s18 + $0xf8] sm:$0xff] }
 0x251   : > { %11189 = vst [vmem:[#allocation36_spill] sm:$0xff] %v9419_v63 }
 0x252   : > { %11190 = vst [vmem:[#allocation37_spill] sm:$0xff] %v9426_v61  ;;  %v6530_v49 = vpop.f32.mrb[44].mxu0 }
 0x253   : > { %6724 = vmatmul.mubr.msk.f32.gmra.mrb[70].mxu1 %vm471_vm0, %v7547_v20  ;;  %v9433_v54 = vadd.f32 %v6530_v49, %v9268_v62  ;;  %v1716_v10 = vpop.f32.mrb[45].mxu0  ;;  %6928 = vmatmul.mubr.msk.f32.gmra.mrb[54].mxu0 %vm471_vm0, %v9273_v26  ;;  %v7550_v49 = vld [vmem:[%s8207_s18 + $0x100] sm:$0xff] }
 0x254   : > { %6726 = vmatprep.mubr.msk.f32.mxu1 %vm471_vm0, %v7548_v48  ;;  %v9440_v3 = vadd.f32 %v1716_v10, %v9270_v6  ;;  %6930 = vmatprep.mubr.msk.f32.mxu0 %vm471_vm0, %v9283_v9  ;;  %v7551_v9 = vld [vmem:[%s8207_s18 + $0x108] sm:$0xff] }
 0x255   : > { %11191 = vst [vmem:[#allocation38_spill] sm:$0xff] %v9433_v54  ;;  %v11195_v10 = vld [vmem:[#allocation33_spill] sm:$0xff] }
 0x256   : > { %11192 = vst [vmem:[#allocation39_spill] sm:$0xff] %v9440_v3  ;;  %v6533_v7 = vpop.f32.mrb[46].mxu0 }
 0x257   : > { %6727 = vmatmul.mubr.msk.f32.gmra.mrb[72].mxu1 %vm471_vm0, %v7549_v1  ;;  %v9447_v62 = vadd.f32 %v6533_v7, %v9292_v0  ;;  %v1726_v26 = vpop.f32.mrb[47].mxu0  ;;  %6931 = vmatmul.mubr.msk.f32.gmra.mrb[56].mxu0 %vm471_vm0, %v9297_v51  ;;  %v7552_v0 = vld [vmem:[%s8207_s18 + $0x110] sm:$0xff]  ;;  %v7553_v51 = vld [vmem:[%s8207_s18 + $0x118] sm:$0xff] }
 0x258   : > { %6729 = vmatprep.mubr.msk.f32.mxu1 %vm471_vm0, %v7550_v49  ;;  %v9454_v6 = vadd.f32 %v1726_v26, %v9294_v14  ;;  %6933 = vmatprep.mubr.msk.f32.mxu0 %vm471_vm0, %v9307_v21  ;;  %v7554_v14 = vld [vmem:[%s8207_s18 + $0x120] sm:$0xff]  ;;  %v7555_v21 = vld [vmem:[%s8207_s18 + $0x128] sm:$0xff] }
 0x259   : > { %11193 = vst [vmem:[#allocation40_spill] sm:$0xff] %v9447_v62  ;;  %v11197_v7 = vld [vmem:[#allocation35_spill] sm:$0xff] }
 0x25a   : > { %11194 = vst [vmem:[#allocation41_spill] sm:$0xff] %v9454_v6  ;;  %v7570_v26 = vld [vmem:[%s8207_s18 + $0x1a0] sm:$0xff] }
 0x25b   : > { %6730 = vmatmul.mubr.msk.f32.gmra.mrb[74].mxu1 %vm471_vm0, %v7551_v9  ;;  %6934 = vmatmul.mubr.msk.f32.gmra.mrb[58].mxu0 %vm471_vm0, %v9317_v15  ;;  %v7556_v15 = vld [vmem:[%s8207_s18 + $0x130] sm:$0xff] }
 0x25c   : > { %6732 = vmatprep.mubr.msk.f32.mxu1 %vm471_vm0, %v7552_v0  ;;  %6936 = vmatprep.mubr.msk.f32.mxu0 %vm471_vm0, %v9327_v52  ;;  %v7557_v52 = vld [vmem:[%s8207_s18 + $0x138] sm:$0xff] }
 0x25f   : > { %6733 = vmatmul.mubr.msk.f32.gmra.mrb[76].mxu1 %vm471_vm0, %v7553_v51  ;;  %6937 = vmatmul.mubr.msk.f32.gmra.mrb[60].mxu0 %vm471_vm0, %v9337_v17  ;;  %v7558_v17 = vld [vmem:[%s8207_s18 + $0x140] sm:$0xff] }
 0x260   : > { %6735 = vmatprep.mubr.msk.f32.mxu1 %vm471_vm0, %v7554_v14  ;;  %6939 = vmatprep.mubr.msk.f32.mxu0 %vm471_vm0, %v9347_v34  ;;  %v7559_v34 = vld [vmem:[%s8207_s18 + $0x148] sm:$0xff] }
 0x263   : > { %6736 = vmatmul.mubr.msk.f32.gmra.mrb[78].mxu1 %vm471_vm0, %v7555_v21  ;;  %6940 = vmatmul.mubr.msk.f32.gmra.mrb[62].mxu0 %vm471_vm0, %v9357_v50  ;;  %v7560_v50 = vld [vmem:[%s8207_s18 + $0x150] sm:$0xff] }
 0x264   : > { %6738 = vmatprep.mubr.msk.f32.mxu1 %vm471_vm0, %v7556_v15  ;;  %6942 = vmatprep.mubr.msk.f32.mxu0 %vm471_vm0, %v9367_v12  ;;  %v7561_v12 = vld [vmem:[%s8207_s18 + $0x158] sm:$0xff] }
 0x267   : > { %6739 = vmatmul.mubr.msk.f32.gmra.mrb[80].mxu1 %vm471_vm0, %v7557_v52  ;;  %6943 = vmatmul.mubr.msk.f32.gmra.mrb[64].mxu0 %vm471_vm0, %v9377_v58  ;;  %v7562_v58 = vld [vmem:[%s8207_s18 + $0x160] sm:$0xff] }
 0x268   : > { %6741 = vmatprep.mubr.msk.f32.mxu1 %vm471_vm0, %v7558_v17  ;;  %6945 = vmatprep.mubr.msk.f32.mxu0 %vm471_vm0, %v9387_v13  ;;  %v7563_v13 = vld [vmem:[%s8207_s18 + $0x168] sm:$0xff] }
 0x26b   : > { %6742 = vmatmul.mubr.msk.f32.gmra.mrb[82].mxu1 %vm471_vm0, %v7559_v34  ;;  %6946 = vmatmul.mubr.msk.f32.gmra.mrb[66].mxu0 %vm471_vm0, %v9397_v38  ;;  %v7564_v38 = vld [vmem:[%s8207_s18 + $0x170] sm:$0xff] }
 0x26c   : > { %6744 = vmatprep.mubr.msk.f32.mxu1 %vm471_vm0, %v7560_v50  ;;  %6948 = vmatprep.mubr.msk.f32.mxu0 %vm471_vm0, %v9407_v43  ;;  %v7565_v43 = vld [vmem:[%s8207_s18 + $0x178] sm:$0xff] }
 0x26f   : > { %6745 = vmatmul.mubr.msk.f32.gmra.mrb[84].mxu1 %vm471_vm0, %v7561_v12  ;;  %6949 = vmatmul.mubr.msk.f32.gmra.mrb[68].mxu0 %vm471_vm0, %v7545_v18  ;;  %v7566_v18 = vld [vmem:[%s8207_s18 + $0x180] sm:$0xff] }
 0x270   : > { %6747 = vmatprep.mubr.msk.f32.mxu1 %vm471_vm0, %v7562_v58  ;;  %6951 = vmatprep.mubr.msk.f32.mxu0 %vm471_vm0, %v7546_v46  ;;  %v7567_v46 = vld [vmem:[%s8207_s18 + $0x188] sm:$0xff] }
 0x273   : > { %6748 = vmatmul.mubr.msk.f32.gmra.mrb[86].mxu1 %vm471_vm0, %v7563_v13  ;;  %6952 = vmatmul.mubr.msk.f32.gmra.mrb[70].mxu0 %vm471_vm0, %v7547_v20  ;;  %v7568_v20 = vld [vmem:[%s8207_s18 + $0x190] sm:$0xff] }
 0x274   : > { %6750 = vmatprep.mubr.msk.f32.mxu1 %vm471_vm0, %v7564_v38  ;;  %6954 = vmatprep.mubr.msk.f32.mxu0 %vm471_vm0, %v7548_v48  ;;  %v11196_v48 = vld [vmem:[#allocation34_spill] sm:$0xff] }
 0x277   : > { %6751 = vmatmul.mubr.msk.f32.gmra.mrb[88].mxu1 %vm471_vm0, %v7565_v43  ;;  %6955 = vmatmul.mubr.msk.f32.gmra.mrb[72].mxu0 %vm471_vm0, %v7549_v1  ;;  %v7569_v1 = vld [vmem:[%s8207_s18 + $0x198] sm:$0xff] }
 0x278   : > { %6753 = vmatprep.mubr.msk.f32.mxu1 %vm471_vm0, %v7566_v18  ;;  %6957 = vmatprep.mubr.msk.f32.mxu0 %vm471_vm0, %v7550_v49  ;;  %v7571_v49 = vld [vmem:[%s8207_s18 + $0x1a8] sm:$0xff] }
 0x27b   : > { %6754 = vmatmul.mubr.msk.f32.gmra.mrb[90].mxu1 %vm471_vm0, %v7567_v46  ;;  %6958 = vmatmul.mubr.msk.f32.gmra.mrb[74].mxu0 %vm471_vm0, %v7551_v9  ;;  %v11032_v9 = vmov 0.0|0.0  }
 0x27c   : > { %6756 = vmatprep.mubr.msk.f32.mxu1 %vm471_vm0, %v7568_v20  ;;  %6960 = vmatprep.mubr.msk.f32.mxu0 %vm471_vm0, %v7552_v0  ;;  %v4457_v0 = vld [vmem:[#allocation10] sm:$0xff] }
 0x27d   : > { %7070 = vmatprep.subr.bf16.mxu1 %v11032_v9 }
 0x27f   : > { %6757 = vmatmul.mubr.msk.f32.gmra.mrb[92].mxu1 %vm471_vm0, %v11195_v10  ;;  %6961 = vmatmul.mubr.msk.f32.gmra.mrb[76].mxu0 %vm471_vm0, %v7553_v51  ;;  %v4458_v51 = vld [vmem:[#allocation10 + $0x8] sm:$0xff] }
 0x280   : > { %6759 = vmatprep.mubr.msk.f32.mxu1 %vm471_vm0, %v11196_v48  ;;  %6963 = vmatprep.mubr.msk.f32.mxu0 %vm471_vm0, %v7554_v14  ;;  %v9551_v14 = vpack.c.bf16 %v4458_v51, %v4457_v0 }
 0x282   : > { %11198 = vst [vmem:[#allocation33_spill] sm:$0xff] %v9551_v14  ;;  %7072 = vmatpush3.bf16.msra.mxu1 %v9551_v14 }
 0x283   : > { %6760 = vmatmul.mubr.msk.f32.gmra.mrb[94].mxu1 %vm471_vm0, %v11197_v7  ;;  %6964 = vmatmul.mubr.msk.f32.gmra.mrb[78].mxu0 %vm471_vm0, %v7555_v21  ;;  %v2803_v21 = vlaneseq }
 0x284   : > { %6966 = vmatprep.mubr.msk.f32.mxu0 %vm471_vm0, %v7556_v15  ;;  %7073 = vmatprep.subr.bf16.mxu1 %v11032_v9 }
 0x285   : > { %v9555_v15 = vshrl.u32 %v2803_v21, 7 }
 0x287   : > { %6967 = vmatmul.mubr.msk.f32.gmra.mrb[80].mxu0 %vm471_vm0, %v7557_v52  ;;  %v4459_v52 = vld [vmem:[#allocation10 + $0x10] sm:$0xff]  ;;  %vm2805_vm1 = vcmp.lt.s32.totalorder %v9555_v15, 7  ;;  %vm3922_vm3 = vcmp.lt.s32.totalorder %v9555_v15, 6 }
 0x288   : > { %6969 = vmatprep.mubr.msk.f32.mxu0 %vm471_vm0, %v7558_v17  ;;  %v4460_v17 = vld [vmem:[#allocation10 + $0x18] sm:$0xff] }
 0x28b   : > { %6970 = vmatmul.mubr.msk.f32.gmra.mrb[82].mxu0 %vm471_vm0, %v7559_v34 }
 0x28c   : > { %6972 = vmatprep.mubr.msk.f32.mxu0 %vm471_vm0, %v7560_v50  ;;  %v9557_v50 = vpack.c.bf16 %v4460_v17, %v4459_v52 }
 0x28e   : > { %11199 = vst [vmem:[#allocation34_spill] sm:$0xff] %v9557_v50  ;;  %7075 = vmatpush3.bf16.msra.mxu1 %v9557_v50 }
 0x28f   : > { %6973 = vmatmul.mubr.msk.f32.gmra.mrb[84].mxu0 %vm471_vm0, %v7561_v12  ;;  %7076 = vmatprep.subr.bf16.mxu1 %v11032_v9 }
 0x290   : > { %6975 = vmatprep.mubr.msk.f32.mxu0 %vm471_vm0, %v7562_v58 }
 0x293   : > { %6976 = vmatmul.mubr.msk.f32.gmra.mrb[86].mxu0 %vm471_vm0, %v7563_v13  ;;  %v9562_v13 = vpop.permute.xlu0 %4069 }
 0x294   : > { %6978 = vmatprep.mubr.msk.f32.mxu0 %vm471_vm0, %v7564_v38  ;;  %11201 = vst [vmem:[#allocation42_spill] sm:$0xff] %v9562_v13 }
 0x297   : > { %6979 = vmatmul.mubr.msk.f32.gmra.mrb[88].mxu0 %vm471_vm0, %v7565_v43  ;;  %v9567_v43 = vpop.permute.xlu1 %4079 }
 0x298   : > { %6981 = vmatprep.mubr.msk.f32.mxu0 %vm471_vm0, %v7566_v18  ;;  %11202 = vst [vmem:[#allocation43_spill] sm:$0xff] %v9567_v43 }
 0x29b   : > { %6982 = vmatmul.mubr.msk.f32.gmra.mrb[90].mxu0 %vm471_vm0, %v7567_v46  ;;  %v9588_v17 = vpop.permute.xlu1 %4084 }
 0x29c   : > { %6984 = vmatprep.mubr.msk.f32.mxu0 %vm471_vm0, %v7568_v20  ;;  %11204 = vst [vmem:[#allocation45_spill] sm:$0xff] %v9588_v17 }
 0x29f   : > { %6985 = vmatmul.mubr.msk.f32.gmra.mrb[92].mxu0 %vm471_vm0, %v7569_v1  ;;  %v9576_v1 = vpop.permute.xlu0 %4074 }
 0x2a0   : > { %6987 = vmatprep.mubr.msk.f32.mxu0 %vm471_vm0, %v7570_v26  ;;  %11203 = vst [vmem:[#allocation44_spill] sm:$0xff] %v9576_v1 }
 0x2a3   : > { %6988 = vmatmul.mubr.msk.f32.gmra.mrb[94].mxu0 %vm471_vm0, %v7571_v49 }
 0x2fa   : > { %v6692_v34 = vpop.f32.mrb[48].mxu1 }
 0x2fb   : > { %v2756_v12 = vrot.slane %v6692_v34, 1  ;;  %v9559_v58 = vpop.f32.mrb[49].mxu1 }
 0x2fc   : > { %11200 = vst [vmem:[#allocation35_spill] sm:$0xff] %v9559_v58  ;;  %v11034_v38 = vrot.slane %v9559_v58, 1 }
 0x2fe   : > { %v2852_v18 = vsel %vm2805_vm1, %v11034_v38, %v2756_v12  ;;  %v6695_v46 = vpop.f32.mrb[50].mxu1 }
 0x2ff   : > { %v9574_v20 = vadd.f32 %v9037_v22, %v2852_v18  ;;  %v2758_v10 = vrot.slane %v6695_v46, 1  ;;  %v2478_v48 = vpop.f32.mrb[51].mxu1 }
 0x300   : > { %v2757_v7 = vrot.slane %v2478_v48, 1 }
 0x302   : > { %v2850_v26 = vsel %vm2805_vm1, %v2757_v7, %v2758_v10  ;;  %v2851_v49 = vsel %vm2805_vm1, %v2756_v12, %v2757_v7  ;;  %v6698_v0 = vpop.f32.mrb[52].mxu1 }
 0x303   : > { %v9583_v51 = vadd.f32 %v9030_v4, %v2851_v49  ;;  %v9586_v21 = vadd.f32 %v9051_v25, %v2850_v26  ;;  %v2760_v22 = vrot.slane %v6698_v0, 1  ;;  %v2488_v52 = vpop.f32.mrb[53].mxu1  ;;  %v9600_v26 = vpop.permute.xlu0 %4089 }
 0x304   : > { %v2759_v34 = vrot.slane %v2488_v52, 1  ;;  %11205 = vst [vmem:[#allocation46_spill] sm:$0xff] %v9600_v26  ;;  %v9602_v0 = vpop.permute.xlu1 %4094 }
 0x305   : > { %11206 = vst [vmem:[#allocation47_spill] sm:$0xff] %v9602_v0 }
 0x306   : > { %v2848_v18 = vsel %vm2805_vm1, %v2759_v34, %v2760_v22  ;;  %v2849_v46 = vsel %vm2805_vm1, %v2758_v10, %v2759_v34  ;;  %v6701_v48 = vpop.f32.mrb[54].mxu1 }
 0x307   : > { %v9595_v12 = vadd.f32 %v9044_v55, %v2849_v46  ;;  %v9598_v4 = vadd.f32 %v9065_v29, %v2848_v18  ;;  %v2762_v25 = vrot.slane %v6701_v48, 1  ;;  %v2498_v7 = vpop.f32.mrb[55].mxu1  ;;  %v9614_v9 = vpop.permute.xlu0 %4099 }
 0x308   : > { %v2761_v49 = vrot.slane %v2498_v7, 1  ;;  %11207 = vst [vmem:[#allocation48_spill] sm:$0xff] %v9614_v9 }
 0x30a   : > { %v2846_v52 = vsel %vm2805_vm1, %v2761_v49, %v2762_v25  ;;  %v2847_v10 = vsel %vm2805_vm1, %v2760_v22, %v2761_v49  ;;  %v6704_v34 = vpop.f32.mrb[56].mxu1 }
 0x30b   : > { %v9609_v55 = vadd.f32 %v9058_v8, %v2847_v10  ;;  %v9612_v29 = vadd.f32 %v9079_v31, %v2846_v52  ;;  %v2764_v18 = vrot.slane %v6704_v34, 1  ;;  %v2508_v46 = vpop.f32.mrb[57].mxu1  ;;  %v9626_v52 = vpop.permute.xlu1 %4104 }
 0x30c   : > { %v2763_v48 = vrot.slane %v2508_v46, 1  ;;  %11208 = vst [vmem:[#allocation49_spill] sm:$0xff] %v9626_v52 }
 0x30e   : > { %v2844_v7 = vsel %vm2805_vm1, %v2763_v48, %v2764_v18  ;;  %v2845_v38 = vsel %vm2805_vm1, %v2762_v25, %v2763_v48  ;;  %v6707_v50 = vpop.f32.mrb[58].mxu1 }
 0x30f   : > { %v9621_v22 = vadd.f32 %v9072_v11, %v2845_v38  ;;  %v9624_v8 = vadd.f32 %v9093_v33, %v2844_v7  ;;  %v2766_v31 = vrot.slane %v6707_v50, 1  ;;  %v2518_v49 = vpop.f32.mrb[59].mxu1  ;;  %v9638_v50 = vpop.permute.xlu0 %4109 }
 0x310   : > { %v2765_v10 = vrot.slane %v2518_v49, 1  ;;  %11209 = vst [vmem:[#allocation50_spill] sm:$0xff] %v9638_v50  ;;  %v9640_v7 = vpop.permute.xlu1 %4114 }
 0x311   : > { %11210 = vst [vmem:[#allocation51_spill] sm:$0xff] %v9640_v7 }
 0x312   : > { %v2842_v34 = vsel %vm2805_vm1, %v2765_v10, %v2766_v31  ;;  %v2843_v46 = vsel %vm2805_vm1, %v2764_v18, %v2765_v10  ;;  %v6710_v14 = vpop.f32.mrb[60].mxu1 }
 0x313   : > { %v9633_v25 = vadd.f32 %v9086_v23, %v2843_v46  ;;  %v9636_v11 = vadd.f32 %v9107_v35, %v2842_v34  ;;  %v2768_v33 = vrot.slane %v6710_v14, 1  ;;  %v2528_v38 = vpop.f32.mrb[61].mxu1  ;;  %v9654_v6 = vpop.permute.xlu0 %4119 }
 0x314   : > { %v2767_v48 = vrot.slane %v2528_v38, 1  ;;  %v11037_v38 = vmov 0.0   ;;  %11211 = vst [vmem:[#allocation52_spill] sm:$0xff] %v9654_v6  ;;  %v9666_v54 = vpop.permute.xlu1 %4124 }
 0x315   : > { %6998 = vmatprep.mubr.msk.f32.mxu1 %vm7877_vm2, %v11037_v38  ;;  %11212 = vst [vmem:[#allocation53_spill] sm:$0xff] %v9666_v54 }
 0x316   : > { %v2840_v49 = vsel %vm2805_vm1, %v2767_v48, %v2768_v33  ;;  %v2841_v18 = vsel %vm2805_vm1, %v2766_v31, %v2767_v48  ;;  %v6713_v10 = vpop.f32.mrb[62].mxu1 }
 0x317   : > { %v9647_v23 = vadd.f32 %v9100_v27, %v2841_v18  ;;  %v9650_v35 = vadd.f32 %v9121_v37, %v2840_v49  ;;  %v2770_v14 = vrot.slane %v6713_v10, 1  ;;  %v2538_v34 = vpop.f32.mrb[63].mxu1  ;;  %v9686_v63 = vpop.permute.xlu0 %4129 }
 0x318   : > { %v2769_v46 = vrot.slane %v2538_v34, 1  ;;  %11214 = vst [vmem:[#allocation55_spill] sm:$0xff] %v9686_v63  ;;  %v9691_v47 = vpop.permute.xlu1 %4134 }
 0x319   : > { %11216 = vst [vmem:[#allocation57_spill] sm:$0xff] %v9691_v47 }
 0x31a   : > { %v2838_v31 = vsel %vm2805_vm1, %v2769_v46, %v2770_v14  ;;  %v2839_v27 = vsel %vm2805_vm1, %v2768_v33, %v2769_v46  ;;  %v6716_v48 = vpop.f32.mrb[64].mxu1  ;;  %v6920_v10 = vpop.f32.mrb[48].mxu0 }
 0x31b   : > { %v9661_v37 = vadd.f32 %v9114_v30, %v2839_v27  ;;  %v9664_v49 = vadd.f32 %v9135_v39, %v2838_v31  ;;  %v2772_v18 = vrot.slane %v6716_v48, 1  ;;  %v2548_v34 = vpop.f32.mrb[65].mxu1  ;;  %v3875_v38 = vrot.slane %v6920_v10, 2  ;;  %v9668_v58 = vpop.f32.mrb[49].mxu0 }
 0x31c   : > { %v2771_v62 = vrot.slane %v2548_v34, 1  ;;  %11213 = vst [vmem:[#allocation54_spill] sm:$0xff] %v9668_v58  ;;  %v11040_v33 = vrot.slane %v9668_v58, 2  ;;  %v9715_v45 = vpop.permute.xlu0 %4139 }
 0x31d   : > { %11219 = vst [vmem:[#allocation60_spill] sm:$0xff] %v9715_v45 }
 0x31e   : > { %v2836_v30 = vsel %vm2805_vm1, %v2771_v62, %v2772_v18  ;;  %v2837_v39 = vsel %vm2805_vm1, %v2770_v14, %v2771_v62  ;;  %v6719_v46 = vpop.f32.mrb[66].mxu1  ;;  %v3969_v48 = vsel %vm3922_vm3, %v11040_v33, %v3875_v38  ;;  %v6923_v34 = vpop.f32.mrb[50].mxu0 }
 0x31f   : > { %v9677_v31 = vadd.f32 %v9128_v32, %v2837_v39  ;;  %v9680_v27 = vadd.f32 %v9153_v36, %v2836_v30  ;;  %v2774_v10 = vrot.slane %v6719_v46, 1  ;;  %v2558_v3 = vpop.f32.mrb[67].mxu1  ;;  %v9689_v61 = vadd.f32 %v3969_v48, %v9574_v20  ;;  %v3597_v32 = vpop.f32.mrb[51].mxu0 }
 0x320   : > { %v3877_v62 = vrot.slane %v6923_v34, 2  ;;  %v2773_v14 = vrot.slane %v2558_v3, 1  ;;  %v3876_v39 = vrot.slane %v3597_v32, 2 }
 0x321   : > { %11215 = vst [vmem:[#allocation56_spill] sm:$0xff] %v9689_v61  ;;  %v4307_v32 = vmul.f32 %v9562_v13, %v9689_v61 }
 0x322   : > { %v2834_v36 = vsel %vm2805_vm1, %v2773_v14, %v2774_v10  ;;  %v2835_v30 = vsel %vm2805_vm1, %v2772_v18, %v2773_v14  ;;  %v6722_v46 = vpop.f32.mrb[68].mxu1  ;;  %v3967_v3 = vsel %vm3922_vm3, %v3876_v39, %v3877_v62  ;;  %v3968_v20 = vsel %vm3922_vm3, %v3875_v38, %v3876_v39  ;;  %v6926_v48 = vpop.f32.mrb[52].mxu0 }
 0x323   : > { %v9698_v33 = vadd.f32 %v9146_v40, %v2835_v30  ;;  %v9701_v58 = vadd.f32 %v9171_v5, %v2834_v36  ;;  %v2568_v34 = vpop.f32.mrb[69].mxu1  ;;  %v9710_v18 = vadd.f32 %v3968_v20, %v9583_v51  ;;  %v9713_v40 = vadd.f32 %v3967_v3, %v9586_v21  ;;  %v3607_v5 = vpop.f32.mrb[53].mxu0 }
 0x324   : > { %v2776_v14 = vrot.slane %v6722_v46, 1  ;;  %v3879_v36 = vrot.slane %v6926_v48, 2  ;;  %v2775_v30 = vrot.slane %v2568_v34, 1  ;;  %v3878_v44 = vrot.slane %v3607_v5, 2  ;;  %v9729_v34 = vpop.permute.xlu1 %4144 }
 0x325   : > { %11217 = vst [vmem:[#allocation58_spill] sm:$0xff] %v9710_v18  ;;  %11218 = vst [vmem:[#allocation59_spill] sm:$0xff] %v9713_v40  ;;  %v4308_v38 = vmul.f32 %v9576_v1, %v9710_v18  ;;  %v4309_v39 = vmul.f32 %v9567_v43, %v9713_v40  ;;  %v4356_v5 = vsel %vm4355_vm4, %v4307_v32, 0.0 }
 0x326   : > { %v6725_v13 = vpop.f32.mrb[70].mxu1  ;;  %v2832_v51 = vsel %vm2805_vm1, %v2775_v30, %v2776_v14  ;;  %v2833_v21 = vsel %vm2805_vm1, %v2774_v10, %v2775_v30  ;;  %v3965_v46 = vsel %vm3922_vm3, %v3878_v44, %v3879_v36  ;;  %v3966_v3 = vsel %vm3922_vm3, %v3877_v62, %v3878_v44  ;;  %v6929_v20 = vpop.f32.mrb[54].mxu0  ;;  %11220 = vst [vmem:[#allocation61_spill] sm:$0xff] %v9729_v34 }
 0x327   : > { %v2578_v48 = vpop.f32.mrb[71].mxu1  ;;  %v4357_v43 = vsel %vm4355_vm4, %v4308_v38, 0.0  ;;  %v9734_v1 = vadd.f32 %v9164_v42, %v2833_v21  ;;  %v9737_v40 = vadd.f32 %v9192_v60, %v2832_v51  ;;  %v3617_v10 = vpop.f32.mrb[55].mxu0  ;;  %v9740_v18 = vadd.f32 %v3966_v3, %v9595_v12 }
 0x328   : > { %v4358_v30 = vadd.f32 %v4357_v43, %v4356_v5  ;;  %v9743_v44 = vadd.f32 %v3965_v46, %v9598_v4  ;;  %v2778_v62 = vrot.slane %v6725_v13, 1  ;;  %v4359_v61 = vsel %vm4355_vm4, %v4309_v39, 0.0  ;;  %v9750_v21 = vpop.permute.xlu0 %4149 }
 0x329   : > { %11221 = vst [vmem:[#allocation62_spill] sm:$0xff] %v9740_v18  ;;  %v3881_v32 = vrot.slane %v6929_v20, 2  ;;  %v2777_v16 = vrot.slane %v2578_v48, 1  ;;  %v3880_v38 = vrot.slane %v3617_v10, 2  ;;  %v4310_v60 = vmul.f32 %v9588_v17, %v9740_v18  ;;  %11223 = vst [vmem:[#allocation64_spill] sm:$0xff] %v9750_v21  ;;  %v11224_v48 = vld [vmem:[#allocation21_spill] sm:$0xff] }
 0x32a   : > { %11222 = vst [vmem:[#allocation63_spill] sm:$0xff] %v9743_v44  ;;  %v6728_v28 = vpop.f32.mrb[72].mxu1  ;;  %v4360_v42 = vadd.f32 %v4359_v61, %v4358_v30  ;;  %v4311_v43 = vmul.f32 %v9600_v26, %v9743_v44  ;;  %v6932_v51 = vpop.f32.mrb[56].mxu0 }
 0x32b   : > { %v2588_v12 = vpop.f32.mrb[73].mxu1  ;;  %v2830_v13 = vsel %vm2805_vm1, %v2777_v16, %v2778_v62  ;;  %v2831_v4 = vsel %vm2805_vm1, %v2776_v14, %v2777_v16  ;;  %v3963_v39 = vsel %vm3922_vm3, %v3880_v38, %v3881_v32  ;;  %v3964_v61 = vsel %vm3922_vm3, %v3879_v36, %v3880_v38  ;;  %v3627_v46 = vpop.f32.mrb[57].mxu0 }
 0x32c   : > { %v4361_v3 = vsel %vm4355_vm4, %v4310_v60, 0.0  ;;  %v9762_v20 = vadd.f32 %v9182_v41, %v2831_v4  ;;  %v9765_v5 = vadd.f32 %v11224_v48, %v2830_v13  ;;  %v2780_v10 = vrot.slane %v6728_v28, 1  ;;  %v9767_v30 = vpop.permute.xlu1 %4154 }
 0x32d   : > { %11225 = vst [vmem:[#allocation21_spill] sm:$0xff] %v9767_v30  ;;  %v4362_v26 = vadd.f32 %v4361_v3, %v4360_v42  ;;  %v9770_v16 = vadd.f32 %v3964_v61, %v9609_v55  ;;  %v9773_v14 = vadd.f32 %v3963_v39, %v9612_v29  ;;  %v3883_v36 = vrot.slane %v6932_v51, 2  ;;  %v9791_v61 = vpop.permute.xlu0 %4159 }
 0x32e   : > { %v6731_v38 = vpop.f32.mrb[74].mxu1  ;;  %v4363_v60 = vsel %vm4355_vm4, %v4311_v43, 0.0  ;;  %v2779_v17 = vrot.slane %v2588_v12, 1  ;;  %v3882_v41 = vrot.slane %v3627_v46, 2  ;;  %v9776_v44 = vpop.f32.mrb[58].mxu0  ;;  %11228 = vst [vmem:[#allocation67_spill] sm:$0xff] %v9791_v61 }
 0x32f   : > { %11226 = vst [vmem:[#allocation65_spill] sm:$0xff] %v9770_v16  ;;  %11227 = vst [vmem:[#allocation66_spill] sm:$0xff] %v9773_v14  ;;  %v2782_v4 = vrot.slane %v6731_v38, 1  ;;  %v2598_v13 = vpop.f32.mrb[75].mxu1  ;;  %v4364_v28 = vadd.f32 %v4363_v60, %v4362_v26  ;;  %v4312_v42 = vmul.f32 %v9602_v0, %v9770_v16  ;;  %v4313_v55 = vmul.f32 %v9614_v9, %v9773_v14  ;;  %v3637_v39 = vpop.f32.mrb[59].mxu0  ;;  %v11230_v38 = vld [vmem:[#allocation23_spill] sm:$0xff] }
 0x330   : > { %v3885_v29 = vrot.slane %v9776_v44, 2  ;;  %v2828_v51 = vsel %vm2805_vm1, %v2779_v17, %v2780_v10  ;;  %v2829_v43 = vsel %vm2805_vm1, %v2778_v62, %v2779_v17  ;;  %v3961_v12 = vsel %vm3922_vm3, %v3882_v41, %v3883_v36  ;;  %v11229_v44 = vld [vmem:[#allocation20_spill] sm:$0xff]  ;;  %v9809_v14 = vpop.permute.xlu1 %4164 }
 0x331   : > { %v3962_v26 = vsel %vm3922_vm3, %v3881_v32, %v3882_v41  ;;  %v4365_v46 = vsel %vm4355_vm4, %v4312_v42, 0.0  ;;  %v4367_v3 = vsel %vm4355_vm4, %v4313_v55, 0.0  ;;  %v9796_v48 = vadd.f32 %v11229_v44, %v2829_v43  ;;  %11233 = vst [vmem:[#allocation68_spill] sm:$0xff] %v9809_v14 }
 0x332   : > { %v9799_v60 = vadd.f32 %v11230_v38, %v2828_v51  ;;  %v6734_v9 = vpop.f32.mrb[76].mxu1  ;;  %v4366_v17 = vadd.f32 %v4365_v46, %v4364_v28  ;;  %v9802_v62 = vadd.f32 %v3962_v26, %v9621_v22  ;;  %v9805_v0 = vadd.f32 %v3961_v12, %v9624_v8  ;;  %v9807_v41 = vpop.f32.mrb[60].mxu0  ;;  %v11234_v12 = vld [vmem:[#allocation25_spill] sm:$0xff] }
 0x333   : > { %v2781_v32 = vrot.slane %v2598_v13, 1  ;;  %v2608_v42 = vpop.f32.mrb[77].mxu1  ;;  %v3884_v55 = vrot.slane %v3637_v39, 2  ;;  %v2784_v43 = vrot.slane %v6734_v9, 1  ;;  %v3887_v44 = vrot.slane %v9807_v41, 2  ;;  %v3647_v38 = vpop.f32.mrb[61].mxu0 }
 0x334   : > { %11231 = vst [vmem:[#allocation20_spill] sm:$0xff] %v9802_v62  ;;  %11232 = vst [vmem:[#allocation23_spill] sm:$0xff] %v9805_v0  ;;  %v2783_v51 = vrot.slane %v2608_v42, 1  ;;  %v4368_v16 = vadd.f32 %v4367_v3, %v4366_v17  ;;  %v4314_v22 = vmul.f32 %v9626_v52, %v9802_v62  ;;  %v4315_v8 = vmul.f32 %v9638_v50, %v9805_v0  ;;  %v11235_v41 = vld [vmem:[#allocation22_spill] sm:$0xff] }
 0x335   : > { %v2826_v13 = vsel %vm2805_vm1, %v2781_v32, %v2782_v4  ;;  %v2827_v28 = vsel %vm2805_vm1, %v2780_v10, %v2781_v32  ;;  %v3959_v9 = vsel %vm3922_vm3, %v3884_v55, %v3885_v29  ;;  %v3960_v26 = vsel %vm3922_vm3, %v3883_v36, %v3884_v55 }
 0x336   : > { %v9821_v39 = vadd.f32 %v11234_v12, %v2826_v13  ;;  %v9827_v46 = vpop.f32.mrb[78].mxu1  ;;  %v4369_v3 = vsel %vm4355_vm4, %v4314_v22, 0.0  ;;  %v4371_v17 = vsel %vm4355_vm4, %v4315_v8, 0.0  ;;  %v9832_v42 = vadd.f32 %v11235_v41, %v2827_v28  ;;  %v9837_v32 = vpop.f32.mrb[62].mxu0  ;;  %v11239_v28 = vld [vmem:[#allocation24_spill] sm:$0xff] }
 0x337   : > { %v9835_v10 = vadd.f32 %v3960_v26, %v9633_v25  ;;  %v2618_v13 = vpop.f32.mrb[79].mxu1  ;;  %v9839_v12 = vpop.permute.xlu0 %4169  ;;  %v4370_v50 = vadd.f32 %v4369_v3, %v4368_v16  ;;  %v9842_v36 = vadd.f32 %v3959_v9, %v9636_v11  ;;  %v2824_v55 = vsel %vm2805_vm1, %v2783_v51, %v2784_v43 }
 0x338   : > { %11237 = vst [vmem:[#allocation22_spill] sm:$0xff] %v9839_v12  ;;  %v2825_v22 = vsel %vm2805_vm1, %v2782_v4, %v2783_v51  ;;  %v3657_v8 = vpop.f32.mrb[63].mxu0  ;;  %v9854_v41 = vadd.f32 %v9288_v2, %v2824_v55  ;;  %v3886_v16 = vrot.slane %v3647_v38, 2  ;;  %v9856_v3 = vpop.permute.xlu1 %4174  ;;  %v2786_v52 = vrot.slane %v9827_v46, 1 }
 0x339   : > { %11236 = vst [vmem:[#allocation25_spill] sm:$0xff] %v9835_v10  ;;  %11238 = vst [vmem:[#allocation69_spill] sm:$0xff] %v9842_v36  ;;  %v4316_v25 = vmul.f32 %v9640_v7, %v9835_v10  ;;  %v9851_v26 = vadd.f32 %v11239_v28, %v2825_v22  ;;  %v4372_v11 = vadd.f32 %v4371_v17, %v4370_v50  ;;  %v3889_v4 = vrot.slane %v9837_v32, 2 }
 0x33a   : > { %11240 = vst [vmem:[#allocation24_spill] sm:$0xff] %v9856_v3  ;;  %v4317_v9 = vmul.f32 %v9654_v6, %v9842_v36  ;;  %v9862_v51 = vpop.f32.mrb[80].mxu1  ;;  %v3957_v22 = vsel %vm3922_vm3, %v3886_v16, %v3887_v44  ;;  %v3958_v2 = vsel %vm3922_vm3, %v3885_v29, %v3886_v16  ;;  %v2785_v38 = vrot.slane %v2618_v13, 1  ;;  %v9869_v55 = vpop.f32.mrb[64].mxu0 }
 0x33b   : > { %v4373_v7 = vsel %vm4355_vm4, %v4316_v25, 0.0  ;;  %v2628_v50 = vpop.f32.mrb[81].mxu1  ;;  %v9873_v46 = vadd.f32 %v3958_v2, %v9647_v23  ;;  %v9876_v32 = vadd.f32 %v3957_v22, %v9650_v35  ;;  %v3667_v25 = vpop.f32.mrb[65].mxu0  ;;  %v3888_v13 = vrot.slane %v3657_v8, 2 }
 0x33c   : > { %v4374_v17 = vadd.f32 %v4373_v7, %v4372_v11  ;;  %v4375_v28 = vsel %vm4355_vm4, %v4317_v9, 0.0  ;;  %v2822_v6 = vsel %vm2805_vm1, %v2785_v38, %v2786_v52  ;;  %v2823_v29 = vsel %vm2805_vm1, %v2784_v43, %v2785_v38  ;;  %v9883_v36 = vpop.permute.xlu0 %4179  ;;  %v11244_v11 = vld [vmem:[#allocation26_spill] sm:$0xff] }
 0x33d   : > { %11241 = vst [vmem:[#allocation70_spill] sm:$0xff] %v9873_v46  ;;  %11242 = vst [vmem:[#allocation71_spill] sm:$0xff] %v9876_v32  ;;  %v2788_v16 = vrot.slane %v9862_v51, 1  ;;  %v4318_v23 = vmul.f32 %v9666_v54, %v9873_v46  ;;  %v4319_v35 = vmul.f32 %v9686_v63, %v9876_v32  ;;  %v9890_v9 = vadd.f32 %v11244_v11, %v2823_v29 }
 0x33e   : > { %11243 = vst [vmem:[#allocation72_spill] sm:$0xff] %v9883_v36  ;;  %v4376_v7 = vadd.f32 %v4375_v28, %v4374_v17  ;;  %v9892_v22 = vpop.f32.mrb[82].mxu1  ;;  %v9895_v2 = vadd.f32 %v9312_v19, %v2822_v6  ;;  %v3955_v43 = vsel %vm3922_vm3, %v3888_v13, %v3889_v4  ;;  %v3956_v8 = vsel %vm3922_vm3, %v3887_v44, %v3888_v13  ;;  %v9902_v38 = vpop.f32.mrb[66].mxu0 }
 0x33f   : > { %v3891_v51 = vrot.slane %v9869_v55, 2  ;;  %v2638_v17 = vpop.f32.mrb[83].mxu1  ;;  %v9904_v28 = vpop.permute.xlu1 %4184  ;;  %v4377_v29 = vsel %vm4355_vm4, %v4318_v23, 0.0  ;;  %v4379_v11 = vsel %vm4355_vm4, %v4319_v35, 0.0  ;;  %v9909_v19 = vadd.f32 %v3956_v8, %v9661_v37 }
 0x340   : > { %11245 = vst [vmem:[#allocation26_spill] sm:$0xff] %v9904_v28  ;;  %v9912_v6 = vadd.f32 %v3955_v43, %v9664_v49  ;;  %v3677_v63 = vpop.f32.mrb[67].mxu0  ;;  %v4378_v54 = vadd.f32 %v4377_v29, %v4376_v7  ;;  %v2787_v44 = vrot.slane %v2628_v50, 1  ;;  %v3890_v13 = vrot.slane %v3667_v25, 2  ;;  %v9930_v43 = vpop.permute.xlu0 %4189 }
 0x341   : > { %v2790_v55 = vrot.slane %v9892_v22, 1  ;;  %v4320_v32 = vmul.f32 %v9691_v47, %v9909_v19  ;;  %v3893_v35 = vrot.slane %v9902_v38, 2  ;;  %v2789_v46 = vrot.slane %v2638_v17, 1  ;;  %11246 = vst [vmem:[#allocation73_spill] sm:$0xff] %v9930_v43 }
 0x342   : > { %v4321_v23 = vmul.f32 %v9715_v45, %v9912_v6  ;;  %v9920_v37 = vpop.f32.mrb[84].mxu1  ;;  %v4380_v8 = vadd.f32 %v4379_v11, %v4378_v54  ;;  %v2820_v49 = vsel %vm2805_vm1, %v2787_v44, %v2788_v16  ;;  %v2821_v50 = vsel %vm2805_vm1, %v2786_v52, %v2787_v44  ;;  %v9928_v7 = vpop.f32.mrb[68].mxu0 }
 0x343   : > { %v3953_v25 = vsel %vm3922_vm3, %v3890_v13, %v3891_v51  ;;  %v2648_v22 = vpop.f32.mrb[85].mxu1  ;;  %v4381_v38 = vsel %vm4355_vm4, %v4320_v32, 0.0  ;;  %v9935_v54 = vadd.f32 %v9302_v53, %v2821_v50  ;;  %v9938_v29 = vadd.f32 %v9332_v24, %v2820_v49  ;;  %v3687_v11 = vpop.f32.mrb[69].mxu0 }
 0x344   : > { %v4383_v17 = vsel %vm4355_vm4, %v4321_v23, 0.0  ;;  %v4382_v52 = vadd.f32 %v4381_v38, %v4380_v8  ;;  %v3954_v44 = vsel %vm3922_vm3, %v3889_v4, %v3890_v13  ;;  %v9943_v45 = vadd.f32 %v3953_v25, %v9680_v27  ;;  %v9947_v32 = vpop.permute.xlu1 %4194 }
 0x345   : > { %v2818_v47 = vsel %vm2805_vm1, %v2789_v46, %v2790_v55  ;;  %v9950_v23 = vadd.f32 %v3954_v44, %v9677_v31  ;;  %v2819_v53 = vsel %vm2805_vm1, %v2788_v16, %v2789_v46  ;;  %v3892_v8 = vrot.slane %v3677_v63, 2 }
 0x346   : > { %11247 = vst [vmem:[#allocation74_spill] sm:$0xff] %v9943_v45  ;;  %v9955_v24 = vadd.f32 %v9352_v57, %v2818_v47  ;;  %v9957_v49 = vpop.f32.mrb[86].mxu1  ;;  %v4384_v4 = vadd.f32 %v4383_v17, %v4382_v52  ;;  %v4323_v27 = vmul.f32 %v9750_v21, %v9943_v45  ;;  %v9962_v13 = vadd.f32 %v9322_v56, %v2819_v53  ;;  %v9965_v31 = vpop.f32.mrb[70].mxu0 }
 0x347   : > { %11248 = vst [vmem:[#allocation75_spill] sm:$0xff] %v9950_v23  ;;  %v2792_v50 = vrot.slane %v9920_v37, 1  ;;  %v2658_v25 = vpop.f32.mrb[87].mxu1  ;;  %v4322_v46 = vmul.f32 %v9729_v34, %v9950_v23  ;;  %v3951_v57 = vsel %vm3922_vm3, %v3892_v8, %v3893_v35  ;;  %v3952_v47 = vsel %vm3922_vm3, %v3891_v51, %v3892_v8  ;;  %v3697_v16 = vpop.f32.mrb[71].mxu0 }
 0x348   : > { %v3895_v63 = vrot.slane %v9928_v7, 2  ;;  %v4387_v56 = vsel %vm4355_vm4, %v4323_v27, 0.0  ;;  %v9976_v38 = vadd.f32 %v3952_v47, %v9698_v33  ;;  %v9979_v37 = vadd.f32 %v3951_v57, %v9701_v58  ;;  %v9981_v52 = vpop.permute.xlu0 %4199 }
 0x349   : > { %v2791_v17 = vrot.slane %v2648_v22, 1  ;;  %11251 = vst [vmem:[#allocation78_spill] sm:$0xff] %v9981_v52  ;;  %v4385_v44 = vsel %vm4355_vm4, %v4322_v46, 0.0  ;;  %v3894_v53 = vrot.slane %v3687_v11, 2  ;;  %v2794_v21 = vrot.slane %v9957_v49, 1  ;;  %v9996_v11 = vpop.permute.xlu1 %4204 }
 0x34a   : > { %11249 = vst [vmem:[#allocation76_spill] sm:$0xff] %v9976_v38  ;;  %11250 = vst [vmem:[#allocation77_spill] sm:$0xff] %v9979_v37  ;;  %v9986_v7 = vpop.f32.mrb[88].mxu1  ;;  %v4386_v8 = vadd.f32 %v4385_v44, %v4384_v4  ;;  %v4324_v33 = vmul.f32 %v9767_v30, %v9976_v38  ;;  %v4325_v58 = vmul.f32 %v9791_v61, %v9979_v37  ;;  %v9994_v27 = vpop.f32.mrb[72].mxu0  ;;  %v11252_v37 = vld [vmem:[#allocation27_spill] sm:$0xff] }
 0x34b   : > { %v2816_v22 = vsel %vm2805_vm1, %v2791_v17, %v2792_v50  ;;  %v2668_v46 = vpop.f32.mrb[89].mxu1  ;;  %v2817_v49 = vsel %vm2805_vm1, %v2790_v55, %v2791_v17  ;;  %v3949_v4 = vsel %vm3922_vm3, %v3894_v53, %v3895_v63  ;;  %v3950_v47 = vsel %vm3922_vm3, %v3893_v35, %v3894_v53  ;;  %v3707_v44 = vpop.f32.mrb[73].mxu0 }
 0x34c   : > { %v10001_v57 = vadd.f32 %v9372_v59, %v2816_v22  ;;  %v4388_v51 = vadd.f32 %v4387_v56, %v4386_v8  ;;  %v4389_v61 = vsel %vm4355_vm4, %v4324_v33, 0.0  ;;  %v4391_v30 = vsel %vm4355_vm4, %v4325_v58, 0.0  ;;  %v10024_v58 = vpop.permute.xlu0 %4209 }
 0x34d   : > { %v10010_v34 = vadd.f32 %v11252_v37, %v2817_v49  ;;  %v10013_v55 = vadd.f32 %v3950_v47, %v9734_v1  ;;  %v10016_v59 = vadd.f32 %v3949_v4, %v9737_v40  ;;  %v2793_v17 = vrot.slane %v2658_v25, 1  ;;  %11255 = vst [vmem:[#allocation80_spill] sm:$0xff] %v10024_v58 }
 0x34e   : > { %v3896_v22 = vrot.slane %v3697_v16, 2  ;;  %v10018_v38 = vpop.f32.mrb[90].mxu1  ;;  %v4390_v35 = vadd.f32 %v4389_v61, %v4388_v51  ;;  %v2796_v56 = vrot.slane %v9986_v7, 1  ;;  %v3899_v53 = vrot.slane %v9994_v27, 2  ;;  %v10022_v33 = vpop.f32.mrb[74].mxu0  ;;  %v11256_v7 = vld [vmem:[#allocation28_spill] sm:$0xff] }
 0x34f   : > { %11253 = vst [vmem:[#allocation27_spill] sm:$0xff] %v10013_v55  ;;  %11254 = vst [vmem:[#allocation79_spill] sm:$0xff] %v10016_v59  ;;  %v2795_v8 = vrot.slane %v2668_v46, 1  ;;  %v2678_v37 = vpop.f32.mrb[91].mxu1  ;;  %v4326_v1 = vmul.f32 %v9809_v14, %v10013_v55  ;;  %v4327_v40 = vmul.f32 %v9839_v12, %v10016_v59  ;;  %v2814_v25 = vsel %vm2805_vm1, %v2793_v17, %v2794_v21  ;;  %v3717_v16 = vpop.f32.mrb[75].mxu0  ;;  %v11257_v46 = vld [vmem:[#allocation30_spill] sm:$0xff] }
 0x350   : > { %v2815_v61 = vsel %vm2805_vm1, %v2792_v50, %v2793_v17  ;;  %v4392_v51 = vadd.f32 %v4391_v30, %v4390_v35  ;;  %v10038_v49 = vadd.f32 %v11257_v46, %v2814_v25  ;;  %v11258_v4 = vrot.slane %v9965_v31, 2  ;;  %v10044_v12 = vpop.permute.xlu1 %4214  ;;  %v11262_v46 = vld [vmem:[#allocation32_spill] sm:$0xff] }
 0x351   : > { %v10035_v27 = vadd.f32 %v11256_v7, %v2815_v61  ;;  %v4393_v14 = vsel %vm4355_vm4, %v4326_v1, 0.0  ;;  %v4395_v59 = vsel %vm4355_vm4, %v4327_v40, 0.0  ;;  %v3948_v30 = vsel %vm3922_vm3, %v3895_v63, %v3896_v22 }
 0x352   : > { %v3947_v47 = vsel %vm3922_vm3, %v3896_v22, %v11258_v4  ;;  %v10053_v17 = vpop.f32.mrb[92].mxu1  ;;  %v4394_v35 = vadd.f32 %v4393_v14, %v4392_v51  ;;  %v10056_v25 = vadd.f32 %v3948_v30, %v9762_v20  ;;  %v2812_v61 = vsel %vm2805_vm1, %v2795_v8, %v2796_v56  ;;  %v10062_v7 = vpop.f32.mrb[76].mxu0 }
 0x353   : > { %v10051_v50 = vadd.f32 %v3947_v47, %v9765_v5  ;;  %v2813_v1 = vsel %vm2805_vm1, %v2794_v21, %v2795_v8  ;;  %v2688_v40 = vpop.f32.mrb[93].mxu1  ;;  %v11261_v5 = vld [vmem:[#allocation29_spill] sm:$0xff]  ;;  %v10070_v14 = vadd.f32 %v11262_v46, %v2812_v61  ;;  %v3898_v20 = vrot.slane %v3707_v44, 2  ;;  %v3727_v51 = vpop.f32.mrb[77].mxu0 }
 0x354   : > { %11260 = vst [vmem:[#allocation30_spill] sm:$0xff] %v10056_v25  ;;  %v10067_v22 = vadd.f32 %v11261_v5, %v2813_v1  ;;  %v4396_v4 = vadd.f32 %v4395_v59, %v4394_v35  ;;  %v4328_v47 = vmul.f32 %v9856_v3, %v10056_v25  ;;  %v2798_v21 = vrot.slane %v10018_v38, 1  ;;  %v10076_v30 = vpop.permute.xlu0 %4219 }
 0x355   : > { %11259 = vst [vmem:[#allocation28_spill] sm:$0xff] %v10051_v50  ;;  %v4329_v63 = vmul.f32 %v9883_v36, %v10051_v50  ;;  %v3901_v8 = vrot.slane %v10022_v33, 2  ;;  %v3945_v1 = vsel %vm3922_vm3, %v3898_v20, %v3899_v53  ;;  %v11263_v61 = vrot.slane %v9965_v31, 2 }
 0x356   : > { %v2797_v59 = vrot.slane %v2678_v37, 1  ;;  %v6761_v35 = vpop.f32.mrb[94].mxu1  ;;  %v4397_v5 = vsel %vm4355_vm4, %v4328_v47, 0.0  ;;  %v10090_v33 = vadd.f32 %v3945_v1, %v9799_v60  ;;  %v3900_v46 = vrot.slane %v3717_v16, 2  ;;  %v11266_v1 = vld [vmem:[#allocation31_spill] sm:$0xff] }
 0x357   : > { %v4399_v36 = vsel %vm4355_vm4, %v4329_v63, 0.0  ;;  %v3946_v44 = vsel %vm3922_vm3, %v11263_v61, %v3898_v20  ;;  %v10092_v63 = vpop.f32.mrb[78].mxu0  ;;  %v2698_v3 = vpop.f32.mrb[95].mxu1  ;;  %v4398_v50 = vadd.f32 %v4397_v5, %v4396_v4  ;;  %v2800_v20 = vrot.slane %v10053_v17, 1  ;;  %v11267_v61 = vld [vmem:[#allocation37_spill] sm:$0xff] }
 0x358   : > { %v10087_v38 = vadd.f32 %v3946_v44, %v9796_v48  ;;  %11265 = vst [vmem:[#allocation32_spill] sm:$0xff] %v10090_v33  ;;  %v2810_v31 = vsel %vm2805_vm1, %v2797_v59, %v2798_v21  ;;  %v2811_v37 = vsel %vm2805_vm1, %v2796_v56, %v2797_v59  ;;  %v10099_v47 = vpop.f32.mrb[79].mxu0  ;;  %v10101_v48 = vpop.permute.xlu1 %4224  ;;  %v4331_v16 = vmul.f32 %v9930_v43, %v10090_v33 }
 0x359   : > { %v10108_v4 = vadd.f32 %v11266_v1, %v2811_v37  ;;  %v10111_v44 = vadd.f32 %v11267_v61, %v2810_v31  ;;  %v4400_v5 = vadd.f32 %v4399_v36, %v4398_v50  ;;  %v3943_v56 = vsel %vm3922_vm3, %v3900_v46, %v3901_v8  ;;  %v10126_v25 = vpop.permute.xlu0 %4229 }
 0x35a   : > { %11264 = vst [vmem:[#allocation29_spill] sm:$0xff] %v10087_v38  ;;  %v4330_v60 = vmul.f32 %v9904_v28, %v10087_v38  ;;  %v3944_v17 = vsel %vm3922_vm3, %v3899_v53, %v3900_v46  ;;  %v3903_v59 = vrot.slane %v10062_v7, 2  ;;  %v4403_v38 = vsel %vm4355_vm4, %v4331_v16, 0.0  ;;  %v6968_v31 = vpop.f32.mrb[80].mxu0  ;;  %11268 = vst [vmem:[#allocation31_spill] sm:$0xff] %v10126_v25 }
 0x35b   : > { %v10121_v43 = vadd.f32 %v3944_v17, %v9832_v42  ;;  %v10124_v37 = vadd.f32 %v3943_v56, %v9821_v39  ;;  %v2799_v50 = vrot.slane %v2688_v40, 1  ;;  %v3902_v1 = vrot.slane %v3727_v51, 2  ;;  %v3747_v33 = vpop.f32.mrb[81].mxu0 }
 0x35c   : > { %v4401_v28 = vsel %vm4355_vm4, %v4330_v60, 0.0  ;;  %v2802_v61 = vrot.slane %v6761_v35, 1  ;;  %v3905_v42 = vrot.slane %v10092_v63, 2  ;;  %v2801_v46 = vrot.slane %v2698_v3, 1  ;;  %v10139_v51 = vpop.permute.xlu1 %4234  ;;  %v11271_v3 = vld [vmem:[#allocation39_spill] sm:$0xff] }
 0x35d   : > { %v4402_v36 = vadd.f32 %v4401_v28, %v4400_v5  ;;  %v4332_v53 = vmul.f32 %v9947_v32, %v10121_v43  ;;  %v4333_v7 = vmul.f32 %v9981_v52, %v10124_v37  ;;  %v2808_v39 = vsel %vm2805_vm1, %v2799_v50, %v2800_v20  ;;  %11269 = vst [vmem:[#allocation37_spill] sm:$0xff] %v10139_v51  ;;  %v11270_v5 = vld [vmem:[#allocation36_spill] sm:$0xff] }
 0x35e   : > { %v2809_v28 = vsel %vm2805_vm1, %v2798_v21, %v2799_v50  ;;  %v3941_v40 = vsel %vm3922_vm3, %v3902_v1, %v3903_v59  ;;  %v6971_v63 = vpop.f32.mrb[82].mxu0  ;;  %v3942_v21 = vsel %vm3922_vm3, %v3901_v8, %v3902_v1  ;;  %v11272_v50 = vld [vmem:[#allocation35_spill] sm:$0xff]  ;;  %v2807_v8 = vsel %vm2805_vm1, %v2800_v20, %v2801_v46 }
 0x35f   : > { %v4404_v60 = vadd.f32 %v4403_v38, %v4402_v36  ;;  %v4405_v35 = vsel %vm4355_vm4, %v4332_v53, 0.0  ;;  %v4407_v16 = vsel %vm4355_vm4, %v4333_v7, 0.0  ;;  %v10144_v56 = vadd.f32 %v11270_v5, %v2809_v28  ;;  %v3757_v7 = vpop.f32.mrb[83].mxu0  ;;  %v11274_v5 = vld [vmem:[#allocation40_spill] sm:$0xff] }
 0x360   : > { %v10147_v38 = vadd.f32 %v11271_v3, %v2808_v39  ;;  %v10152_v36 = vadd.f32 %v3941_v40, %v9854_v41  ;;  %v11273_v52 = vrot.slane %v11272_v50, 1  ;;  %v10159_v28 = vadd.f32 %v3942_v21, %v9851_v26  ;;  %v11275_v40 = vld [vmem:[#allocation38_spill] sm:$0xff]  ;;  %v10176_v26 = vpop.permute.xlu0 %4239 }
 0x361   : > { %v4406_v17 = vadd.f32 %v4405_v35, %v4404_v60  ;;  %v2806_v60 = vsel %vm2805_vm1, %v2801_v46, %v2802_v61  ;;  %v10171_v35 = vadd.f32 %v11275_v40, %v2807_v8  ;;  %v3907_v50 = vrot.slane %v6968_v31, 2  ;;  %v10182_v40 = vpop.permute.xlu1 %4244 }
 0x362   : > { %v2853_v53 = vsel %vm2805_vm1, %v2802_v61, %v11273_v52  ;;  %v4335_v1 = vmul.f32 %v10024_v58, %v10152_v36  ;;  %v11276_v52 = vld [vmem:[#allocation41_spill] sm:$0xff]  ;;  %v4334_v21 = vmul.f32 %v9996_v11, %v10159_v28  ;;  %v3904_v61 = vrot.slane %v10099_v47, 2  ;;  %v6974_v20 = vpop.f32.mrb[84].mxu0 }
 0x363   : > { %v10162_v39 = vadd.f32 %v11274_v5, %v2853_v53  ;;  %v4408_v41 = vadd.f32 %v4407_v16, %v4406_v17  ;;  %v10174_v3 = vadd.f32 %v11276_v52, %v2806_v60  ;;  %v3906_v53 = vrot.slane %v3747_v33, 2  ;;  %v3767_v8 = vpop.f32.mrb[85].mxu0 }
 0x364   : > { %v4411_v46 = vsel %vm4355_vm4, %v4335_v1, 0.0  ;;  %v3909_v16 = vrot.slane %v6971_v63, 2  ;;  %v3908_v17 = vrot.slane %v3757_v7, 2  ;;  %v3911_v5 = vrot.slane %v6974_v20, 2 }
 0x365   : > { %v4409_v60 = vsel %vm4355_vm4, %v4334_v21, 0.0  ;;  %v3939_v52 = vsel %vm3922_vm3, %v3904_v61, %v3905_v42  ;;  %v3940_v58 = vsel %vm3922_vm3, %v3903_v59, %v3904_v61  ;;  %v3937_v33 = vsel %vm3922_vm3, %v3906_v53, %v3907_v50 }
 0x366   : > { %v4410_v47 = vadd.f32 %v4409_v60, %v4408_v41  ;;  %v10192_v31 = vadd.f32 %v3940_v58, %v9890_v9  ;;  %v10195_v63 = vadd.f32 %v3939_v52, %v9895_v2  ;;  %v3938_v7 = vsel %vm3922_vm3, %v3905_v42, %v3906_v53  ;;  %v6977_v9 = vpop.f32.mrb[86].mxu0  ;;  %v10226_v52 = vpop.permute.xlu1 %4254 }
 0x367   : > { %v10200_v1 = vadd.f32 %v3938_v7, %v9935_v54  ;;  %v10203_v21 = vadd.f32 %v3937_v33, %v9938_v29  ;;  %v3935_v59 = vsel %vm3922_vm3, %v3908_v17, %v3909_v16  ;;  %v3936_v41 = vsel %vm3922_vm3, %v3907_v50, %v3908_v17  ;;  %v3777_v61 = vpop.f32.mrb[87].mxu0  ;;  %v10216_v29 = vpop.permute.xlu0 %4249  ;;  %11278 = vst [vmem:[#allocation39_spill] sm:$0xff] %v10226_v52 }
 0x368   : > { %v4412_v58 = vadd.f32 %v4411_v46, %v4410_v47  ;;  %v4336_v2 = vmul.f32 %v10044_v12, %v10192_v31  ;;  %v4337_v42 = vmul.f32 %v10076_v30, %v10195_v63  ;;  %v10214_v54 = vadd.f32 %v3936_v41, %v9962_v13  ;;  %11277 = vst [vmem:[#allocation36_spill] sm:$0xff] %v10216_v29 }
 0x369   : > { %v4338_v53 = vmul.f32 %v10101_v48, %v10200_v1  ;;  %v4339_v50 = vmul.f32 %v10126_v25, %v10203_v21  ;;  %v10223_v20 = vadd.f32 %v3935_v59, %v9955_v24  ;;  %v3910_v46 = vrot.slane %v3767_v8, 2 }
 0x36a   : > { %v4413_v17 = vsel %vm4355_vm4, %v4336_v2, 0.0  ;;  %v3913_v60 = vrot.slane %v6977_v9, 2  ;;  %v4415_v33 = vsel %vm4355_vm4, %v4337_v42, 0.0  ;;  %v4340_v7 = vmul.f32 %v10139_v51, %v10214_v54  ;;  %v6980_v41 = vpop.f32.mrb[88].mxu0 }
 0x36b   : > { %v4414_v13 = vadd.f32 %v4413_v17, %v4412_v58  ;;  %v4417_v47 = vsel %vm4355_vm4, %v4338_v53, 0.0  ;;  %v4419_v25 = vsel %vm4355_vm4, %v4339_v50, 0.0  ;;  %v3933_v24 = vsel %vm3922_vm3, %v3910_v46, %v3911_v5  ;;  %v3787_v9 = vpop.f32.mrb[89].mxu0 }
 0x36c   : > { %v3934_v8 = vsel %vm3922_vm3, %v3909_v16, %v3910_v46  ;;  %v3912_v59 = vrot.slane %v3777_v61, 2  ;;  %v4341_v58 = vmul.f32 %v10176_v26, %v10223_v20  ;;  %v10243_v53 = vadd.f32 %v3933_v24, %v10001_v57  ;;  %v10249_v61 = vpop.permute.xlu0 %4259 }
 0x36d   : > { %v4416_v2 = vadd.f32 %v4415_v33, %v4414_v13  ;;  %v10240_v42 = vadd.f32 %v3934_v8, %v10010_v34  ;;  %v3915_v51 = vrot.slane %v6980_v41, 2  ;;  %v3914_v16 = vrot.slane %v3787_v9, 2  ;;  %11279 = vst [vmem:[#allocation35_spill] sm:$0xff] %v10249_v61 }
 0x36e   : > { %v3931_v50 = vsel %vm3922_vm3, %v3912_v59, %v3913_v60  ;;  %v3932_v17 = vsel %vm3922_vm3, %v3911_v5, %v3912_v59  ;;  %v4421_v13 = vsel %vm4355_vm4, %v4340_v7, 0.0  ;;  %v6983_v57 = vpop.f32.mrb[90].mxu0  ;;  %v10264_v59 = vpop.permute.xlu1 %4264 }
 0x36f   : > { %v4418_v46 = vadd.f32 %v4417_v47, %v4416_v2  ;;  %v4342_v34 = vmul.f32 %v10182_v40, %v10240_v42  ;;  %v10255_v33 = vadd.f32 %v3932_v17, %v10035_v27  ;;  %v10258_v24 = vadd.f32 %v3931_v50, %v10038_v49  ;;  %v3797_v47 = vpop.f32.mrb[91].mxu0  ;;  %11280 = vst [vmem:[#allocation40_spill] sm:$0xff] %v10264_v59 }
 0x370   : > { %v3929_v5 = vsel %vm3922_vm3, %v3914_v16, %v3915_v51  ;;  %v3930_v41 = vsel %vm3922_vm3, %v3913_v60, %v3914_v16  ;;  %v3917_v8 = vrot.slane %v6983_v57, 2  ;;  %v3916_v2 = vrot.slane %v3797_v47, 2 }
 0x371   : > { %v4420_v7 = vadd.f32 %v4419_v25, %v4418_v46  ;;  %v10267_v9 = vadd.f32 %v3930_v41, %v10067_v22  ;;  %v10270_v27 = vadd.f32 %v3929_v5, %v10070_v14  ;;  %v4343_v50 = vmul.f32 %v10216_v29, %v10243_v53  ;;  %v10280_v46 = vpop.permute.xlu0 %4269 }
 0x372   : > { %v4344_v17 = vmul.f32 %v10226_v52, %v10255_v33  ;;  %v6986_v60 = vpop.f32.mrb[92].mxu0  ;;  %v4423_v16 = vsel %vm4355_vm4, %v4341_v58, 0.0  ;;  %v4425_v57 = vsel %vm4355_vm4, %v4342_v34, 0.0  ;;  %v3927_v25 = vsel %vm3922_vm3, %v3916_v2, %v3917_v8 }
 0x373   : > { %v4422_v49 = vadd.f32 %v4421_v13, %v4420_v7  ;;  %v3807_v22 = vpop.f32.mrb[93].mxu0  ;;  %v3928_v13 = vsel %vm3922_vm3, %v3915_v51, %v3916_v2  ;;  %v10285_v5 = vadd.f32 %v3927_v25, %v10111_v44  ;;  %v3919_v41 = vrot.slane %v6986_v60, 2  ;;  %v10290_v7 = vpop.permute.xlu1 %4274 }
 0x374   : > { %v10288_v47 = vadd.f32 %v3928_v13, %v10108_v4  ;;  %v3918_v58 = vrot.slane %v3807_v22, 2  ;;  %v4427_v52 = vsel %vm4355_vm4, %v4343_v50, 0.0  ;;  %v4345_v29 = vmul.f32 %v10249_v61, %v10258_v24 }
 0x375   : > { %v4424_v14 = vadd.f32 %v4423_v16, %v4422_v49  ;;  %v4429_v49 = vsel %vm4355_vm4, %v4344_v17, 0.0  ;;  %v4346_v44 = vmul.f32 %v10264_v59, %v10267_v9  ;;  %v11281_v17 = vld [vmem:[#allocation54_spill] sm:$0xff]  ;;  %v10312_v59 = vpop.permute.xlu0 %4279 }
 0x376   : > { %v6989_v16 = vpop.f32.mrb[94].mxu0  ;;  %v3925_v51 = vsel %vm3922_vm3, %v3918_v58, %v3919_v41  ;;  %v3926_v4 = vsel %vm3922_vm3, %v3917_v8, %v3918_v58  ;;  %v11282_v22 = vrot.slane %v11281_v17, 2  ;;  %v4431_v8 = vsel %vm4355_vm4, %v4345_v29, 0.0 }
 0x377   : > { %v4426_v34 = vadd.f32 %v4425_v57, %v4424_v14  ;;  %v3921_v2 = vrot.slane %v6989_v16, 2  ;;  %v3817_v60 = vpop.f32.mrb[95].mxu0  ;;  %v10303_v50 = vadd.f32 %v3926_v4, %v10144_v56  ;;  %v10306_v25 = vadd.f32 %v3925_v51, %v10147_v38 }
 0x378   : > { %v3920_v13 = vrot.slane %v3817_v60, 2  ;;  %v4433_v38 = vsel %vm4355_vm4, %v4346_v44, 0.0  ;;  %v4348_v58 = vmul.f32 %v10290_v7, %v10288_v47  ;;  %v4349_v60 = vmul.f32 %v10312_v59, %v10285_v5 }
 0x379   : > { %v4428_v57 = vadd.f32 %v4427_v52, %v4426_v34  ;;  %v3970_v14 = vsel %vm3922_vm3, %v3921_v2, %v11282_v22  ;;  %v4347_v52 = vmul.f32 %v10280_v46, %v10270_v27 }
 0x37a   : > { %v10318_v56 = vadd.f32 %v3970_v14, %v10162_v39  ;;  %v3923_v34 = vsel %vm3922_vm3, %v3920_v13, %v3921_v2  ;;  %v3924_v16 = vsel %vm3922_vm3, %v3919_v41, %v3920_v13  ;;  %v4437_v2 = vsel %vm4355_vm4, %v4348_v58, 0.0 }
 0x37b   : > { %v4430_v61 = vadd.f32 %v4429_v49, %v4428_v57  ;;  %v10327_v49 = vpop.permute.xlu1 %4284  ;;  %v10330_v51 = vadd.f32 %v3924_v16, %v10171_v35  ;;  %v10333_v39 = vadd.f32 %v3923_v34, %v10174_v3  ;;  %v4435_v44 = vsel %vm4355_vm4, %v4347_v52, 0.0  ;;  %v10341_v57 = vpop.permute.xlu0 %4289 }
 0x37c   : > { %11283 = vst [vmem:[#allocation38_spill] sm:$0xff] %v10318_v56  ;;  %v4350_v41 = vmul.f32 %v10327_v49, %v10303_v50  ;;  %11284 = vst [vmem:[#allocation41_spill] sm:$0xff] %v10341_v57  ;;  %v4439_v3 = vsel %vm4355_vm4, %v4349_v60, 0.0  ;;  %v4351_v22 = vmul.f32 %v10341_v57, %v10306_v25 }
 0x37d   : > { %v4432_v29 = vadd.f32 %v4431_v8, %v4430_v61 }
 0x37e   : > { %v4441_v14 = vsel %vm4355_vm4, %v4350_v41, 0.0  ;;  %v4443_v58 = vsel %vm4355_vm4, %v4351_v22, 0.0 }
 0x37f   : > { %v4434_v4 = vadd.f32 %v4433_v38, %v4432_v29  ;;  %v10343_v17 = vpop.permute.xlu1 %4294  ;;  %v10351_v52 = vpop.permute.xlu0 %4299 }
 0x380   : > { %11285 = vst [vmem:[#allocation54_spill] sm:$0xff] %v10343_v17  ;;  %v4352_v13 = vmul.f32 %v10343_v17, %v10330_v51  ;;  %11286 = vst [vmem:[#allocation81_spill] sm:$0xff] %v10351_v52  ;;  %v4353_v34 = vmul.f32 %v10351_v52, %v10333_v39  ;;  %v4535_v52 = vld [vmem:[#allocation11] sm:$0xff]  ;;  %v4536_v17 = vld [vmem:[#allocation11 + $0x8] sm:$0xff] }
 0x381   : > { %v4436_v61 = vadd.f32 %v4435_v44, %v4434_v4  ;;  %v10363_v57 = vpack.c.bf16 %v4536_v17, %v4535_v52 }
 0x382   : > { %v4445_v16 = vsel %vm4355_vm4, %v4352_v13, 0.0 }
 0x383   : > { %v4438_v35 = vadd.f32 %v4437_v2, %v4436_v61  ;;  %v10357_v29 = vpop.permute.xlu1 %4304  ;;  %v4447_v2 = vsel %vm4355_vm4, %v4353_v34, 0.0  ;;  %11288 = vst [vmem:[#allocation83_spill] sm:$0xff] %v10363_v57  ;;  %v11290_v34 = vmov 0.0|0.0  }
 0x384   : > { %11287 = vst [vmem:[#allocation82_spill] sm:$0xff] %v10357_v29  ;;  %v4354_v44 = vmul.f32 %v10357_v29, %v10318_v56 }
 0x385   : > { %v4440_v8 = vadd.f32 %v4439_v3, %v4438_v35 }
 0x386   : > { %v4449_v61 = vsel %vm4355_vm4, %v4354_v44, 0.0 }
 0x387   : > { %v4442_v38 = vadd.f32 %v4441_v14, %v4440_v8 }
 0x389   : > { %v4444_v4 = vadd.f32 %v4443_v58, %v4442_v38  ;;  %v11289_v58 = vmov 0.0  }
 0x38b   : > { %v4446_v60 = vadd.f32 %v4445_v16, %v4444_v4  ;;  %v4537_v16 = vld [vmem:[#allocation11 + $0x10] sm:$0xff]  ;;  %v4538_v4 = vld [vmem:[#allocation11 + $0x18] sm:$0xff] }
 0x38c   : > { %v10370_v44 = vpack.c.bf16 %v4538_v4, %v4537_v16  ;;  %v11298_v16 = vld [vmem:[#allocation59_spill] sm:$0xff] }
 0x38d   : > { %v4448_v41 = vadd.f32 %v4447_v2, %v4446_v60  ;;  %v11292_v2 = vld [vmem:[#allocation33_spill] sm:$0xff] }
 0x38e   : > { %11291 = vst [vmem:[#allocation84_spill] sm:$0xff] %v10370_v44 }
 0x38f   : > { %v4450_v35 = vadd.f32 %v4449_v61, %v4448_v41  ;;  %v11293_v41 = vld [vmem:[#allocation34_spill] sm:$0xff] }
 0x391   : > { %v4451_v3 = vrot.slane %v4450_v35, 4 }
 0x393   : > { %v4452_v22 = vadd.f32 %v4451_v3, %v4450_v35  ;;  %v10384_v3 = vsub.s32 0, %v9555_v15  ;;  %v11300_v15 = vld [vmem:[#allocation44_spill] sm:$0xff] }
 0x395   : > { %v4453_v14 = vrot.slane %v4452_v22, 2  ;;  %11295 = vst [vmem:[#allocation34_spill] sm:$0xff] %v10384_v3 }
 0x397   : > { %v4454_v8 = vadd.f32 %v4453_v14, %v4452_v22  ;;  %v11296_v14 = vld [vmem:[#allocation56_spill] sm:$0xff] }
 0x399   : > { %v4455_v13 = vrot.slane %v4454_v8, 1 }
 0x39b   : > { %v4456_v38 = vadd.f32 %v4455_v13, %v4454_v8  ;;  %v11297_v13 = vld [vmem:[#allocation58_spill] sm:$0xff] }
 0x39d   : > { %6999 = vmatmul.mubr.msk.f32.vlgmr.msra.gmra.mrb[96].mxu1 %vm4355_vm4, %v4456_v38 }
 0x39e   : > { %7078 = vmatpush3.bf16.msra.mxu1 %v10363_v57  ;;  %7009 = vmatprep.mubr.msk.f32.mxu1 %vm7877_vm2, %v11289_v58 }
 0x39f   : > { %7079 = vmatprep.subr.bf16.mxu1 %v11290_v34 }
 0x3a2   : > { %7081 = vmatpush3.bf16.msra.mxu1 %v10370_v44 }
 0x3a3   : > { %7082 = vmatprep.subr.bf16.mxu1 %v11290_v34 }
 0x470   : > { %v4530_v17 = vpop.f32.mrb[96].mxu1 }
 0x471   : > { %v4534_v52 = vmul.f32 0.00390625, %v4530_v17  ;;  %v7000_v60 = vpop.f32.mrb[97].mxu1 }
 0x473   : > { %7010 = vmatmul.mubr.msk.f32.vlgmr.msra.gmra.mrb[98].mxu1 %vm4355_vm4, %v4534_v52  ;;  %v11299_v52 = vld [vmem:[#allocation42_spill] sm:$0xff] }
 0x474   : > { %7084 = vmatpush3.bf16.msra.mxu1 %v11292_v2  ;;  %7020 = vmatprep.mubr.msk.f32.mxu1 %vm7877_vm2, %v11289_v58 }
 0x475   : > { %7085 = vmatprep.subr.bf16.mxu1 %v11290_v34 }
 0x478   : > { %7087 = vmatpush3.bf16.msra.mxu1 %v11293_v41  ;;  %v11301_v41 = vld [vmem:[#allocation63_spill] sm:$0xff] }
 0x479   : > { %7088 = vmatprep.subr.bf16.mxu1 %v11290_v34  ;;  %v11304_v34 = vld [vmem:[#allocation45_spill] sm:$0xff] }
 0x546   : > { %v10381_v61 = vpop.f32.mrb[98].mxu1 }
 0x547   : > { %11294 = vst [vmem:[#allocation33_spill] sm:$0xff] %v10381_v61  ;;  %v7011_v35 = vpop.f32.mrb[99].mxu1  ;;  %v10388_v22 = vrot.slane %v10381_v61, %v10384_v3  ;;  %v11302_v3 = vld [vmem:[#allocation43_spill] sm:$0xff] }
 0x549   : > { %v4616_v8 = vsub.f32 %v11296_v14, %v10388_v22  ;;  %v4617_v38 = vsub.f32 %v11297_v13, %v10388_v22  ;;  %v4618_v4 = vsub.f32 %v11298_v16, %v10388_v22  ;;  %v4619_v17 = vsub.f32 %v9740_v18, %v10388_v22  ;;  %v11303_v14 = vld [vmem:[#allocation65_spill] sm:$0xff]  ;;  %v11305_v16 = vld [vmem:[#allocation66_spill] sm:$0xff] }
 0x54a   : > { %v4620_v35 = vsub.f32 %v11301_v41, %v10388_v22  ;;  %v4621_v44 = vsub.f32 %v11303_v14, %v10388_v22  ;;  %v4622_v29 = vsub.f32 %v11305_v16, %v10388_v22  ;;  %v11306_v18 = vld [vmem:[#allocation46_spill] sm:$0xff] }
 0x54b   : > { %v4664_v60 = vmul.f32 %v4616_v8, %v11299_v52  ;;  %v4665_v2 = vmul.f32 %v4617_v38, %v11300_v15  ;;  %v4666_v61 = vmul.f32 %v4618_v4, %v11302_v3  ;;  %v4667_v13 = vmul.f32 %v4619_v17, %v11304_v34  ;;  %v11307_v52 = vld [vmem:[#allocation47_spill] sm:$0xff]  ;;  %v11308_v17 = vld [vmem:[#allocation48_spill] sm:$0xff] }
 0x54c   : > { %v4668_v56 = vmul.f32 %v4620_v35, %v11306_v18  ;;  %v4623_v38 = vsub.f32 %v9802_v62, %v10388_v22  ;;  %v4669_v15 = vmul.f32 %v4621_v44, %v11307_v52  ;;  %v4624_v34 = vsub.f32 %v9805_v0, %v10388_v22  ;;  %v11309_v62 = vld [vmem:[#allocation49_spill] sm:$0xff] }
 0x54d   : > { %v4712_v58 = vmul.f32 %v4664_v60, %v4664_v60  ;;  %v4713_v57 = vmul.f32 %v4665_v2, %v4665_v2  ;;  %v4714_v8 = vmul.f32 %v4666_v61, %v4666_v61  ;;  %v4715_v41 = vmul.f32 %v4667_v13, %v4667_v13 }
 0x54e   : > { %v4670_v60 = vmul.f32 %v4622_v29, %v11308_v17  ;;  %v4716_v2 = vmul.f32 %v4668_v56, %v4668_v56  ;;  %v4625_v35 = vsub.f32 %v9835_v10, %v10388_v22  ;;  %v4671_v44 = vmul.f32 %v4623_v38, %v11309_v62  ;;  %v11313_v17 = vld [vmem:[#allocation51_spill] sm:$0xff] }
 0x54f   : > { %v4760_v3 = vsel %vm4355_vm4, %v4712_v58, 0.0  ;;  %v4761_v4 = vsel %vm4355_vm4, %v4713_v57, 0.0  ;;  %v4763_v18 = vsel %vm4355_vm4, %v4714_v8, 0.0  ;;  %v4717_v13 = vmul.f32 %v4669_v15, %v4669_v15  ;;  %v11310_v57 = vld [vmem:[#allocation69_spill] sm:$0xff] }
 0x550   : > { %v4762_v14 = vadd.f32 %v4761_v4, %v4760_v3  ;;  %v4765_v58 = vsel %vm4355_vm4, %v4715_v41, 0.0  ;;  %v4626_v3 = vsub.f32 %v11310_v57, %v10388_v22  ;;  %v11311_v4 = vld [vmem:[#allocation50_spill] sm:$0xff]  ;;  %v4718_v16 = vmul.f32 %v4670_v60, %v4670_v60  ;;  %v11314_v41 = vld [vmem:[#allocation71_spill] sm:$0xff] }
 0x551   : > { %v4672_v0 = vmul.f32 %v4624_v34, %v11311_v4  ;;  %v4767_v56 = vsel %vm4355_vm4, %v4716_v2, 0.0  ;;  %v4719_v10 = vmul.f32 %v4671_v44, %v4671_v44  ;;  %v4769_v62 = vsel %vm4355_vm4, %v4717_v13, 0.0 }
 0x552   : > { %v4764_v61 = vadd.f32 %v4763_v18, %v4762_v14  ;;  %v11312_v14 = vld [vmem:[#allocation70_spill] sm:$0xff]  ;;  %v4673_v18 = vmul.f32 %v4625_v35, %v11313_v17  ;;  %v4628_v15 = vsub.f32 %v11314_v41, %v10388_v22  ;;  %v4771_v34 = vsel %vm4355_vm4, %v4718_v16, 0.0 }
 0x553   : > { %v4627_v8 = vsub.f32 %v11312_v14, %v10388_v22  ;;  %v4720_v57 = vmul.f32 %v4672_v0, %v4672_v0  ;;  %v4629_v2 = vsub.f32 %v9909_v19, %v10388_v22  ;;  %v4773_v35 = vsel %vm4355_vm4, %v4719_v10, 0.0 }
 0x554   : > { %v4766_v52 = vadd.f32 %v4765_v58, %v4764_v61  ;;  %v11315_v61 = vld [vmem:[#allocation52_spill] sm:$0xff]  ;;  %v4630_v13 = vsub.f32 %v9912_v6, %v10388_v22  ;;  %v4631_v16 = vsub.f32 %v9950_v23, %v10388_v22  ;;  %v4632_v10 = vsub.f32 %v9943_v45, %v10388_v22 }
 0x555   : > { %v4674_v58 = vmul.f32 %v4626_v3, %v11315_v61  ;;  %v4775_v0 = vsel %vm4355_vm4, %v4720_v57, 0.0  ;;  %v11320_v57 = vld [vmem:[#allocation76_spill] sm:$0xff] }
 0x556   : > { %v4768_v29 = vadd.f32 %v4767_v56, %v4766_v52  ;;  %v11316_v52 = vld [vmem:[#allocation53_spill] sm:$0xff]  ;;  %v4721_v56 = vmul.f32 %v4673_v18, %v4673_v18 }
 0x557   : > { %v4675_v4 = vmul.f32 %v4627_v8, %v11316_v52 }
 0x558   : > { %v4770_v38 = vadd.f32 %v4769_v62, %v4768_v29  ;;  %v11317_v29 = vld [vmem:[#allocation55_spill] sm:$0xff]  ;;  %v4722_v62 = vmul.f32 %v4674_v58, %v4674_v58  ;;  %v4777_v8 = vsel %vm4355_vm4, %v4721_v56, 0.0  ;;  %v11322_v56 = vld [vmem:[#allocation77_spill] sm:$0xff] }
 0x559   : > { %v4676_v17 = vmul.f32 %v4628_v15, %v11317_v29  ;;  %v11321_v29 = vld [vmem:[#allocation61_spill] sm:$0xff] }
 0x55a   : > { %v4772_v60 = vadd.f32 %v4771_v34, %v4770_v38  ;;  %v11318_v38 = vld [vmem:[#allocation57_spill] sm:$0xff]  ;;  %v4723_v34 = vmul.f32 %v4675_v4, %v4675_v4  ;;  %v4779_v15 = vsel %vm4355_vm4, %v4722_v62, 0.0  ;;  %v4635_v62 = vsub.f32 %v10013_v55, %v10388_v22 }
 0x55b   : > { %v4677_v61 = vmul.f32 %v4629_v2, %v11318_v38  ;;  %v11323_v38 = vld [vmem:[#allocation64_spill] sm:$0xff] }
 0x55c   : > { %v4774_v44 = vadd.f32 %v4773_v35, %v4772_v60  ;;  %v11319_v60 = vld [vmem:[#allocation60_spill] sm:$0xff]  ;;  %v4724_v35 = vmul.f32 %v4676_v17, %v4676_v17  ;;  %v4781_v2 = vsel %vm4355_vm4, %v4723_v34, 0.0  ;;  %v11325_v34 = vld [vmem:[#allocation79_spill] sm:$0xff] }
 0x55d   : > { %v4678_v52 = vmul.f32 %v4630_v13, %v11319_v60  ;;  %v4725_v23 = vmul.f32 %v4677_v61, %v4677_v61 }
 0x55e   : > { %v4776_v3 = vadd.f32 %v4775_v0, %v4774_v44  ;;  %v4633_v44 = vsub.f32 %v11320_v57, %v10388_v22  ;;  %v4679_v0 = vmul.f32 %v4631_v16, %v11321_v29  ;;  %v4783_v13 = vsel %vm4355_vm4, %v4724_v35, 0.0  ;;  %v11326_v29 = vld [vmem:[#allocation67_spill] sm:$0xff]  ;;  %v11327_v35 = vld [vmem:[#allocation30_spill] sm:$0xff] }
 0x55f   : > { %v4726_v45 = vmul.f32 %v4678_v52, %v4678_v52  ;;  %v4785_v16 = vsel %vm4355_vm4, %v4725_v23, 0.0  ;;  %v11329_v23 = vld [vmem:[#allocation28_spill] sm:$0xff] }
 0x560   : > { %v4778_v18 = vadd.f32 %v4777_v8, %v4776_v3  ;;  %v4634_v3 = vsub.f32 %v11322_v56, %v10388_v22  ;;  %v4680_v8 = vmul.f32 %v4632_v10, %v11323_v38  ;;  %v11328_v38 = vld [vmem:[#allocation68_spill] sm:$0xff] }
 0x561   : > { %v4787_v10 = vsel %vm4355_vm4, %v4726_v45, 0.0  ;;  %v11331_v45 = vld [vmem:[#allocation29_spill] sm:$0xff] }
 0x562   : > { %v4780_v58 = vadd.f32 %v4779_v15, %v4778_v18  ;;  %v11324_v18 = vld [vmem:[#allocation21_spill] sm:$0xff]  ;;  %v4727_v15 = vmul.f32 %v4679_v0, %v4679_v0  ;;  %v4728_v56 = vmul.f32 %v4680_v8, %v4680_v8 }
 0x563   : > { %v4681_v60 = vmul.f32 %v4633_v44, %v11324_v18  ;;  %v11330_v18 = vld [vmem:[#allocation22_spill] sm:$0xff] }
 0x564   : > { %v4782_v4 = vadd.f32 %v4781_v2, %v4780_v58  ;;  %v4636_v58 = vsub.f32 %v11325_v34, %v10388_v22  ;;  %v4682_v2 = vmul.f32 %v4634_v3, %v11326_v29  ;;  %v4789_v44 = vsel %vm4355_vm4, %v4727_v15, 0.0  ;;  %v11332_v29 = vld [vmem:[#allocation24_spill] sm:$0xff] }
 0x565   : > { %v4729_v55 = vmul.f32 %v4681_v60, %v4681_v60  ;;  %v4791_v3 = vsel %vm4355_vm4, %v4728_v56, 0.0  ;;  %v11333_v15 = vld [vmem:[#allocation32_spill] sm:$0xff]  ;;  %v4641_v56 = vsub.f32 %v10121_v43, %v10388_v22 }
 0x566   : > { %v4784_v17 = vadd.f32 %v4783_v13, %v4782_v4  ;;  %v4637_v4 = vsub.f32 %v11327_v35, %v10388_v22  ;;  %v4683_v13 = vmul.f32 %v4635_v62, %v11328_v38  ;;  %v4730_v34 = vmul.f32 %v4682_v2, %v4682_v2  ;;  %v11334_v38 = vld [vmem:[#allocation72_spill] sm:$0xff] }
 0x567   : > { %v4793_v62 = vsel %vm4355_vm4, %v4729_v55, 0.0  ;;  %v4642_v55 = vsub.f32 %v10124_v37, %v10388_v22 }
 0x568   : > { %v4786_v61 = vadd.f32 %v4785_v16, %v4784_v17  ;;  %v4638_v17 = vsub.f32 %v11329_v23, %v10388_v22  ;;  %v4684_v16 = vmul.f32 %v4636_v58, %v11330_v18  ;;  %v4731_v35 = vmul.f32 %v4683_v13, %v4683_v13 }
 0x569   : > { %v4795_v58 = vsel %vm4355_vm4, %v4730_v34, 0.0  ;;  %v4643_v34 = vsub.f32 %v10159_v28, %v10388_v22 }
 0x56a   : > { %v4788_v52 = vadd.f32 %v4787_v10, %v4786_v61  ;;  %v4639_v61 = vsub.f32 %v11331_v45, %v10388_v22  ;;  %v4685_v10 = vmul.f32 %v4637_v4, %v11332_v29  ;;  %v4732_v23 = vmul.f32 %v4684_v16, %v4684_v16 }
 0x56b   : > { %v4797_v4 = vsel %vm4355_vm4, %v4731_v35, 0.0  ;;  %v4644_v35 = vsub.f32 %v10152_v36, %v10388_v22 }
 0x56c   : > { %v4790_v0 = vadd.f32 %v4789_v44, %v4788_v52  ;;  %v4640_v52 = vsub.f32 %v11333_v15, %v10388_v22  ;;  %v4686_v44 = vmul.f32 %v4638_v17, %v11334_v38  ;;  %v4799_v17 = vsel %vm4355_vm4, %v4732_v23, 0.0 }
 0x56d   : > { %v4645_v23 = vsub.f32 %v10192_v31, %v10388_v22 }
 0x56e   : > { %v4792_v8 = vadd.f32 %v4791_v3, %v4790_v0  ;;  %v11335_v0 = vld [vmem:[#allocation26_spill] sm:$0xff]  ;;  %v4733_v3 = vmul.f32 %v4685_v10, %v4685_v10 }
 0x56f   : > { %v4687_v18 = vmul.f32 %v4639_v61, %v11335_v0 }
 0x570   : > { %v4794_v60 = vadd.f32 %v4793_v62, %v4792_v8  ;;  %v11336_v8 = vld [vmem:[#allocation73_spill] sm:$0xff]  ;;  %v4734_v62 = vmul.f32 %v4686_v44, %v4686_v44  ;;  %v4801_v61 = vsel %vm4355_vm4, %v4733_v3, 0.0  ;;  %v11338_v3 = vld [vmem:[#allocation80_spill] sm:$0xff] }
 0x571   : > { %v4688_v29 = vmul.f32 %v4640_v52, %v11336_v8  ;;  %v4735_v38 = vmul.f32 %v4687_v18, %v4687_v18  ;;  %v4646_v18 = vsub.f32 %v10195_v63, %v10388_v22  ;;  %v4692_v8 = vmul.f32 %v4644_v35, %v11338_v3  ;;  %v11340_v3 = vld [vmem:[#allocation37_spill] sm:$0xff] }
 0x572   : > { %v4796_v2 = vadd.f32 %v4795_v58, %v4794_v60  ;;  %v4689_v60 = vmul.f32 %v4641_v56, %v9947_v32  ;;  %v11337_v58 = vld [vmem:[#allocation78_spill] sm:$0xff]  ;;  %v4803_v52 = vsel %vm4355_vm4, %v4734_v62, 0.0  ;;  %v4647_v62 = vsub.f32 %v10200_v1, %v10388_v22 }
 0x573   : > { %v4736_v0 = vmul.f32 %v4688_v29, %v4688_v29  ;;  %v4805_v32 = vsel %vm4355_vm4, %v4735_v38, 0.0  ;;  %v4694_v38 = vmul.f32 %v4646_v18, %v10076_v30  ;;  %v4651_v18 = vsub.f32 %v10240_v42, %v10388_v22 }
 0x574   : > { %v4798_v13 = vadd.f32 %v4797_v4, %v4796_v2  ;;  %v4690_v2 = vmul.f32 %v4642_v55, %v11337_v58  ;;  %v4691_v4 = vmul.f32 %v4643_v34, %v9996_v11 }
 0x575   : > { %v4807_v55 = vsel %vm4355_vm4, %v4736_v0, 0.0  ;;  %v4695_v0 = vmul.f32 %v4647_v62, %v10101_v48 }
 0x576   : > { %v4800_v16 = vadd.f32 %v4799_v17, %v4798_v13  ;;  %v4737_v13 = vmul.f32 %v4689_v60, %v4689_v60  ;;  %v4738_v17 = vmul.f32 %v4690_v2, %v4690_v2  ;;  %v4648_v60 = vsub.f32 %v10203_v21, %v10388_v22 }
 0x577   : > { %v4649_v2 = vsub.f32 %v10214_v54, %v10388_v22 }
 0x578   : > { %v4802_v10 = vadd.f32 %v4801_v61, %v4800_v16  ;;  %v4693_v16 = vmul.f32 %v4645_v23, %v10044_v12  ;;  %v4739_v61 = vmul.f32 %v4691_v4, %v4691_v4  ;;  %v4809_v11 = vsel %vm4355_vm4, %v4737_v13, 0.0  ;;  %v11339_v4 = vld [vmem:[#allocation31_spill] sm:$0xff] }
 0x579   : > { %v4811_v35 = vsel %vm4355_vm4, %v4738_v17, 0.0  ;;  %v4650_v23 = vsub.f32 %v10223_v20, %v10388_v22  ;;  %v4696_v13 = vmul.f32 %v4648_v60, %v11339_v4  ;;  %v4743_v17 = vmul.f32 %v4695_v0, %v4695_v0 }
 0x57a   : > { %v4804_v44 = vadd.f32 %v4803_v52, %v4802_v10  ;;  %v4740_v10 = vmul.f32 %v4692_v8, %v4692_v8  ;;  %v4741_v52 = vmul.f32 %v4693_v16, %v4693_v16  ;;  %v4813_v12 = vsel %vm4355_vm4, %v4739_v61, 0.0 }
 0x57b   : > { %v4697_v8 = vmul.f32 %v4649_v2, %v11340_v3  ;;  %v4698_v62 = vmul.f32 %v4650_v23, %v10176_v26  ;;  %v4744_v16 = vmul.f32 %v4696_v13, %v4696_v13  ;;  %v4699_v60 = vmul.f32 %v4651_v18, %v10182_v40  ;;  %v11341_v2 = vld [vmem:[#allocation36_spill] sm:$0xff]  ;;  %v11342_v23 = vld [vmem:[#allocation39_spill] sm:$0xff] }
 0x57c   : > { %v4806_v56 = vadd.f32 %v4805_v32, %v4804_v44  ;;  %v4742_v32 = vmul.f32 %v4694_v38, %v4694_v38  ;;  %v4815_v30 = vsel %vm4355_vm4, %v4740_v10, 0.0  ;;  %v4817_v48 = vsel %vm4355_vm4, %v4741_v52, 0.0 }
 0x57d   : > { %v4745_v38 = vmul.f32 %v4697_v8, %v4697_v8  ;;  %v4821_v10 = vsel %vm4355_vm4, %v4743_v17, 0.0  ;;  %v4746_v52 = vmul.f32 %v4698_v62, %v4698_v62  ;;  %v4823_v26 = vsel %vm4355_vm4, %v4744_v16, 0.0 }
 0x57e   : > { %v4808_v29 = vadd.f32 %v4807_v55, %v4806_v56  ;;  %v4819_v61 = vsel %vm4355_vm4, %v4742_v32, 0.0  ;;  %v4747_v13 = vmul.f32 %v4699_v60, %v4699_v60 }
 0x57f   : > { %v4825_v40 = vsel %vm4355_vm4, %v4745_v38, 0.0  ;;  %v4827_v8 = vsel %vm4355_vm4, %v4746_v52, 0.0 }
 0x580   : > { %v4810_v34 = vadd.f32 %v4809_v11, %v4808_v29  ;;  %v4652_v29 = vsub.f32 %v10243_v53, %v10388_v22  ;;  %v4829_v16 = vsel %vm4355_vm4, %v4747_v13, 0.0 }
 0x582   : > { %v4812_v58 = vadd.f32 %v4811_v35, %v4810_v34  ;;  %v4653_v34 = vsub.f32 %v10255_v33, %v10388_v22  ;;  %v4700_v0 = vmul.f32 %v4652_v29, %v11341_v2 }
 0x584   : > { %v4814_v44 = vadd.f32 %v4813_v12, %v4812_v58  ;;  %v4654_v58 = vsub.f32 %v10258_v24, %v10388_v22  ;;  %v4701_v4 = vmul.f32 %v4653_v34, %v11342_v23  ;;  %v4748_v3 = vmul.f32 %v4700_v0, %v4700_v0 }
 0x586   : > { %v4816_v56 = vadd.f32 %v4815_v30, %v4814_v44  ;;  %v4655_v44 = vsub.f32 %v10267_v9, %v10388_v22  ;;  %v4656_v30 = vsub.f32 %v10270_v27, %v10388_v22  ;;  %v4749_v62 = vmul.f32 %v4701_v4, %v4701_v4 }
 0x587   : > { %v4831_v38 = vsel %vm4355_vm4, %v4748_v3, 0.0  ;;  %v4661_v4 = vsub.f32 %v10330_v51, %v10388_v22 }
 0x588   : > { %v4818_v55 = vadd.f32 %v4817_v48, %v4816_v56  ;;  %v11343_v56 = vld [vmem:[#allocation35_spill] sm:$0xff]  ;;  %v4657_v48 = vsub.f32 %v10288_v47, %v10388_v22  ;;  %v4704_v34 = vmul.f32 %v4656_v30, %v10280_v46  ;;  %v4833_v0 = vsel %vm4355_vm4, %v4749_v62, 0.0 }
 0x589   : > { %v4702_v18 = vmul.f32 %v4654_v58, %v11343_v56  ;;  %v4662_v30 = vsub.f32 %v10333_v39, %v10388_v22  ;;  %v11345_v56 = vld [vmem:[#allocation41_spill] sm:$0xff] }
 0x58a   : > { %v4820_v11 = vadd.f32 %v4819_v61, %v4818_v55  ;;  %v11344_v55 = vld [vmem:[#allocation40_spill] sm:$0xff]  ;;  %v4705_v58 = vmul.f32 %v4657_v48, %v10290_v7 }
 0x58b   : > { %v4703_v29 = vmul.f32 %v4655_v44, %v11344_v55  ;;  %v4750_v60 = vmul.f32 %v4702_v18, %v4702_v18  ;;  %v4752_v44 = vmul.f32 %v4704_v34, %v4704_v34  ;;  %v11347_v55 = vld [vmem:[#allocation54_spill] sm:$0xff] }
 0x58c   : > { %v4822_v35 = vadd.f32 %v4821_v10, %v4820_v11  ;;  %v4658_v11 = vsub.f32 %v10285_v5, %v10388_v22 }
 0x58d   : > { %v4751_v2 = vmul.f32 %v4703_v29, %v4703_v29  ;;  %v4835_v46 = vsel %vm4355_vm4, %v4750_v60, 0.0  ;;  %v4709_v29 = vmul.f32 %v4661_v4, %v11347_v55  ;;  %v11353_v55 = vld [vmem:[#allocation84_spill] sm:$0xff] }
 0x58e   : > { %v4824_v12 = vadd.f32 %v4823_v26, %v4822_v35  ;;  %v4659_v35 = vsub.f32 %v10303_v50, %v10388_v22  ;;  %v4660_v26 = vsub.f32 %v10306_v25, %v10388_v22 }
 0x58f   : > { %v4837_v7 = vsel %vm4355_vm4, %v4751_v2, 0.0 }
 0x590   : > { %v4826_v32 = vadd.f32 %v4825_v40, %v4824_v12  ;;  %v4706_v12 = vmul.f32 %v4658_v11, %v10312_v59  ;;  %v4707_v13 = vmul.f32 %v4659_v35, %v10327_v49  ;;  %v4753_v40 = vmul.f32 %v4705_v58, %v4705_v58 }
 0x591   : > { %v4708_v18 = vmul.f32 %v4660_v26, %v11345_v56  ;;  %v4839_v59 = vsel %vm4355_vm4, %v4752_v44, 0.0  ;;  %v4757_v58 = vmul.f32 %v4709_v29, %v4709_v29 }
 0x592   : > { %v4828_v17 = vadd.f32 %v4827_v8, %v4826_v32  ;;  %v4754_v3 = vmul.f32 %v4706_v12, %v4706_v12  ;;  %v4755_v62 = vmul.f32 %v4707_v13, %v4707_v13  ;;  %v4841_v49 = vsel %vm4355_vm4, %v4753_v40, 0.0 }
 0x593   : > { %v4756_v34 = vmul.f32 %v4708_v18, %v4708_v18  ;;  %v4849_v44 = vsel %vm4355_vm4, %v4757_v58, 0.0  ;;  %v11354_v58 = vld [vmem:[#allocation33_spill] sm:$0xff] }
 0x594   : > { %v4830_v61 = vadd.f32 %v4829_v16, %v4828_v17  ;;  %v11346_v17 = vld [vmem:[#allocation38_spill] sm:$0xff]  ;;  %v4843_v60 = vsel %vm4355_vm4, %v4754_v3, 0.0  ;;  %v4845_v2 = vsel %vm4355_vm4, %v4755_v62, 0.0 }
 0x595   : > { %v4663_v48 = vsub.f32 %v11346_v17, %v10388_v22  ;;  %v4847_v22 = vsel %vm4355_vm4, %v4756_v34, 0.0  ;;  %v5011_v34 = vld [vmem:[#allocation7] sm:$0x1] }
 0x596   : > { %v4832_v10 = vadd.f32 %v4831_v38, %v4830_v61  ;;  %v11348_v61 = vld [vmem:[#allocation81_spill] sm:$0xff] }
 0x597   : > { %v4710_v11 = vmul.f32 %v4662_v30, %v11348_v61 }
 0x598   : > { %v4834_v52 = vadd.f32 %v4833_v0, %v4832_v10  ;;  %v11349_v10 = vld [vmem:[#allocation82_spill] sm:$0xff] }
 0x599   : > { %v4711_v35 = vmul.f32 %v4663_v48, %v11349_v10  ;;  %v11352_v48 = vmov 0.0|0.0  }
 0x59a   : > { %v4836_v23 = vadd.f32 %v4835_v46, %v4834_v52  ;;  %v4758_v52 = vmul.f32 %v4710_v11, %v4710_v11 }
 0x59b   : > { %v4759_v12 = vmul.f32 %v4711_v35, %v4711_v35  ;;  %v5013_v35 = vld [vmem:[#allocation8] sm:$0x1] }
 0x59c   : > { %v4838_v32 = vadd.f32 %v4837_v7, %v4836_v23  ;;  %v4851_v23 = vsel %vm4355_vm4, %v4758_v52, 0.0 }
 0x59d   : > { %v4853_v13 = vsel %vm4355_vm4, %v4759_v12, 0.0 }
 0x59e   : > { %v4840_v8 = vadd.f32 %v4839_v59, %v4838_v32  ;;  %v11350_v59 = vld [vmem:[#allocation83_spill] sm:$0xff] }
 0x5a0   : > { %v4842_v16 = vadd.f32 %v4841_v49, %v4840_v8  ;;  %v11351_v8 = vmov 0.0  }
 0x5a2   : > { %v4844_v38 = vadd.f32 %v4843_v60, %v4842_v16 }
 0x5a4   : > { %v4846_v0 = vadd.f32 %v4845_v2, %v4844_v38 }
 0x5a6   : > { %v4848_v26 = vadd.f32 %v4847_v22, %v4846_v0  ;;  %v11355_v0 = vld [vmem:[#allocation34_spill] sm:$0xff] }
 0x5a8   : > { %v4850_v46 = vadd.f32 %v4849_v44, %v4848_v26  ;;  %v11356_v26 = vld [vmem:[#allocation56_spill] sm:$0xff]  ;;  %v11357_v44 = vld [vmem:[#allocation58_spill] sm:$0xff] }
 0x5aa   : > { %v4852_v4 = vadd.f32 %v4851_v23, %v4850_v46  ;;  %v11358_v23 = vld [vmem:[#allocation59_spill] sm:$0xff] }
 0x5ac   : > { %v4854_v40 = vadd.f32 %v4853_v13, %v4852_v4  ;;  %v11359_v13 = vld [vmem:[#allocation62_spill] sm:$0xff] }
 0x5ae   : > { %v4855_v7 = vrot.slane %v4854_v40, 4 }
 0x5b0   : > { %v4856_v32 = vadd.f32 %v4855_v7, %v4854_v40  ;;  %v11360_v7 = vld [vmem:[#allocation63_spill] sm:$0xff] }
 0x5b2   : > { %v4857_v30 = vrot.slane %v4856_v32, 2 }
 0x5b4   : > { %v4858_v56 = vadd.f32 %v4857_v30, %v4856_v32  ;;  %v11361_v30 = vld [vmem:[#allocation65_spill] sm:$0xff] }
 0x5b6   : > { %v4859_v18 = vrot.slane %v4858_v56, 1 }
 0x5b8   : > { %v4860_v3 = vadd.f32 %v4859_v18, %v4858_v56  ;;  %v11362_v18 = vld [vmem:[#allocation66_spill] sm:$0xff] }
 0x5ba   : > { %7021 = vmatmul.mubr.msk.f32.vlgmr.msra.gmra.mrb[100].mxu1 %vm4355_vm4, %v4860_v3 }
 0x5bb   : > { %7090 = vmatpush3.bf16.msra.mxu1 %v11350_v59  ;;  %7031 = vmatprep.mubr.msk.f32.mxu1 %vm7877_vm2, %v11351_v8  ;;  %v11363_v8 = vld [vmem:[#allocation20_spill] sm:$0xff] }
 0x5bc   : > { %7091 = vmatprep.subr.bf16.mxu1 %v11352_v48 }
 0x5bf   : > { %7093 = vmatpush3.bf16.msra.mxu1 %v11353_v55  ;;  %v11364_v55 = vld [vmem:[#allocation23_spill] sm:$0xff] }
 0x68d   : > { %v4930_v29 = vpop.f32.mrb[100].mxu1 }
 0x68e   : > { %v4934_v62 = vmul.f32 0.00390625, %v4930_v29  ;;  %v7022_v49 = vpop.f32.mrb[101].mxu1 }
 0x690   : > { %v4935_v16 = vmax.f32 %v4934_v62, 0.0  ;;  %v11365_v62 = vld [vmem:[#allocation25_spill] sm:$0xff] }
 0x692   : > { %v4936_v61 = vadd.f32 1e-05, %v4935_v16  ;;  %v11366_v16 = vld [vmem:[#allocation69_spill] sm:$0xff] }
 0x694   : > { %7522 = vrsqrt.f32 %v4936_v61 }
 0x69e   : > { %v7523_v11 = vpop.eup %7522 }
 0x69f   : > { %7032 = vmatmul.mubr.msk.f32.vlgmr.msra.gmra.mrb[102].mxu1 %vm4355_vm4, %v7523_v11 }
 0x772   : > { %v5007_v60 = vpop.f32.mrb[102].mxu1 }
 0x773   : > { %v5012_v38 = vmul.f32 %v5011_v34, %v5007_v60  ;;  %v7033_v10 = vpop.f32.mrb[103].mxu1 }
 0x774   : > { %v11367_v10 = vld [vmem:[#allocation75_spill] sm:$0xff] }
 0x775   : > { %v5014_v2 = vmul.f32 %v5012_v38, %v11354_v58  ;;  %v5019_v52 = vrot.slane %v5012_v38, %v11355_v0  ;;  %v11368_v58 = vld [vmem:[#allocation74_spill] sm:$0xff] }
 0x777   : > { %v5015_v22 = vsub.f32 %v5013_v35, %v5014_v2  ;;  %v5020_v12 = vmul.f32 %v5019_v52, %v11356_v26  ;;  %v5021_v46 = vmul.f32 %v5019_v52, %v11357_v44  ;;  %v5022_v4 = vmul.f32 %v5019_v52, %v11358_v23  ;;  %v11370_v44 = vld [vmem:[#allocation27_spill] sm:$0xff] }
 0x778   : > { %v5023_v40 = vmul.f32 %v5019_v52, %v11359_v13  ;;  %v5024_v32 = vmul.f32 %v5019_v52, %v11360_v7  ;;  %v5025_v56 = vmul.f32 %v5019_v52, %v11361_v30  ;;  %v5026_v3 = vmul.f32 %v5019_v52, %v11362_v18  ;;  %v11371_v13 = vld [vmem:[#allocation79_spill] sm:$0xff]  ;;  %v11372_v30 = vld [vmem:[#allocation30_spill] sm:$0xff]  ;;  %v11373_v18 = vld [vmem:[#allocation28_spill] sm:$0xff] }
 0x779   : > { %v10599_v59 = vrot.slane %v5015_v22, %v11355_v0  ;;  %v5027_v48 = vmul.f32 %v5019_v52, %v11363_v8  ;;  %v5028_v29 = vmul.f32 %v5019_v52, %v11364_v55  ;;  %v5029_v49 = vmul.f32 %v5019_v52, %v11365_v62  ;;  %v11369_v22 = vld [vmem:[#allocation77_spill] sm:$0xff] }
 0x77a   : > { %v5030_v61 = vmul.f32 %v5019_v52, %v11366_v16  ;;  %v5031_v11 = vmul.f32 %v5019_v52, %v11312_v14  ;;  %v5032_v34 = vmul.f32 %v5019_v52, %v11314_v41  ;;  %v5033_v60 = vmul.f32 %v5019_v52, %v9909_v19 }
 0x77b   : > { %v5034_v38 = vmul.f32 %v5019_v52, %v9912_v6  ;;  %v5035_v35 = vmul.f32 %v5019_v52, %v11367_v10  ;;  %v5036_v2 = vmul.f32 %v5019_v52, %v11368_v58  ;;  %v5037_v0 = vmul.f32 %v5019_v52, %v11320_v57 }
 0x77c   : > { %v5038_v26 = vmul.f32 %v5019_v52, %v11369_v22  ;;  %v5039_v23 = vmul.f32 %v5019_v52, %v11370_v44  ;;  %v5040_v7 = vmul.f32 %v5019_v52, %v11371_v13  ;;  %v5041_v14 = vmul.f32 %v5019_v52, %v11372_v30 }
 0x77d   : > { %v5042_v41 = vmul.f32 %v5019_v52, %v11373_v18  ;;  %v5043_v19 = vmul.f32 %v5019_v52, %v11331_v45  ;;  %v5044_v6 = vmul.f32 %v5019_v52, %v11333_v15  ;;  %v5045_v8 = vmul.f32 %v5019_v52, %v10121_v43 }
 0x77e   : > { %v5046_v55 = vmul.f32 %v5019_v52, %v10124_v37  ;;  %v5047_v57 = vmul.f32 %v5019_v52, %v10159_v28  ;;  %v5048_v62 = vmul.f32 %v5019_v52, %v10152_v36  ;;  %v5049_v16 = vmul.f32 %v5019_v52, %v10192_v31 }
 0x77f   : > { %v5050_v10 = vmul.f32 %v5019_v52, %v10195_v63  ;;  %v5051_v58 = vmul.f32 %v5019_v52, %v10200_v1  ;;  %v5052_v22 = vmul.f32 %v5019_v52, %v10203_v21  ;;  %v5053_v45 = vmul.f32 %v5019_v52, %v10214_v54 }
 0x780   : > { %v5054_v15 = vmul.f32 %v5019_v52, %v10223_v20  ;;  %v5055_v43 = vmul.f32 %v5019_v52, %v10240_v42  ;;  %v5056_v37 = vmul.f32 %v5019_v52, %v10243_v53  ;;  %v5057_v28 = vmul.f32 %v5019_v52, %v10255_v33 }
 0x781   : > { %v5058_v36 = vmul.f32 %v5019_v52, %v10258_v24  ;;  %v5059_v31 = vmul.f32 %v5019_v52, %v10267_v9  ;;  %v5060_v63 = vmul.f32 %v5019_v52, %v10270_v27  ;;  %v5061_v1 = vmul.f32 %v5019_v52, %v10288_v47 }
 0x782   : > { %v5062_v21 = vmul.f32 %v5019_v52, %v10285_v5  ;;  %v5063_v54 = vmul.f32 %v5019_v52, %v10303_v50  ;;  %v5064_v20 = vmul.f32 %v5019_v52, %v10306_v25  ;;  %v5065_v42 = vmul.f32 %v5019_v52, %v10330_v51 }
 0x783   : > { %v5066_v53 = vmul.f32 %v5019_v52, %v10333_v39  ;;  %v5067_v33 = vmul.f32 %v5019_v52, %v11346_v17  ;;  %v5074_v24 = vadd.f32 %v10599_v59, %v5020_v12  ;;  %v5075_v9 = vadd.f32 %v10599_v59, %v5021_v46 }
 0x784   : > { %v10645_v27 = vadd.f32 %v10599_v59, %v5022_v4  ;;  %v10648_v47 = vadd.f32 %v10599_v59, %v5023_v40  ;;  %v10651_v5 = vadd.f32 %v10599_v59, %v5024_v32  ;;  %v10654_v50 = vadd.f32 %v10599_v59, %v5025_v56 }
 0x785   : > { %v10657_v25 = vadd.f32 %v10599_v59, %v5026_v3  ;;  %v10660_v51 = vadd.f32 %v10599_v59, %v5027_v48  ;;  %v10663_v39 = vadd.f32 %v10599_v59, %v5028_v29  ;;  %v10666_v17 = vadd.f32 %v10599_v59, %v5029_v49 }
 0x786   : > { %v10669_v52 = vadd.f32 %v10599_v59, %v5030_v61  ;;  %v10672_v12 = vadd.f32 %v10599_v59, %v5031_v11  ;;  %v10675_v46 = vadd.f32 %v10599_v59, %v5032_v34  ;;  %v10678_v4 = vadd.f32 %v10599_v59, %v5033_v60 }
 0x787   : > { %v10681_v40 = vadd.f32 %v10599_v59, %v5034_v38  ;;  %v10684_v32 = vadd.f32 %v10599_v59, %v5035_v35  ;;  %v10687_v56 = vadd.f32 %v10599_v59, %v5036_v2  ;;  %v10690_v3 = vadd.f32 %v10599_v59, %v5037_v0 }
 0x788   : > { %v10693_v48 = vadd.f32 %v10599_v59, %v5038_v26  ;;  %v10696_v29 = vadd.f32 %v10599_v59, %v5039_v23  ;;  %v10699_v49 = vadd.f32 %v10599_v59, %v5040_v7  ;;  %v10702_v61 = vadd.f32 %v10599_v59, %v5041_v14 }
 0x789   : > { %v10705_v11 = vadd.f32 %v10599_v59, %v5042_v41  ;;  %v10708_v34 = vadd.f32 %v10599_v59, %v5043_v19  ;;  %v10711_v60 = vadd.f32 %v10599_v59, %v5044_v6  ;;  %v10714_v38 = vadd.f32 %v10599_v59, %v5045_v8 }
 0x78a   : > { %v10718_v35 = vadd.f32 %v10599_v59, %v5046_v55  ;;  %v10721_v2 = vadd.f32 %v10599_v59, %v5047_v57  ;;  %v10724_v0 = vadd.f32 %v10599_v59, %v5048_v62  ;;  %v10727_v26 = vadd.f32 %v10599_v59, %v5049_v16 }
 0x78b   : > { %v10730_v44 = vadd.f32 %v10599_v59, %v5050_v10  ;;  %v10733_v23 = vadd.f32 %v10599_v59, %v5051_v58  ;;  %v10736_v13 = vadd.f32 %v10599_v59, %v5052_v22  ;;  %v10739_v7 = vadd.f32 %v10599_v59, %v5053_v45 }
 0x78c   : > { %v10742_v30 = vadd.f32 %v10599_v59, %v5054_v15  ;;  %v10745_v14 = vadd.f32 %v10599_v59, %v5055_v43  ;;  %v10748_v18 = vadd.f32 %v10599_v59, %v5056_v37  ;;  %v10751_v41 = vadd.f32 %v10599_v59, %v5057_v28 }
 0x78d   : > { %v10754_v19 = vadd.f32 %v10599_v59, %v5058_v36  ;;  %v10757_v6 = vadd.f32 %v10599_v59, %v5059_v31  ;;  %v10760_v8 = vadd.f32 %v10599_v59, %v5060_v63  ;;  %v10763_v55 = vadd.f32 %v10599_v59, %v5061_v1 }
 0x78e   : > { %v10766_v57 = vadd.f32 %v10599_v59, %v5062_v21  ;;  %v10769_v62 = vadd.f32 %v10599_v59, %v5063_v54  ;;  %v10772_v16 = vadd.f32 %v10599_v59, %v5064_v20  ;;  %v10775_v10 = vadd.f32 %v10599_v59, %v5065_v42 }
 0x78f   : > { %v10778_v58 = vadd.f32 %v10599_v59, %v5066_v53  ;;  %v10781_v22 = vadd.f32 %v10599_v59, %v5067_v33  ;;  %v5122_v45 = vmax.f32 %v5074_v24, 0.0  ;;  %v5123_v15 = vmax.f32 %v5075_v9, 0.0 }
 0x790   : > { %v5124_v43 = vmax.f32 %v10645_v27, 0.0  ;;  %v5125_v37 = vmax.f32 %v10648_v47, 0.0  ;;  %v5126_v28 = vmax.f32 %v10651_v5, 0.0  ;;  %v5127_v36 = vmax.f32 %v10654_v50, 0.0 }
 0x791   : > { %v5128_v31 = vmax.f32 %v10657_v25, 0.0  ;;  %v5129_v63 = vmax.f32 %v10660_v51, 0.0  ;;  %v5130_v1 = vmax.f32 %v10663_v39, 0.0  ;;  %v5131_v21 = vmax.f32 %v10666_v17, 0.0  ;;  %5170 = vst.msk [vmem:[%s10793_s9] sm:$0xff] %vm4355_vm4, %v5122_v45  ;;  %5171 = vst.msk [vmem:[%s10793_s9 + $0x8] sm:$0xff] %vm4355_vm4, %v5123_v15 }
 0x792   : > { %v5132_v59 = vmax.f32 %v10669_v52, 0.0  ;;  %v5133_v54 = vmax.f32 %v10672_v12, 0.0  ;;  %v5134_v20 = vmax.f32 %v10675_v46, 0.0  ;;  %v5135_v42 = vmax.f32 %v10678_v4, 0.0  ;;  %5172 = vst.msk [vmem:[%s10793_s9 + $0x10] sm:$0xff] %vm4355_vm4, %v5124_v43  ;;  %5173 = vst.msk [vmem:[%s10793_s9 + $0x18] sm:$0xff] %vm4355_vm4, %v5125_v37 }
 0x793   : > { %5174 = vst.msk [vmem:[%s10793_s9 + $0x20] sm:$0xff] %vm4355_vm4, %v5126_v28  ;;  %5175 = vst.msk [vmem:[%s10793_s9 + $0x28] sm:$0xff] %vm4355_vm4, %v5127_v36  ;;  %v5136_v53 = vmax.f32 %v10681_v40, 0.0  ;;  %v5137_v33 = vmax.f32 %v10684_v32, 0.0  ;;  %v5138_v24 = vmax.f32 %v10687_v56, 0.0  ;;  %v5139_v9 = vmax.f32 %v10690_v3, 0.0 }
 0x794   : > { %5176 = vst.msk [vmem:[%s10793_s9 + $0x30] sm:$0xff] %vm4355_vm4, %v5128_v31  ;;  %5177 = vst.msk [vmem:[%s10793_s9 + $0x38] sm:$0xff] %vm4355_vm4, %v5129_v63  ;;  %v5140_v27 = vmax.f32 %v10693_v48, 0.0  ;;  %v5141_v47 = vmax.f32 %v10696_v29, 0.0  ;;  %v5142_v5 = vmax.f32 %v10699_v49, 0.0  ;;  %v5143_v50 = vmax.f32 %v10702_v61, 0.0 }
 0x795   : > { %5178 = vst.msk [vmem:[%s10793_s9 + $0x40] sm:$0xff] %vm4355_vm4, %v5130_v1  ;;  %5179 = vst.msk [vmem:[%s10793_s9 + $0x48] sm:$0xff] %vm4355_vm4, %v5131_v21  ;;  %v5144_v25 = vmax.f32 %v10705_v11, 0.0  ;;  %v5145_v51 = vmax.f32 %v10708_v34, 0.0  ;;  %v5146_v39 = vmax.f32 %v10711_v60, 0.0  ;;  %v5147_v17 = vmax.f32 %v10714_v38, 0.0 }
 0x796   : > { %5180 = vst.msk [vmem:[%s10793_s9 + $0x50] sm:$0xff] %vm4355_vm4, %v5132_v59  ;;  %5181 = vst.msk [vmem:[%s10793_s9 + $0x58] sm:$0xff] %vm4355_vm4, %v5133_v54  ;;  %v5148_v52 = vmax.f32 %v10718_v35, 0.0  ;;  %v5149_v12 = vmax.f32 %v10721_v2, 0.0  ;;  %v5150_v46 = vmax.f32 %v10724_v0, 0.0  ;;  %v5151_v4 = vmax.f32 %v10727_v26, 0.0 }
 0x797   : > { %5182 = vst.msk [vmem:[%s10793_s9 + $0x60] sm:$0xff] %vm4355_vm4, %v5134_v20  ;;  %5183 = vst.msk [vmem:[%s10793_s9 + $0x68] sm:$0xff] %vm4355_vm4, %v5135_v42  ;;  %v5152_v40 = vmax.f32 %v10730_v44, 0.0  ;;  %v5153_v32 = vmax.f32 %v10733_v23, 0.0  ;;  %v5154_v56 = vmax.f32 %v10736_v13, 0.0  ;;  %v5155_v3 = vmax.f32 %v10739_v7, 0.0 }
 0x798   : > { %5184 = vst.msk [vmem:[%s10793_s9 + $0x70] sm:$0xff] %vm4355_vm4, %v5136_v53  ;;  %5185 = vst.msk [vmem:[%s10793_s9 + $0x78] sm:$0xff] %vm4355_vm4, %v5137_v33  ;;  %v5156_v48 = vmax.f32 %v10742_v30, 0.0  ;;  %v5157_v29 = vmax.f32 %v10745_v14, 0.0  ;;  %v5158_v49 = vmax.f32 %v10748_v18, 0.0  ;;  %v5159_v61 = vmax.f32 %v10751_v41, 0.0 }
 0x799   : > { %5186 = vst.msk [vmem:[%s10793_s9 + $0x80] sm:$0xff] %vm4355_vm4, %v5138_v24  ;;  %5187 = vst.msk [vmem:[%s10793_s9 + $0x88] sm:$0xff] %vm4355_vm4, %v5139_v9  ;;  %v5160_v11 = vmax.f32 %v10754_v19, 0.0  ;;  %v5161_v34 = vmax.f32 %v10757_v6, 0.0  ;;  %v5162_v60 = vmax.f32 %v10760_v8, 0.0  ;;  %v5163_v38 = vmax.f32 %v10763_v55, 0.0 }
 0x79a   : > { %5188 = vst.msk [vmem:[%s10793_s9 + $0x90] sm:$0xff] %vm4355_vm4, %v5140_v27  ;;  %5189 = vst.msk [vmem:[%s10793_s9 + $0x98] sm:$0xff] %vm4355_vm4, %v5141_v47  ;;  %v5164_v35 = vmax.f32 %v10766_v57, 0.0  ;;  %v5165_v2 = vmax.f32 %v10769_v62, 0.0  ;;  %v5166_v0 = vmax.f32 %v10772_v16, 0.0  ;;  %v5167_v26 = vmax.f32 %v10775_v10, 0.0 }
 0x79b   : > { %5190 = vst.msk [vmem:[%s10793_s9 + $0xa0] sm:$0xff] %vm4355_vm4, %v5142_v5  ;;  %5191 = vst.msk [vmem:[%s10793_s9 + $0xa8] sm:$0xff] %vm4355_vm4, %v5143_v50  ;;  %v5168_v44 = vmax.f32 %v10778_v58, 0.0  ;;  %v5169_v23 = vmax.f32 %v10781_v22, 0.0 }
 0x79c   : > { %5192 = vst.msk [vmem:[%s10793_s9 + $0xb0] sm:$0xff] %vm4355_vm4, %v5144_v25  ;;  %5193 = vst.msk [vmem:[%s10793_s9 + $0xb8] sm:$0xff] %vm4355_vm4, %v5145_v51 }
 0x79d   : > { %5194 = vst.msk [vmem:[%s10793_s9 + $0xc0] sm:$0xff] %vm4355_vm4, %v5146_v39  ;;  %5195 = vst.msk [vmem:[%s10793_s9 + $0xc8] sm:$0xff] %vm4355_vm4, %v5147_v17 }
 0x79e   : > { %5196 = vst.msk [vmem:[%s10793_s9 + $0xd0] sm:$0xff] %vm4355_vm4, %v5148_v52  ;;  %5197 = vst.msk [vmem:[%s10793_s9 + $0xd8] sm:$0xff] %vm4355_vm4, %v5149_v12 }
 0x79f   : > { %5198 = vst.msk [vmem:[%s10793_s9 + $0xe0] sm:$0xff] %vm4355_vm4, %v5150_v46  ;;  %5199 = vst.msk [vmem:[%s10793_s9 + $0xe8] sm:$0xff] %vm4355_vm4, %v5151_v4 }
 0x7a0   : > { %5200 = vst.msk [vmem:[%s10793_s9 + $0xf0] sm:$0xff] %vm4355_vm4, %v5152_v40  ;;  %5201 = vst.msk [vmem:[%s10793_s9 + $0xf8] sm:$0xff] %vm4355_vm4, %v5153_v32 }
 0x7a1   : > { %5202 = vst.msk [vmem:[%s10793_s9 + $0x100] sm:$0xff] %vm4355_vm4, %v5154_v56  ;;  %5203 = vst.msk [vmem:[%s10793_s9 + $0x108] sm:$0xff] %vm4355_vm4, %v5155_v3 }
 0x7a2   : > { %5204 = vst.msk [vmem:[%s10793_s9 + $0x110] sm:$0xff] %vm4355_vm4, %v5156_v48  ;;  %5205 = vst.msk [vmem:[%s10793_s9 + $0x118] sm:$0xff] %vm4355_vm4, %v5157_v29 }
 0x7a3   : > { %5206 = vst.msk [vmem:[%s10793_s9 + $0x120] sm:$0xff] %vm4355_vm4, %v5158_v49  ;;  %5207 = vst.msk [vmem:[%s10793_s9 + $0x128] sm:$0xff] %vm4355_vm4, %v5159_v61 }
 0x7a4   : > { %5208 = vst.msk [vmem:[%s10793_s9 + $0x130] sm:$0xff] %vm4355_vm4, %v5160_v11  ;;  %5209 = vst.msk [vmem:[%s10793_s9 + $0x138] sm:$0xff] %vm4355_vm4, %v5161_v34 }
 0x7a5   : > { %5210 = vst.msk [vmem:[%s10793_s9 + $0x140] sm:$0xff] %vm4355_vm4, %v5162_v60  ;;  %5211 = vst.msk [vmem:[%s10793_s9 + $0x148] sm:$0xff] %vm4355_vm4, %v5163_v38 }
 0x7a6   : > { %5212 = vst.msk [vmem:[%s10793_s9 + $0x150] sm:$0xff] %vm4355_vm4, %v5164_v35  ;;  %5213 = vst.msk [vmem:[%s10793_s9 + $0x158] sm:$0xff] %vm4355_vm4, %v5165_v2 }
 0x7a7   : > { %5214 = vst.msk [vmem:[%s10793_s9 + $0x160] sm:$0xff] %vm4355_vm4, %v5166_v0  ;;  %5215 = vst.msk [vmem:[%s10793_s9 + $0x168] sm:$0xff] %vm4355_vm4, %v5167_v26 }
 0x7a8   : > { %5216 = vst.msk [vmem:[%s10793_s9 + $0x170] sm:$0xff] %vm4355_vm4, %v5168_v44  ;;  %5217 = vst.msk [vmem:[%s10793_s9 + $0x178] sm:$0xff] %vm4355_vm4, %v5169_v23 }
 0x7a9   : > { %7783 = shalt.err (!%p7780_p8)
}
 0x7aa   : > { %s7784_s19 = scalar_lea.hbm %s10914_s21, 6144  ;;  %s7788_s8 = scalar_lea.hbm %s11374_s30, 12288 }
 0x7ab   : > { %p7785_p3 = scmp.ne.s32.totalorder %s10914_s21, %s7784_s19  ;;  %p7789_p13 = scmp.lt.u32.totalorder %s10914_s21, %s11374_s30 }
 0x7ac   : > { %p7790_p1 = scmp.lt.u32.totalorder %s7788_s8, %s7784_s19  ;;  %p7792_p2 = scmp.lt.u32.totalorder %s7784_s19, %s10914_s21 }
 0x7ad   : > { %p7786_p12 = pnand %p7785_p3, %p11375_p9 }
 0x7ae   : > { %p7791_p4 = por %p7790_p1, %p7789_p13 }
 0x7af   : > { %p7787_p6 = pneg %p7786_p12 }
 0x7b0   : > { %p7793_p10 = por %p7792_p2, %p7791_p4 }
 0x7b2   : > { %p7794_p11 = pnand %p7793_p10, %p7787_p6 }
 0x7b4   : > { %7797 = shalt.err (!%p7794_p11)
}
 0x7b5   : > { %s7880_s12 = smov 128   ;;  %s7881_s1 = smov 8  }
 0x7b6   : > { %7415 = dma.vmem_to_hbm [thread:$0]  (%p11375_p9), %s10916_s16, 6144, %s10914_s21, %s5219_s27, %s7880_s12, %s7880_s12, %s7881_s1  }
 0x7b7 PF: > { %s5248_s7 = sand.u32 1, %s7844_s24   ;;  %p11376_p0 = scmp.ne.s32.totalorder %s11141_s11, 0 }
 0x7b8   : > { %p11377_p7 = scmp.ge.s32.totalorder %s7864_s29, 2  ;;  %s5249_s2 = scalar_lea.sflag [#allocation4], %s5248_s7 }
 0x7ba   : > { %p7441_p5 = pnand %p11377_p7, %p11376_p0 }
 0x7bc   : > { %7839 = dma.done.wait (!%p7441_p5), %s5249_s2, 6144  }
 0x7bd   : > { %7841 = vsyncadd (!%p7441_p5), %s5249_s2, 4294961152  ;;  %s26_s29 = sadd.s32 1, %s7864_s29   ;;  %s11378_s24 = smov %s7848_s25 }
 0x7be   : > { %p23_p8 = scmp.ge.s32.totalorder %s26_s29, 4   ;;  %s11379_s25 = smov %s7852_s26 }
 0x7bf   : > { %s11380_s26 = smov %s8147_s13  ;;  %s11381_s27 = smov %s7860_s28 }
 0x7c0   : > { %s11382_s28 = smov %s11384_s22  ;;  %25 = sbr.rel (!%p23_p8) target bundleno = 13 (0xd), region = 128 }
 0x7c7   :  { %5254 = vsyncpa [#allocation3], 1 }
 0x7c8   :  { %5256 = vsyncpa [#allocation3 + $0x1], 1 }
 0x7c9   :  { %5257 = vsyncpa [#allocation6], 1 }
 0x7ca   :  { %5258 = vsyncpa [#allocation9], 1 }
 0x7cb   :  { %5259 = vsyncpa [#allocation12], 1 }
 0x7cc   :  { %5260 = vsyncpa [#allocation4], 1 }
 0x7cd   :  { %5262 = vsyncpa [#allocation4 + $0x1], 1 }

</bundles_post_ra>
